<compile_context>
chip_gen: v5e
topology: v5e:2x2
jax: 0.10.0
libtpu: 0.0.40
codegen_flags: <defaults>
</compile_context>

<pallas_src>
import functools

import jax
import jax.numpy as jnp
from jax.experimental import pallas as pl
from jax.experimental.pallas import tpu as pltpu

BN_EPS = 1e-5
CONV_OUT = 20          # LeNet5 hard-codes Conv2d(in, 20, 3, padding=1, bias=False)
HIDDEN = 500           # LeNet5 hard-codes Linear(in_features, 500, bias=False)
COUT_PAD = 128         # conv channels lane-padded to a full vreg
HID_PAD = 512          # 500 -> 512
OUT_PAD = 128          # out_classes -> 128 (lane-dense output store)


# --------------------------------------------------------------- kernel -----
def _make_lenet5_kernel(n, h, w):
    npos = (h // 4) * (w // 4)       # spatial positions per sample after pool 2
    m0 = n * h * w                   # conv rows, ordered (dh1,dw1,dh2,dw2,h4,w4,n)
    m1 = m0 // 4                     # after pool 1: (dh2,dw2,h4,w4,n)
    m2 = m1 // 4                     # after pool 2: (h4,w4,n) == (p, n)

    def kernel(xc_ref, wt_ref, g2_ref, b2_ref, w1_ref, w2_ref, out_ref):
        # ---- Conv2d 3x3, padding=1, bias=False: ONE K=9*cin MXU matmul ----
        acc = jnp.dot(xc_ref[...], wt_ref[...],
                      preferred_element_type=jnp.float32)           # (m0, 128)

        # ---- BatchNorm2d (affine=False, batch stats, one pass) + ReLU ----
        s1 = jnp.sum(acc, axis=0, keepdims=True)
        s2 = jnp.sum(acc * acc, axis=0, keepdims=True)
        mu = s1 * (1.0 / m0)
        var = jnp.maximum(s2 * (1.0 / m0) - mu * mu, 0.0)
        act = jnp.maximum((acc - mu) * jax.lax.rsqrt(var + BN_EPS), 0.0)

        # ---- MaxPool 2x2 #1: quadtree row order -> 4-way max of contiguous
        #      row quarters (no masks, no matmuls) ----
        p1 = jnp.maximum(jnp.maximum(act[0 * m1:1 * m1], act[1 * m1:2 * m1]),
                         jnp.maximum(act[2 * m1:3 * m1], act[3 * m1:4 * m1]))

        # ---- BatchNorm2d (affine=True, batch stats, one pass) + ReLU ----
        t1 = jnp.sum(p1, axis=0, keepdims=True)
        t2 = jnp.sum(p1 * p1, axis=0, keepdims=True)
        mu2 = t1 * (1.0 / m1)
        var2 = jnp.maximum(t2 * (1.0 / m1) - mu2 * mu2, 0.0)
        act2 = (p1 - mu2) * jax.lax.rsqrt(var2 + BN_EPS)
        act2 = jnp.maximum(act2 * g2_ref[...] + b2_ref[...], 0.0)

        # ---- MaxPool 2x2 #2: again a 4-way contiguous-block max ----
        p2 = jnp.maximum(jnp.maximum(act2[0 * m2:1 * m2], act2[1 * m2:2 * m2]),
                         jnp.maximum(act2[2 * m2:3 * m2], act2[3 * m2:4 * m2]))
        # p2 rows ordered (p, n) with p = h4*(w//4) + w4; lanes are channels.

        # ---- flatten: feat[i, p*128 + c] = p2[p*n + i, c] ----
        # One wide lane-dense value (lane-concat of npos (n,128) chunks at
        # 128-aligned offsets); no scratch round-trip, single store-free path.
        feat = jnp.concatenate([p2[p * n:(p + 1) * n, :] for p in range(npos)],
                               axis=1)                               # (n, npos*128)

        # ---- Linear(500) -> BatchNorm1d -> ReLU -> Linear(out), bias-free ----
        hid = jnp.dot(feat.astype(w1_ref.dtype), w1_ref[...],
                      preferred_element_type=jnp.float32)            # (n, 512)
        u1 = jnp.sum(hid, axis=0, keepdims=True)
        u2 = jnp.sum(hid * hid, axis=0, keepdims=True)
        mh = u1 * (1.0 / n)
        vh = jnp.maximum(u2 * (1.0 / n) - mh * mh, 0.0)
        hid = jnp.maximum((hid - mh) * jax.lax.rsqrt(vh + BN_EPS), 0.0)
        out_ref[...] = jnp.dot(hid.astype(w2_ref.dtype), w2_ref[...],
                               preferred_element_type=jnp.float32)

    return kernel


# -------------------------------------------------------------- wrapper -----
def _im2col_quadtree(x_nchw):
    """(N,C,H,W) -> (N*H*W, 9*C) im2col with rows ordered
    (dh1, dw1, dh2, dw2, h4, w4, n), where h = 4*h4 + 2*dh2 + dh1 and
    w = 4*w4 + 2*dw2 + dw1, so both 2x2 max-pools become maxima over
    contiguous row quarters inside the kernel."""
    n, c, h, w = x_nchw.shape
    x = jnp.transpose(x_nchw, (0, 2, 3, 1))                        # NHWC
    xp = jnp.pad(x, ((0, 0), (1, 1), (1, 1), (0, 0)))
    cols = jnp.concatenate([xp[:, ky:ky + h, kx:kx + w, :]
                            for ky in range(3) for kx in range(3)], axis=-1)
    hq, wq = h // 4, w // 4
    t = cols.reshape(n, hq, 2, 2, wq, 2, 2, 9 * c)    # (n,h4,dh2,dh1,w4,dw2,dw1,k)
    t = jnp.transpose(t, (3, 6, 2, 5, 1, 4, 0, 7))    # (dh1,dw1,dh2,dw2,h4,w4,n,k)
    return t.reshape(n * h * w, 9 * c)


@functools.partial(jax.jit, static_argnames=("out_classes",))
def lenet5_forward(kp, x_nchw, *, out_classes):
    n, c, h, w = x_nchw.shape
    xcols = _im2col_quadtree(x_nchw)                   # (n*h*w, 9*c), f32
    m0, k9 = xcols.shape
    npos = (h // 4) * (w // 4)
    feat_pad = npos * COUT_PAD

    kernel = _make_lenet5_kernel(n, h, w)

    # Honest scheduler hint: only the three real matmuls dominate.
    flops = 2 * (m0 * k9 * COUT_PAD
                 + n * feat_pad * HID_PAD
                 + n * HID_PAD * OUT_PAD)
    bytes_accessed = sum(int(a.size) * a.dtype.itemsize
                         for a in (xcols, kp["wt"], kp["gamma2"], kp["beta2"],
                                   kp["w1p"], kp["w2p"])) + n * OUT_PAD * 4

    out = pl.pallas_call(
        kernel,
        out_shape=jax.ShapeDtypeStruct((n, OUT_PAD), jnp.float32),
        grid=(1,),
        in_specs=[
            pl.BlockSpec((m0, k9), lambda i: (0, 0)),
            pl.BlockSpec((k9, COUT_PAD), lambda i: (0, 0)),
            pl.BlockSpec((1, COUT_PAD), lambda i: (0, 0)),
            pl.BlockSpec((1, COUT_PAD), lambda i: (0, 0)),
            pl.BlockSpec((feat_pad, HID_PAD), lambda i: (0, 0)),
            pl.BlockSpec((HID_PAD, OUT_PAD), lambda i: (0, 0)),
        ],
        out_specs=pl.BlockSpec((n, OUT_PAD), lambda i: (0, 0)),
        compiler_params=pltpu.CompilerParams(
            dimension_semantics=("arbitrary",),
            vmem_limit_bytes=32 * 1024 * 1024),
        cost_estimate=pl.CostEstimate(flops=int(flops),
                                      transcendentals=int(2 * COUT_PAD + HID_PAD),
                                      bytes_accessed=int(bytes_accessed)),
    )(xcols, kp["wt"], kp["gamma2"], kp["beta2"], kp["w1p"], kp["w2p"])
    return out[:, :out_classes]


# ------------------------------------------------------------------ init ----
def init_torch_params(key, in_channels, out_classes, feat_dim):
    """Parameters in PyTorch conventions (conv: (Cout,Cin,3,3), linear: (out,in))."""
    kconv, kg, kb, k1, k2 = jax.random.split(key, 5)
    w_conv = 0.1 * jax.random.normal(kconv, (CONV_OUT, in_channels, 3, 3), jnp.float32)
    gamma2 = 1.0 + 0.1 * jax.random.normal(kg, (CONV_OUT,), jnp.float32)
    beta2 = 0.1 * jax.random.normal(kb, (CONV_OUT,), jnp.float32)
    w1 = 0.05 * jax.random.normal(k1, (HIDDEN, feat_dim), jnp.float32)
    w2 = 0.05 * jax.random.normal(k2, (out_classes, HIDDEN), jnp.float32)
    return dict(w_conv=w_conv, gamma2=gamma2, beta2=beta2, w1=w1, w2=w2)


def prepare_params(tp, in_channels, out_classes, hf, wf, matmul_dtype=jnp.float32):
    """One-time reorder/zero-pad of torch weights into the kernel's padded layouts."""
    npos = hf * wf
    k9 = 9 * in_channels
    # conv: (Cout,Cin,3,3) -> (9*Cin, COUT_PAD); row = (ky*3+kx)*Cin + ci
    wt = jnp.transpose(tp["w_conv"], (2, 3, 1, 0)).reshape(k9, CONV_OUT)
    wt = jnp.zeros((k9, COUT_PAD), jnp.float32).at[:, :CONV_OUT].set(wt)
    gamma2 = jnp.zeros((1, COUT_PAD), jnp.float32).at[0, :CONV_OUT].set(tp["gamma2"])
    beta2 = jnp.zeros((1, COUT_PAD), jnp.float32).at[0, :CONV_OUT].set(tp["beta2"])
    # classifier W1: torch feature index = c*npos + p ; kernel lane = p*128 + c
    w1 = tp["w1"].T.reshape(CONV_OUT, npos, HIDDEN)                      # (c, p, j)
    w1 = jnp.transpose(w1, (1, 0, 2))                                    # (p, c, j)
    w1p = jnp.zeros((npos, COUT_PAD, HID_PAD), jnp.float32)
    w1p = w1p.at[:, :CONV_OUT, :HIDDEN].set(w1).reshape(npos * COUT_PAD, HID_PAD)
    w2p = jnp.zeros((HID_PAD, OUT_PAD), jnp.float32).at[:HIDDEN, :out_classes].set(tp["w2"].T)
    return dict(wt=wt, gamma2=gamma2, beta2=beta2,
                w1p=w1p.astype(matmul_dtype), w2p=w2p.astype(matmul_dtype))


# ------------------------------------------------------------- reference ----
def reference_forward(tp, x_nchw):
    x = jnp.transpose(x_nchw, (0, 2, 3, 1))
    n, h, w, cin = x.shape
    xp = jnp.pad(x, ((0, 0), (1, 1), (1, 1), (0, 0)))
    cols = jnp.concatenate([xp[:, ky:ky + h, kx:kx + w, :]
                            for ky in range(3) for kx in range(3)], axis=-1)
    wmat = jnp.transpose(tp["w_conv"], (2, 3, 1, 0)).reshape(9 * cin, CONV_OUT)
    conv = (cols.reshape(n * h * w, 9 * cin) @ wmat).reshape(n, h, w, CONV_OUT)

    def bn_relu_pool(y, g, b):
        mean = y.mean(axis=(0, 1, 2), keepdims=True)
        var = ((y - mean) ** 2).mean(axis=(0, 1, 2), keepdims=True)
        y = (y - mean) * jax.lax.rsqrt(var + BN_EPS) * g + b
        y = jnp.maximum(y, 0.0)
        nn_, hh, ww, cc = y.shape
        return y.reshape(nn_, hh // 2, 2, ww // 2, 2, cc).max(axis=(2, 4))

    y = bn_relu_pool(conv, 1.0, 0.0)
    y = bn_relu_pool(y, tp["gamma2"].reshape(1, 1, 1, -1), tp["beta2"].reshape(1, 1, 1, -1))
    feat = jnp.transpose(y, (0, 3, 1, 2)).reshape(n, -1)     # torch .view order (C,H,W)
    hid = feat @ tp["w1"].T
    m = hid.mean(axis=0, keepdims=True)
    v = ((hid - m) ** 2).mean(axis=0, keepdims=True)
    hid = jnp.maximum((hid - m) * jax.lax.rsqrt(v + BN_EPS), 0.0)
    return hid @ tp["w2"].T


if __name__ == "__main__":
    N, C, H, W = 2, 4, 16, 16          # in_size = (4, 16, 16)
    OUT_CLASSES = 10
    key = jax.random.PRNGKey(0)
    kx_, kp_ = jax.random.split(key)
    x = jax.random.normal(kx_, (N, C, H, W), jnp.float32)   # NCHW, PyTorch convention

    feat_dim = CONV_OUT * (H // 4) * (W // 4)               # 20 * 4 * 4 = 320
    tp = init_torch_params(kp_, C, OUT_CLASSES, feat_dim)
    kp = prepare_params(tp, C, OUT_CLASSES, H // 4, W // 4)  # f32; bf16 = prod setting

    out = lenet5_forward(kp, x, out_classes=OUT_CLASSES)
    out = jax.block_until_ready(out)
    assert out.shape == (N, OUT_CLASSES)

    ref = reference_forward(tp, x)
    assert jnp.allclose(out, ref, atol=1e-2, rtol=1e-2), "mismatch vs pure-JAX reference"

    print("KERNEL_OK")
</pallas_src>

<mosaic_0001>
module attributes {stable_mosaic.version = 11 : i64} {
  func.func @kernel(%arg0: i32, %arg1: memref<512x36xf32, #tpu.memory_space<vmem>>, %arg2: memref<36x128xf32, #tpu.memory_space<vmem>>, %arg3: memref<1x128xf32, #tpu.memory_space<vmem>>, %arg4: memref<1x128xf32, #tpu.memory_space<vmem>>, %arg5: memref<2048x512xf32, #tpu.memory_space<vmem>>, %arg6: memref<512x128xf32, #tpu.memory_space<vmem>>, %arg7: memref<2x128xf32, #tpu.memory_space<vmem>>) attributes {dimension_semantics = [#tpu.dimension_semantics<arbitrary>], iteration_bounds = array<i64: 1>, scalar_prefetch = 0 : i64, scratch_operands = 0 : i64, tpu.core_type = #tpu.core_type<tc>, window_params = [{pipeline_mode = #tpu.pipeline_mode<synchronous>, transform_indices = @transform_0, window_bounds = array<i64: 512, 36>}, {pipeline_mode = #tpu.pipeline_mode<synchronous>, transform_indices = @transform_1, window_bounds = array<i64: 36, 128>}, {pipeline_mode = #tpu.pipeline_mode<synchronous>, transform_indices = @transform_2, window_bounds = array<i64: 1, 128>}, {pipeline_mode = #tpu.pipeline_mode<synchronous>, transform_indices = @transform_3, window_bounds = array<i64: 1, 128>}, {pipeline_mode = #tpu.pipeline_mode<synchronous>, transform_indices = @transform_4, window_bounds = array<i64: 2048, 512>}, {pipeline_mode = #tpu.pipeline_mode<synchronous>, transform_indices = @transform_5, window_bounds = array<i64: 512, 128>}, {pipeline_mode = #tpu.pipeline_mode<synchronous>, transform_indices = @transform_6, window_bounds = array<i64: 2, 128>}]} {
    %c0 = arith.constant 0 : index
    %c0_0 = arith.constant 0 : index
    %0 = vector.load %arg1[%c0, %c0_0] : memref<512x36xf32, #tpu.memory_space<vmem>>, vector<512x36xf32>
    %c0_1 = arith.constant 0 : index
    %c0_2 = arith.constant 0 : index
    %1 = vector.load %arg2[%c0_1, %c0_2] : memref<36x128xf32, #tpu.memory_space<vmem>>, vector<36x128xf32>
    %cst = arith.constant dense<0.000000e+00> : vector<512x128xf32>
    %2 = tpu.matmul %0, %1, %cst {dimension_numbers = #tpu.dot_dimension_numbers<[1], [0], [0], [1], [0, 0, 1, 1], [], []>} : vector<512x36xf32>, vector<36x128xf32>, vector<512x128xf32> -> vector<512x128xf32>
    %cst_3 = arith.constant dense<0.000000e+00> : vector<128xf32>
    %3 = vector.multi_reduction <add>, %2, %cst_3 [0] : vector<512x128xf32> to vector<128xf32>
    %4 = vector.shape_cast %3 : vector<128xf32> to vector<1x128xf32>
    %5 = arith.mulf %2, %2 : vector<512x128xf32>
    %cst_4 = arith.constant dense<0.000000e+00> : vector<128xf32>
    %6 = vector.multi_reduction <add>, %5, %cst_4 [0] : vector<512x128xf32> to vector<128xf32>
    %7 = vector.shape_cast %6 : vector<128xf32> to vector<1x128xf32>
    %cst_5 = arith.constant 0.001953125 : f32
    %8 = vector.broadcast %cst_5 : f32 to vector<1x128xf32>
    %9 = arith.mulf %4, %8 : vector<1x128xf32>
    %cst_6 = arith.constant 0.001953125 : f32
    %10 = vector.broadcast %cst_6 : f32 to vector<1x128xf32>
    %11 = arith.mulf %7, %10 : vector<1x128xf32>
    %12 = arith.mulf %9, %9 : vector<1x128xf32>
    %13 = arith.subf %11, %12 : vector<1x128xf32>
    %cst_7 = arith.constant 0.000000e+00 : f32
    %14 = vector.broadcast %cst_7 : f32 to vector<1x128xf32>
    %15 = arith.maximumf %13, %14 : vector<1x128xf32>
    %16 = vector.broadcast %9 : vector<1x128xf32> to vector<512x128xf32>
    %17 = arith.subf %2, %16 : vector<512x128xf32>
    %cst_8 = arith.constant 9.99999974E-6 : f32
    %18 = vector.broadcast %cst_8 : f32 to vector<1x128xf32>
    %19 = arith.addf %15, %18 : vector<1x128xf32>
    %20 = math.rsqrt %19 : vector<1x128xf32>
    %21 = vector.broadcast %20 : vector<1x128xf32> to vector<512x128xf32>
    %22 = arith.mulf %17, %21 : vector<512x128xf32>
    %cst_9 = arith.constant 0.000000e+00 : f32
    %23 = vector.broadcast %cst_9 : f32 to vector<512x128xf32>
    %24 = arith.maximumf %22, %23 : vector<512x128xf32>
    %25 = vector.extract_strided_slice %24 {offsets = [0, 0], sizes = [128, 128], strides = [1, 1]} : vector<512x128xf32> to vector<128x128xf32>
    %26 = vector.extract_strided_slice %24 {offsets = [128, 0], sizes = [128, 128], strides = [1, 1]} : vector<512x128xf32> to vector<128x128xf32>
    %27 = arith.maximumf %25, %26 : vector<128x128xf32>
    %28 = vector.extract_strided_slice %24 {offsets = [256, 0], sizes = [128, 128], strides = [1, 1]} : vector<512x128xf32> to vector<128x128xf32>
    %29 = vector.extract_strided_slice %24 {offsets = [384, 0], sizes = [128, 128], strides = [1, 1]} : vector<512x128xf32> to vector<128x128xf32>
    %30 = arith.maximumf %28, %29 : vector<128x128xf32>
    %31 = arith.maximumf %27, %30 : vector<128x128xf32>
    %cst_10 = arith.constant dense<0.000000e+00> : vector<128xf32>
    %32 = vector.multi_reduction <add>, %31, %cst_10 [0] : vector<128x128xf32> to vector<128xf32>
    %33 = vector.shape_cast %32 : vector<128xf32> to vector<1x128xf32>
    %34 = arith.mulf %31, %31 : vector<128x128xf32>
    %cst_11 = arith.constant dense<0.000000e+00> : vector<128xf32>
    %35 = vector.multi_reduction <add>, %34, %cst_11 [0] : vector<128x128xf32> to vector<128xf32>
    %36 = vector.shape_cast %35 : vector<128xf32> to vector<1x128xf32>
    %cst_12 = arith.constant 7.812500e-03 : f32
    %37 = vector.broadcast %cst_12 : f32 to vector<1x128xf32>
    %38 = arith.mulf %33, %37 : vector<1x128xf32>
    %cst_13 = arith.constant 7.812500e-03 : f32
    %39 = vector.broadcast %cst_13 : f32 to vector<1x128xf32>
    %40 = arith.mulf %36, %39 : vector<1x128xf32>
    %41 = arith.mulf %38, %38 : vector<1x128xf32>
    %42 = arith.subf %40, %41 : vector<1x128xf32>
    %cst_14 = arith.constant 0.000000e+00 : f32
    %43 = vector.broadcast %cst_14 : f32 to vector<1x128xf32>
    %44 = arith.maximumf %42, %43 : vector<1x128xf32>
    %45 = vector.broadcast %38 : vector<1x128xf32> to vector<128x128xf32>
    %46 = arith.subf %31, %45 : vector<128x128xf32>
    %cst_15 = arith.constant 9.99999974E-6 : f32
    %47 = vector.broadcast %cst_15 : f32 to vector<1x128xf32>
    %48 = arith.addf %44, %47 : vector<1x128xf32>
    %49 = math.rsqrt %48 : vector<1x128xf32>
    %50 = vector.broadcast %49 : vector<1x128xf32> to vector<128x128xf32>
    %51 = arith.mulf %46, %50 : vector<128x128xf32>
    %c0_16 = arith.constant 0 : index
    %c0_17 = arith.constant 0 : index
    %52 = vector.load %arg3[%c0_16, %c0_17] : memref<1x128xf32, #tpu.memory_space<vmem>>, vector<1x128xf32>
    %53 = vector.broadcast %52 : vector<1x128xf32> to vector<128x128xf32>
    %54 = arith.mulf %51, %53 : vector<128x128xf32>
    %c0_18 = arith.constant 0 : index
    %c0_19 = arith.constant 0 : index
    %55 = vector.load %arg4[%c0_18, %c0_19] : memref<1x128xf32, #tpu.memory_space<vmem>>, vector<1x128xf32>
    %56 = vector.broadcast %55 : vector<1x128xf32> to vector<128x128xf32>
    %57 = arith.addf %54, %56 : vector<128x128xf32>
    %cst_20 = arith.constant 0.000000e+00 : f32
    %58 = vector.broadcast %cst_20 : f32 to vector<128x128xf32>
    %59 = arith.maximumf %57, %58 : vector<128x128xf32>
    %60 = vector.extract_strided_slice %59 {offsets = [0, 0], sizes = [32, 128], strides = [1, 1]} : vector<128x128xf32> to vector<32x128xf32>
    %61 = vector.extract_strided_slice %59 {offsets = [32, 0], sizes = [32, 128], strides = [1, 1]} : vector<128x128xf32> to vector<32x128xf32>
    %62 = arith.maximumf %60, %61 : vector<32x128xf32>
    %63 = vector.extract_strided_slice %59 {offsets = [64, 0], sizes = [32, 128], strides = [1, 1]} : vector<128x128xf32> to vector<32x128xf32>
    %64 = vector.extract_strided_slice %59 {offsets = [96, 0], sizes = [32, 128], strides = [1, 1]} : vector<128x128xf32> to vector<32x128xf32>
    %65 = arith.maximumf %63, %64 : vector<32x128xf32>
    %66 = arith.maximumf %62, %65 : vector<32x128xf32>
    %67 = vector.extract_strided_slice %66 {offsets = [0, 0], sizes = [2, 128], strides = [1, 1]} : vector<32x128xf32> to vector<2x128xf32>
    %68 = vector.extract_strided_slice %66 {offsets = [2, 0], sizes = [2, 128], strides = [1, 1]} : vector<32x128xf32> to vector<2x128xf32>
    %69 = vector.extract_strided_slice %66 {offsets = [4, 0], sizes = [2, 128], strides = [1, 1]} : vector<32x128xf32> to vector<2x128xf32>
    %70 = vector.extract_strided_slice %66 {offsets = [6, 0], sizes = [2, 128], strides = [1, 1]} : vector<32x128xf32> to vector<2x128xf32>
    %71 = vector.extract_strided_slice %66 {offsets = [8, 0], sizes = [2, 128], strides = [1, 1]} : vector<32x128xf32> to vector<2x128xf32>
    %72 = vector.extract_strided_slice %66 {offsets = [10, 0], sizes = [2, 128], strides = [1, 1]} : vector<32x128xf32> to vector<2x128xf32>
    %73 = vector.extract_strided_slice %66 {offsets = [12, 0], sizes = [2, 128], strides = [1, 1]} : vector<32x128xf32> to vector<2x128xf32>
    %74 = vector.extract_strided_slice %66 {offsets = [14, 0], sizes = [2, 128], strides = [1, 1]} : vector<32x128xf32> to vector<2x128xf32>
    %75 = vector.extract_strided_slice %66 {offsets = [16, 0], sizes = [2, 128], strides = [1, 1]} : vector<32x128xf32> to vector<2x128xf32>
    %76 = vector.extract_strided_slice %66 {offsets = [18, 0], sizes = [2, 128], strides = [1, 1]} : vector<32x128xf32> to vector<2x128xf32>
    %77 = vector.extract_strided_slice %66 {offsets = [20, 0], sizes = [2, 128], strides = [1, 1]} : vector<32x128xf32> to vector<2x128xf32>
    %78 = vector.extract_strided_slice %66 {offsets = [22, 0], sizes = [2, 128], strides = [1, 1]} : vector<32x128xf32> to vector<2x128xf32>
    %79 = vector.extract_strided_slice %66 {offsets = [24, 0], sizes = [2, 128], strides = [1, 1]} : vector<32x128xf32> to vector<2x128xf32>
    %80 = vector.extract_strided_slice %66 {offsets = [26, 0], sizes = [2, 128], strides = [1, 1]} : vector<32x128xf32> to vector<2x128xf32>
    %81 = vector.extract_strided_slice %66 {offsets = [28, 0], sizes = [2, 128], strides = [1, 1]} : vector<32x128xf32> to vector<2x128xf32>
    %82 = vector.extract_strided_slice %66 {offsets = [30, 0], sizes = [2, 128], strides = [1, 1]} : vector<32x128xf32> to vector<2x128xf32>
    %83 = tpu.concatenate %67, %68, %69, %70, %71, %72, %73, %74, %75, %76, %77, %78, %79, %80, %81, %82 in 1 : vector<2x128xf32>, vector<2x128xf32>, vector<2x128xf32>, vector<2x128xf32>, vector<2x128xf32>, vector<2x128xf32>, vector<2x128xf32>, vector<2x128xf32>, vector<2x128xf32>, vector<2x128xf32>, vector<2x128xf32>, vector<2x128xf32>, vector<2x128xf32>, vector<2x128xf32>, vector<2x128xf32>, vector<2x128xf32> -> vector<2x2048xf32>
    %c0_21 = arith.constant 0 : index
    %c0_22 = arith.constant 0 : index
    %84 = vector.load %arg5[%c0_21, %c0_22] : memref<2048x512xf32, #tpu.memory_space<vmem>>, vector<2048x512xf32>
    %cst_23 = arith.constant dense<0.000000e+00> : vector<2x512xf32>
    %85 = tpu.matmul %83, %84, %cst_23 {dimension_numbers = #tpu.dot_dimension_numbers<[1], [0], [0], [1], [0, 0, 1, 1], [], []>} : vector<2x2048xf32>, vector<2048x512xf32>, vector<2x512xf32> -> vector<2x512xf32>
    %cst_24 = arith.constant dense<0.000000e+00> : vector<512xf32>
    %86 = vector.multi_reduction <add>, %85, %cst_24 [0] : vector<2x512xf32> to vector<512xf32>
    %87 = vector.shape_cast %86 : vector<512xf32> to vector<1x512xf32>
    %88 = arith.mulf %85, %85 : vector<2x512xf32>
    %cst_25 = arith.constant dense<0.000000e+00> : vector<512xf32>
    %89 = vector.multi_reduction <add>, %88, %cst_25 [0] : vector<2x512xf32> to vector<512xf32>
    %90 = vector.shape_cast %89 : vector<512xf32> to vector<1x512xf32>
    %cst_26 = arith.constant 5.000000e-01 : f32
    %91 = vector.broadcast %cst_26 : f32 to vector<1x512xf32>
    %92 = arith.mulf %87, %91 : vector<1x512xf32>
    %cst_27 = arith.constant 5.000000e-01 : f32
    %93 = vector.broadcast %cst_27 : f32 to vector<1x512xf32>
    %94 = arith.mulf %90, %93 : vector<1x512xf32>
    %95 = arith.mulf %92, %92 : vector<1x512xf32>
    %96 = arith.subf %94, %95 : vector<1x512xf32>
    %cst_28 = arith.constant 0.000000e+00 : f32
    %97 = vector.broadcast %cst_28 : f32 to vector<1x512xf32>
    %98 = arith.maximumf %96, %97 : vector<1x512xf32>
    %99 = vector.broadcast %92 : vector<1x512xf32> to vector<2x512xf32>
    %100 = arith.subf %85, %99 : vector<2x512xf32>
    %cst_29 = arith.constant 9.99999974E-6 : f32
    %101 = vector.broadcast %cst_29 : f32 to vector<1x512xf32>
    %102 = arith.addf %98, %101 : vector<1x512xf32>
    %103 = math.rsqrt %102 : vector<1x512xf32>
    %104 = vector.broadcast %103 : vector<1x512xf32> to vector<2x512xf32>
    %105 = arith.mulf %100, %104 : vector<2x512xf32>
    %cst_30 = arith.constant 0.000000e+00 : f32
    %106 = vector.broadcast %cst_30 : f32 to vector<2x512xf32>
    %107 = arith.maximumf %105, %106 : vector<2x512xf32>
    %c0_31 = arith.constant 0 : index
    %c0_32 = arith.constant 0 : index
    %108 = vector.load %arg6[%c0_31, %c0_32] : memref<512x128xf32, #tpu.memory_space<vmem>>, vector<512x128xf32>
    %cst_33 = arith.constant dense<0.000000e+00> : vector<2x128xf32>
    %109 = tpu.matmul %107, %108, %cst_33 {dimension_numbers = #tpu.dot_dimension_numbers<[1], [0], [0], [1], [0, 0, 1, 1], [], []>} : vector<2x512xf32>, vector<512x128xf32>, vector<2x128xf32> -> vector<2x128xf32>
    %c0_34 = arith.constant 0 : index
    %c0_35 = arith.constant 0 : index
    %110 = vector.load %arg7[%c0_34, %c0_35] : memref<2x128xf32, #tpu.memory_space<vmem>>, vector<2x128xf32>
    tpu.vector_store %arg7[%c0_34, %c0_35], %109 {strides = array<i32>} : memref<2x128xf32, #tpu.memory_space<vmem>>, vector<2x128xf32>,
    return
  }
  func.func @transform_0(%arg0: i32) -> (i32, i32) {
    %c0_i32 = arith.constant 0 : i32
    %c0_i32_0 = arith.constant 0 : i32
    %c0_i32_1 = arith.constant 0 : i32
    return %c0_i32, %c0_i32_0 : i32, i32
  }
  func.func @transform_1(%arg0: i32) -> (i32, i32) {
    %c0_i32 = arith.constant 0 : i32
    %c0_i32_0 = arith.constant 0 : i32
    %c0_i32_1 = arith.constant 0 : i32
    return %c0_i32, %c0_i32_0 : i32, i32
  }
  func.func @transform_2(%arg0: i32) -> (i32, i32) {
    %c0_i32 = arith.constant 0 : i32
    %c0_i32_0 = arith.constant 0 : i32
    %c0_i32_1 = arith.constant 0 : i32
    return %c0_i32, %c0_i32_0 : i32, i32
  }
  func.func @transform_3(%arg0: i32) -> (i32, i32) {
    %c0_i32 = arith.constant 0 : i32
    %c0_i32_0 = arith.constant 0 : i32
    %c0_i32_1 = arith.constant 0 : i32
    return %c0_i32, %c0_i32_0 : i32, i32
  }
  func.func @transform_4(%arg0: i32) -> (i32, i32) {
    %c0_i32 = arith.constant 0 : i32
    %c0_i32_0 = arith.constant 0 : i32
    %c0_i32_1 = arith.constant 0 : i32
    return %c0_i32, %c0_i32_0 : i32, i32
  }
  func.func @transform_5(%arg0: i32) -> (i32, i32) {
    %c0_i32 = arith.constant 0 : i32
    %c0_i32_0 = arith.constant 0 : i32
    %c0_i32_1 = arith.constant 0 : i32
    return %c0_i32, %c0_i32_0 : i32, i32
  }
  func.func @transform_6(%arg0: i32) -> (i32, i32) {
    %c0_i32 = arith.constant 0 : i32
    %c0_i32_0 = arith.constant 0 : i32
    %c0_i32_1 = arith.constant 0 : i32
    return %c0_i32, %c0_i32_0 : i32, i32
  }
}

</mosaic_0001>

<bundles_post_ra>
// kernel: lenet5_forward.1
= control target key start
LH: loop header
LB: loop body
LE: loop exit
PB: predicated region body
PF: predicated region fallthrough
CT: control target
= control target key end

     0   :  { %vm286_vm0 = vcmask 1043456   ;;  %s8761_s0 = inlined_call_operand.vmem [shape: f32[512,36], index: 0, kind: input, shape index: {}]   ;;  %s8762_s1 = inlined_call_operand.vmem [shape: f32[36,128], index: 1, kind: input, shape index: {}]   ;;  %s8763_s2 = inlined_call_operand.vmem [shape: f32[1,128], index: 2, kind: input, shape index: {}]   ;;  %s8764_s3 = inlined_call_operand.vmem [shape: f32[1,128], index: 3, kind: input, shape index: {}]   ;;  %s8765_s4 = inlined_call_operand.vmem [shape: f32[2048,512], index: 4, kind: input, shape index: {}]   ;;  %s8766_s5 = inlined_call_operand.vmem [shape: f32[512,128], index: 5, kind: input, shape index: {}]   ;;  %s8767_s6 = inlined_call_operand.hbm [shape: f32[2,128], index: 6, kind: output, shape index: {}]  }
   0x1   :  { %v92_v0 = vld [vmem:[%s8762_s1 + $0x20] sm:$0xf]  ;;  %v91_v1 = vld [vmem:[%s8762_s1 + $0x18] sm:$0xff]  ;;  %v90_v2 = vld [vmem:[%s8762_s1 + $0x10] sm:$0xff] }
   0x2   :  { %3761 = vmatpush.msk.msra.mxu0 %vm286_vm0, %v92_v0  ;;  %v89_v3 = vld [vmem:[%s8762_s1 + $0x8] sm:$0xff] }
   0x4   :  { %302 = vmatpush.msra.mxu0 %v91_v1 }
   0x5   :  { %11 = vsyncpa [#allocation3], 0  ;;  %v88_v4 = vld [vmem:[%s8762_s1] sm:$0xff]  ;;  %vm93_vm1 = vcmask 293888   ;;  %v25_v6 = vld [vmem:[%s8761_s0 + $0x8] sm:$0xff]  ;;  %vm3463_vm8 = vcmask 1041408  }
   0x6   :  { %303 = vmatpush.msra.mxu0 %v90_v2  ;;  %v24_v5 = vld [vmem:[%s8761_s0] sm:$0xff]  ;;  %v26_v7 = vld [vmem:[%s8761_s0 + $0x10] sm:$0xff]  ;;  %v27_v8 = vld [vmem:[%s8761_s0 + $0x18] sm:$0xff]  ;;  %s3752_s21 = sshll.u32 %s8767_s6, 4  ;;  %s3753_s21 = int_to_ptr.hbm [resolvable:$true] %s3752_s21 }
   0x7   :  { %v28_v9 = vld [vmem:[%s8761_s0 + $0x20] sm:$0xff]  ;;  %v29_v10 = vld [vmem:[%s8761_s0 + $0x28] sm:$0xff]  ;;  %v30_v11 = vld [vmem:[%s8761_s0 + $0x30] sm:$0xff] }
   0x8   :  { %304 = vmatpush.msra.mxu0 %v89_v3  ;;  %v31_v12 = vld [vmem:[%s8761_s0 + $0x38] sm:$0xff]  ;;  %v32_v13 = vld [vmem:[%s8761_s0 + $0x40] sm:$0xff]  ;;  %v33_v14 = vld [vmem:[%s8761_s0 + $0x48] sm:$0xff] }
   0x9   :  { %v34_v15 = vld [vmem:[%s8761_s0 + $0x50] sm:$0xff]  ;;  %v35_v16 = vld [vmem:[%s8761_s0 + $0x58] sm:$0xff]  ;;  %v36_v17 = vld [vmem:[%s8761_s0 + $0x60] sm:$0xff] }
   0xa   :  { %305 = vmatpush.msra.mxu0 %v88_v4  ;;  %v37_v18 = vld [vmem:[%s8761_s0 + $0x68] sm:$0xff]  ;;  %v38_v19 = vld [vmem:[%s8761_s0 + $0x70] sm:$0xff]  ;;  %v39_v20 = vld [vmem:[%s8761_s0 + $0x78] sm:$0xff] }
   0xb   :  { %3762 = vmatmul.msk.f32.vlgmr.msra.gmra.mxu0 %vm93_vm1, %v24_v5  ;;  %v40_v22 = vld [vmem:[%s8761_s0 + $0x80] sm:$0xff]  ;;  %v41_v24 = vld [vmem:[%s8761_s0 + $0x88] sm:$0xff]  ;;  %v42_v26 = vld [vmem:[%s8761_s0 + $0x90] sm:$0xff] }
   0xc   :  { %v43_v28 = vld [vmem:[%s8761_s0 + $0x98] sm:$0xff]  ;;  %v44_v30 = vld [vmem:[%s8761_s0 + $0xa0] sm:$0xff]  ;;  %v45_v32 = vld [vmem:[%s8761_s0 + $0xa8] sm:$0xff] }
   0xd   :  { %v46_v34 = vld [vmem:[%s8761_s0 + $0xb0] sm:$0xff]  ;;  %v47_v36 = vld [vmem:[%s8761_s0 + $0xb8] sm:$0xff]  ;;  %v48_v38 = vld [vmem:[%s8761_s0 + $0xc0] sm:$0xff] }
   0xe   :  { %v49_v40 = vld [vmem:[%s8761_s0 + $0xc8] sm:$0xff]  ;;  %v50_v42 = vld [vmem:[%s8761_s0 + $0xd0] sm:$0xff]  ;;  %v51_v44 = vld [vmem:[%s8761_s0 + $0xd8] sm:$0xff] }
   0xf   :  { %v52_v46 = vld [vmem:[%s8761_s0 + $0xe0] sm:$0xff]  ;;  %v53_v48 = vld [vmem:[%s8761_s0 + $0xe8] sm:$0xff]  ;;  %v54_v50 = vld [vmem:[%s8761_s0 + $0xf0] sm:$0xff] }
  0x10   :  { %v55_v52 = vld [vmem:[%s8761_s0 + $0xf8] sm:$0xff]  ;;  %v56_v54 = vld [vmem:[%s8761_s0 + $0x100] sm:$0xff]  ;;  %v57_v56 = vld [vmem:[%s8761_s0 + $0x108] sm:$0xff] }
  0x11   :  { %v58_v58 = vld [vmem:[%s8761_s0 + $0x110] sm:$0xff]  ;;  %v59_v60 = vld [vmem:[%s8761_s0 + $0x118] sm:$0xff]  ;;  %v60_v62 = vld [vmem:[%s8761_s0 + $0x120] sm:$0xff] }
  0x12   :  { %v61_v0 = vld [vmem:[%s8761_s0 + $0x128] sm:$0xff]  ;;  %v62_v2 = vld [vmem:[%s8761_s0 + $0x130] sm:$0xff]  ;;  %v63_v4 = vld [vmem:[%s8761_s0 + $0x138] sm:$0xff] }
  0x13   :  { %3763 = vmatmul.msk.f32.gmra.mxu0 %vm93_vm1, %v25_v6  ;;  %v64_v6 = vld [vmem:[%s8761_s0 + $0x140] sm:$0xff] }
  0x1b   :  { %3764 = vmatmul.msk.f32.gmra.mxu0 %vm93_vm1, %v26_v7 }
  0x23   :  { %3765 = vmatmul.msk.f32.gmra.mxu0 %vm93_vm1, %v27_v8  ;;  %v65_v8 = vld [vmem:[%s8761_s0 + $0x148] sm:$0xff] }
  0x2b   :  { %3766 = vmatmul.msk.f32.gmra.mxu0 %vm93_vm1, %v28_v9 }
  0x33   :  { %3767 = vmatmul.msk.f32.gmra.mxu0 %vm93_vm1, %v29_v10  ;;  %v66_v10 = vld [vmem:[%s8761_s0 + $0x150] sm:$0xff] }
  0x3b   :  { %3768 = vmatmul.msk.f32.gmra.mxu0 %vm93_vm1, %v30_v11 }
  0x43   :  { %3769 = vmatmul.msk.f32.gmra.mxu0 %vm93_vm1, %v31_v12  ;;  %v67_v12 = vld [vmem:[%s8761_s0 + $0x158] sm:$0xff] }
  0x4b   :  { %3770 = vmatmul.msk.f32.gmra.mxu0 %vm93_vm1, %v32_v13 }
  0x53   :  { %3771 = vmatmul.msk.f32.gmra.mxu0 %vm93_vm1, %v33_v14  ;;  %v68_v14 = vld [vmem:[%s8761_s0 + $0x160] sm:$0xff] }
  0x5b   :  { %3772 = vmatmul.msk.f32.gmra.mxu0 %vm93_vm1, %v34_v15 }
  0x63   :  { %3773 = vmatmul.msk.f32.gmra.mxu0 %vm93_vm1, %v35_v16  ;;  %v69_v16 = vld [vmem:[%s8761_s0 + $0x168] sm:$0xff] }
  0x6b   :  { %3774 = vmatmul.msk.f32.gmra.mxu0 %vm93_vm1, %v36_v17 }
  0x73   :  { %3775 = vmatmul.msk.f32.gmra.mxu0 %vm93_vm1, %v37_v18  ;;  %v70_v18 = vld [vmem:[%s8761_s0 + $0x170] sm:$0xff] }
  0x7b   :  { %3776 = vmatmul.msk.f32.gmra.mxu0 %vm93_vm1, %v38_v19 }
  0x83   :  { %3777 = vmatmul.msk.f32.gmra.mxu0 %vm93_vm1, %v39_v20  ;;  %v71_v20 = vld [vmem:[%s8761_s0 + $0x178] sm:$0xff] }
  0x88   :  { %v3982_v21 = vpop.f32.mrf.mxu0 }
  0x8b   :  { %3778 = vmatmul.msk.f32.gmra.mxu0 %vm93_vm1, %v40_v22 }
  0x90   :  { %v3988_v23 = vpop.f32.mrf.mxu0 }
  0x93   :  { %3779 = vmatmul.msk.f32.gmra.mxu0 %vm93_vm1, %v41_v24  ;;  %v72_v24 = vld [vmem:[%s8761_s0 + $0x180] sm:$0xff] }
  0x98   :  { %v3994_v25 = vpop.f32.mrf.mxu0 }
  0x9b   :  { %3780 = vmatmul.msk.f32.gmra.mxu0 %vm93_vm1, %v42_v26 }
  0xa0   :  { %v4000_v27 = vpop.f32.mrf.mxu0 }
  0xa3   :  { %3781 = vmatmul.msk.f32.gmra.mxu0 %vm93_vm1, %v43_v28  ;;  %v73_v28 = vld [vmem:[%s8761_s0 + $0x188] sm:$0xff] }
  0xa8   :  { %v4006_v29 = vpop.f32.mrf.mxu0 }
  0xab   :  { %3782 = vmatmul.msk.f32.gmra.mxu0 %vm93_vm1, %v44_v30 }
  0xb0   :  { %v4012_v31 = vpop.f32.mrf.mxu0 }
  0xb3   :  { %3783 = vmatmul.msk.f32.gmra.mxu0 %vm93_vm1, %v45_v32  ;;  %v74_v32 = vld [vmem:[%s8761_s0 + $0x190] sm:$0xff] }
  0xb8   :  { %v4018_v33 = vpop.f32.mrf.mxu0 }
  0xbb   :  { %3784 = vmatmul.msk.f32.gmra.mxu0 %vm93_vm1, %v46_v34 }
  0xc0   :  { %v4024_v35 = vpop.f32.mrf.mxu0 }
  0xc3   :  { %3785 = vmatmul.msk.f32.gmra.mxu0 %vm93_vm1, %v47_v36  ;;  %v75_v36 = vld [vmem:[%s8761_s0 + $0x198] sm:$0xff] }
  0xc8   :  { %v4030_v37 = vpop.f32.mrf.mxu0 }
  0xcb   :  { %3786 = vmatmul.msk.f32.gmra.mxu0 %vm93_vm1, %v48_v38 }
  0xd0   :  { %v4036_v39 = vpop.f32.mrf.mxu0 }
  0xd3   :  { %3787 = vmatmul.msk.f32.gmra.mxu0 %vm93_vm1, %v49_v40  ;;  %v76_v40 = vld [vmem:[%s8761_s0 + $0x1a0] sm:$0xff] }
  0xd8   :  { %v4042_v41 = vpop.f32.mrf.mxu0 }
  0xd9   :  { %8816 = vst [vmem:[#allocation5_spill] sm:$0xff] %v4042_v41 }
  0xdb   :  { %3788 = vmatmul.msk.f32.gmra.mxu0 %vm93_vm1, %v50_v42 }
  0xe0   :  { %v4048_v43 = vpop.f32.mrf.mxu0 }
  0xe3   :  { %3789 = vmatmul.msk.f32.gmra.mxu0 %vm93_vm1, %v51_v44  ;;  %v77_v44 = vld [vmem:[%s8761_s0 + $0x1a8] sm:$0xff] }
  0xe8   :  { %v4054_v45 = vpop.f32.mrf.mxu0 }
  0xeb   :  { %3790 = vmatmul.msk.f32.gmra.mxu0 %vm93_vm1, %v52_v46 }
  0xf0   :  { %v4060_v47 = vpop.f32.mrf.mxu0 }
  0xf3   :  { %3791 = vmatmul.msk.f32.gmra.mxu0 %vm93_vm1, %v53_v48  ;;  %v78_v48 = vld [vmem:[%s8761_s0 + $0x1b0] sm:$0xff] }
  0xf8   :  { %v4066_v49 = vpop.f32.mrf.mxu0 }
  0xf9   :  { %8817 = vst [vmem:[#allocation6_spill] sm:$0xff] %v4066_v49 }
  0xfb   :  { %3792 = vmatmul.msk.f32.gmra.mxu0 %vm93_vm1, %v54_v50 }
 0x100   :  { %v4072_v51 = vpop.f32.mrf.mxu0 }
 0x103   :  { %3793 = vmatmul.msk.f32.gmra.mxu0 %vm93_vm1, %v55_v52  ;;  %v79_v52 = vld [vmem:[%s8761_s0 + $0x1b8] sm:$0xff] }
 0x108   :  { %v4078_v53 = vpop.f32.mrf.mxu0 }
 0x10b   :  { %3794 = vmatmul.msk.f32.gmra.mxu0 %vm93_vm1, %v56_v54 }
 0x110   :  { %v4084_v55 = vpop.f32.mrf.mxu0 }
 0x113   :  { %3795 = vmatmul.msk.f32.gmra.mxu0 %vm93_vm1, %v57_v56  ;;  %v80_v56 = vld [vmem:[%s8761_s0 + $0x1c0] sm:$0xff] }
 0x118   :  { %v4090_v57 = vpop.f32.mrf.mxu0 }
 0x119   :  { %8818 = vst [vmem:[#allocation7_spill] sm:$0xff] %v4090_v57 }
 0x11b   :  { %3796 = vmatmul.msk.f32.gmra.mxu0 %vm93_vm1, %v58_v58 }
 0x120   :  { %v4096_v59 = vpop.f32.mrf.mxu0 }
 0x123   :  { %3797 = vmatmul.msk.f32.gmra.mxu0 %vm93_vm1, %v59_v60  ;;  %v81_v60 = vld [vmem:[%s8761_s0 + $0x1c8] sm:$0xff] }
 0x128   :  { %v4102_v61 = vpop.f32.mrf.mxu0 }
 0x12b   :  { %3798 = vmatmul.msk.f32.gmra.mxu0 %vm93_vm1, %v60_v62 }
 0x130   :  { %v4108_v63 = vpop.f32.mrf.mxu0 }
 0x133   :  { %3799 = vmatmul.msk.f32.gmra.mxu0 %vm93_vm1, %v61_v0  ;;  %v82_v0 = vld [vmem:[%s8761_s0 + $0x1d0] sm:$0xff] }
 0x138   :  { %v4114_v1 = vpop.f32.mrf.mxu0 }
 0x139   :  { %8819 = vst [vmem:[#allocation8_spill] sm:$0xff] %v4114_v1 }
 0x13b   :  { %3800 = vmatmul.msk.f32.gmra.mxu0 %vm93_vm1, %v62_v2 }
 0x140   :  { %v4120_v3 = vpop.f32.mrf.mxu0 }
 0x143   :  { %3801 = vmatmul.msk.f32.gmra.mxu0 %vm93_vm1, %v63_v4  ;;  %v83_v4 = vld [vmem:[%s8761_s0 + $0x1d8] sm:$0xff] }
 0x148   :  { %v4126_v5 = vpop.f32.mrf.mxu0 }
 0x14b   :  { %3802 = vmatmul.msk.f32.gmra.mxu0 %vm93_vm1, %v64_v6 }
 0x150   :  { %v4132_v7 = vpop.f32.mrf.mxu0 }
 0x153   :  { %3803 = vmatmul.msk.f32.gmra.mxu0 %vm93_vm1, %v65_v8  ;;  %v84_v8 = vld [vmem:[%s8761_s0 + $0x1e0] sm:$0xff] }
 0x158   :  { %v4138_v9 = vpop.f32.mrf.mxu0 }
 0x159   :  { %8820 = vst [vmem:[#allocation9_spill] sm:$0xff] %v4138_v9 }
 0x15b   :  { %3804 = vmatmul.msk.f32.gmra.mxu0 %vm93_vm1, %v66_v10 }
 0x160   :  { %v4144_v11 = vpop.f32.mrf.mxu0 }
 0x163   :  { %3805 = vmatmul.msk.f32.gmra.mxu0 %vm93_vm1, %v67_v12  ;;  %v85_v12 = vld [vmem:[%s8761_s0 + $0x1e8] sm:$0xff] }
 0x168   :  { %v4150_v13 = vpop.f32.mrf.mxu0 }
 0x16b   :  { %3806 = vmatmul.msk.f32.gmra.mxu0 %vm93_vm1, %v68_v14 }
 0x170   :  { %v4156_v15 = vpop.f32.mrf.mxu0 }
 0x173   :  { %3807 = vmatmul.msk.f32.gmra.mxu0 %vm93_vm1, %v69_v16  ;;  %v86_v16 = vld [vmem:[%s8761_s0 + $0x1f0] sm:$0xff] }
 0x178   :  { %v4162_v17 = vpop.f32.mrf.mxu0 }
 0x179   :  { %8821 = vst [vmem:[#allocation10_spill] sm:$0xff] %v4162_v17 }
 0x17b   :  { %3808 = vmatmul.msk.f32.gmra.mxu0 %vm93_vm1, %v70_v18 }
 0x180   :  { %v4168_v19 = vpop.f32.mrf.mxu0 }
 0x183   :  { %3809 = vmatmul.msk.f32.gmra.mxu0 %vm93_vm1, %v71_v20  ;;  %v87_v20 = vld [vmem:[%s8761_s0 + $0x1f8] sm:$0xff] }
 0x188   :  { %v4174_v22 = vpop.f32.mrf.mxu0 }
 0x18b   :  { %3810 = vmatmul.msk.f32.gmra.mxu0 %vm93_vm1, %v72_v24  ;;  %v569_v24 = vmul.f32 %v3988_v23, %v3988_v23 }
 0x190   :  { %v4180_v26 = vpop.f32.mrf.mxu0 }
 0x193   :  { %3811 = vmatmul.msk.f32.gmra.mxu0 %vm93_vm1, %v73_v28  ;;  %v568_v28 = vmul.f32 %v3982_v21, %v3982_v21 }
 0x198   :  { %v4186_v30 = vpop.f32.mrf.mxu0 }
 0x199   :  { %8822 = vst [vmem:[#allocation11_spill] sm:$0xff] %v4186_v30 }
 0x19b   :  { %3812 = vmatmul.msk.f32.gmra.mxu0 %vm93_vm1, %v74_v32  ;;  %v499_v32 = vadd.f32 %v3988_v23, %v3982_v21 }
 0x1a0   :  { %v4192_v34 = vpop.f32.mrf.mxu0 }
 0x1a3   :  { %3813 = vmatmul.msk.f32.gmra.mxu0 %vm93_vm1, %v75_v36  ;;  %v570_v36 = vmul.f32 %v3994_v25, %v3994_v25 }
 0x1a8   :  { %v4198_v38 = vpop.f32.mrf.mxu0 }
 0x1ab   :  { %3814 = vmatmul.msk.f32.gmra.mxu0 %vm93_vm1, %v76_v40  ;;  %v632_v40 = vadd.f32 %v569_v24, %v568_v28  ;;  %v574_v24 = vmul.f32 %v4018_v33, %v4018_v33 }
 0x1b0   :  { %v4204_v42 = vpop.f32.mrf.mxu0 }
 0x1b3   :  { %3815 = vmatmul.msk.f32.gmra.mxu0 %vm93_vm1, %v77_v44  ;;  %v500_v44 = vadd.f32 %v499_v32, %v3994_v25 }
 0x1b8   :  { %v4210_v46 = vpop.f32.mrf.mxu0 }
 0x1b9   :  { %8823 = vst [vmem:[#allocation12_spill] sm:$0xff] %v4210_v46 }
 0x1bb   :  { %3816 = vmatmul.msk.f32.gmra.mxu0 %vm93_vm1, %v78_v48  ;;  %v571_v48 = vmul.f32 %v4000_v27, %v4000_v27 }
 0x1c0   :  { %v4216_v50 = vpop.f32.mrf.mxu0 }
 0x1c3   :  { %3817 = vmatmul.msk.f32.gmra.mxu0 %vm93_vm1, %v79_v52 }
 0x1c8   :  { %v4222_v54 = vpop.f32.mrf.mxu0 }
 0x1cb   :  { %3818 = vmatmul.msk.f32.gmra.mxu0 %vm93_vm1, %v80_v56  ;;  %v633_v56 = vadd.f32 %v632_v40, %v570_v36  ;;  %v575_v36 = vmul.f32 %v4024_v35, %v4024_v35 }
 0x1d0   :  { %v4228_v58 = vpop.f32.mrf.mxu0 }
 0x1d3   :  { %3819 = vmatmul.msk.f32.gmra.mxu0 %vm93_vm1, %v81_v60  ;;  %v501_v60 = vadd.f32 %v500_v44, %v4000_v27 }
 0x1d8   :  { %v4234_v62 = vpop.f32.mrf.mxu0 }
 0x1d9   :  { %8824 = vst [vmem:[#allocation13_spill] sm:$0xff] %v4234_v62 }
 0x1db   :  { %3820 = vmatmul.msk.f32.gmra.mxu0 %vm93_vm1, %v82_v0  ;;  %v572_v0 = vmul.f32 %v4006_v29, %v4006_v29 }
 0x1e0   :  { %v4240_v2 = vpop.f32.mrf.mxu0 }
 0x1e3   :  { %3821 = vmatmul.msk.f32.gmra.mxu0 %vm93_vm1, %v83_v4  ;;  %v634_v4 = vadd.f32 %v633_v56, %v571_v48  ;;  %v576_v56 = vmul.f32 %v4030_v37, %v4030_v37 }
 0x1e8   :  { %v4246_v6 = vpop.f32.mrf.mxu0 }
 0x1e9   :  { %8825 = vst [vmem:[#allocation14_spill] sm:$0xff] %v4246_v6 }
 0x1eb   :  { %3822 = vmatmul.msk.f32.gmra.mxu0 %vm93_vm1, %v84_v8  ;;  %v502_v8 = vadd.f32 %v501_v60, %v4006_v29 }
 0x1f0   :  { %v4252_v10 = vpop.f32.mrf.mxu0 }
 0x1f3   :  { %3823 = vmatmul.msk.f32.gmra.mxu0 %vm93_vm1, %v85_v12  ;;  %v573_v12 = vmul.f32 %v4012_v31, %v4012_v31 }
 0x1f8   :  { %v4258_v14 = vpop.f32.mrf.mxu0 }
 0x1fb   :  { %3824 = vmatmul.msk.f32.gmra.mxu0 %vm93_vm1, %v86_v16  ;;  %v635_v16 = vadd.f32 %v634_v4, %v572_v0  ;;  %v577_v4 = vmul.f32 %v4036_v39, %v4036_v39 }
 0x1fd   :  { %v636_v28 = vadd.f32 %v635_v16, %v573_v12  ;;  %v578_v16 = vmul.f32 %v4042_v41, %v4042_v41 }
 0x1ff   :  { %v637_v44 = vadd.f32 %v636_v28, %v574_v24  ;;  %v579_v28 = vmul.f32 %v4048_v43, %v4048_v43 }
 0x200   :  { %v4264_v18 = vpop.f32.mrf.mxu0 }
 0x201   :  { %v638_v60 = vadd.f32 %v637_v44, %v575_v36 }
 0x203   :  { %3825 = vmatmul.msk.f32.gmra.mxu0 %vm93_vm1, %v87_v20  ;;  %v503_v20 = vadd.f32 %v502_v8, %v4012_v31  ;;  %v639_v8 = vadd.f32 %v638_v60, %v576_v56 }
 0x205   :  { %v504_v32 = vadd.f32 %v503_v20, %v4018_v33  ;;  %v640_v20 = vadd.f32 %v639_v8, %v577_v4 }
 0x207   :  { %v505_v48 = vadd.f32 %v504_v32, %v4024_v35  ;;  %v641_v36 = vadd.f32 %v640_v20, %v578_v16  ;;  %v583_v20 = vmul.f32 %v4072_v51, %v4072_v51 }
 0x208   :  { %v4281_v52 = vpop.f32.mrf.mxu0 }
 0x209   :  { %8826 = vst [vmem:[#allocation15_spill] sm:$0xff] %v4281_v52  ;;  %v506_v0 = vadd.f32 %v505_v48, %v4030_v37  ;;  %v580_v48 = vmul.f32 %v4054_v45, %v4054_v45  ;;  %v642_v56 = vadd.f32 %v641_v36, %v579_v28 }
 0x20b   :  { %v507_v12 = vadd.f32 %v506_v0, %v4036_v39  ;;  %v581_v0 = vmul.f32 %v4060_v47, %v4060_v47  ;;  %v643_v4 = vadd.f32 %v642_v56, %v580_v48 }
 0x20d   :  { %v508_v24 = vadd.f32 %v507_v12, %v4042_v41  ;;  %v582_v12 = vmul.f32 %v4066_v49, %v4066_v49  ;;  %v644_v41 = vadd.f32 %v643_v4, %v581_v0 }
 0x20f   :  { %v509_v44 = vadd.f32 %v508_v24, %v4048_v43  ;;  %v645_v28 = vadd.f32 %v644_v41, %v582_v12  ;;  %v587_v12 = vmul.f32 %v4096_v59, %v4096_v59 }
 0x210   :  { %v4295_v40 = vpop.f32.mrf.mxu0 }
 0x211   :  { %8827 = vst [vmem:[#allocation16_spill] sm:$0xff] %v4295_v40  ;;  %v510_v60 = vadd.f32 %v509_v44, %v4054_v45  ;;  %v584_v44 = vmul.f32 %v4078_v53, %v4078_v53  ;;  %v646_v48 = vadd.f32 %v645_v28, %v583_v20 }
 0x213   :  { %v511_v8 = vadd.f32 %v510_v60, %v4060_v47  ;;  %v585_v60 = vmul.f32 %v4084_v55, %v4084_v55  ;;  %v647_v0 = vadd.f32 %v646_v48, %v584_v44 }
 0x215   :  { %v512_v16 = vadd.f32 %v511_v8, %v4066_v49  ;;  %v586_v8 = vmul.f32 %v4090_v57, %v4090_v57  ;;  %v648_v49 = vadd.f32 %v647_v0, %v585_v60 }
 0x217   :  { %v513_v36 = vadd.f32 %v512_v16, %v4072_v51  ;;  %v649_v20 = vadd.f32 %v648_v49, %v586_v8  ;;  %v591_v8 = vmul.f32 %v4120_v3, %v4120_v3 }
 0x218   :  { %v4309_v32 = vpop.f32.mrf.mxu0 }
 0x219   :  { %8828 = vst [vmem:[#allocation17_spill] sm:$0xff] %v4309_v32  ;;  %v514_v56 = vadd.f32 %v513_v36, %v4078_v53  ;;  %v588_v36 = vmul.f32 %v4102_v61, %v4102_v61  ;;  %v650_v44 = vadd.f32 %v649_v20, %v587_v12 }
 0x21b   :  { %v515_v4 = vadd.f32 %v514_v56, %v4084_v55  ;;  %v589_v56 = vmul.f32 %v4108_v63, %v4108_v63  ;;  %v651_v60 = vadd.f32 %v650_v44, %v588_v36 }
 0x21d   :  { %v516_v41 = vadd.f32 %v515_v4, %v4090_v57  ;;  %v590_v4 = vmul.f32 %v4114_v1, %v4114_v1  ;;  %v652_v57 = vadd.f32 %v651_v60, %v589_v56 }
 0x21f   :  { %v517_v28 = vadd.f32 %v516_v41, %v4096_v59  ;;  %v653_v12 = vadd.f32 %v652_v57, %v590_v4  ;;  %v595_v4 = vmul.f32 %v4144_v11, %v4144_v11 }
 0x220   :  { %v4323_v24 = vpop.f32.mrf.mxu0 }
 0x221   :  { %8829 = vst [vmem:[#allocation18_spill] sm:$0xff] %v4323_v24  ;;  %v518_v48 = vadd.f32 %v517_v28, %v4102_v61  ;;  %v592_v28 = vmul.f32 %v4126_v5, %v4126_v5  ;;  %v654_v36 = vadd.f32 %v653_v12, %v591_v8 }
 0x223   :  { %v519_v0 = vadd.f32 %v518_v48, %v4108_v63  ;;  %v593_v48 = vmul.f32 %v4132_v7, %v4132_v7  ;;  %v655_v56 = vadd.f32 %v654_v36, %v592_v28 }
 0x225   :  { %v520_v49 = vadd.f32 %v519_v0, %v4114_v1  ;;  %v594_v0 = vmul.f32 %v4138_v9, %v4138_v9  ;;  %v656_v1 = vadd.f32 %v655_v56, %v593_v48 }
 0x227   :  { %v521_v20 = vadd.f32 %v520_v49, %v4120_v3  ;;  %v657_v8 = vadd.f32 %v656_v1, %v594_v0  ;;  %v599_v0 = vmul.f32 %v4168_v19, %v4168_v19 }
 0x228   :  { %v4337_v16 = vpop.f32.mrf.mxu0 }
 0x229   :  { %8830 = vst [vmem:[#allocation19_spill] sm:$0xff] %v4337_v16  ;;  %v522_v44 = vadd.f32 %v521_v20, %v4126_v5  ;;  %v596_v20 = vmul.f32 %v4150_v13, %v4150_v13  ;;  %v658_v28 = vadd.f32 %v657_v8, %v595_v4 }
 0x22b   :  { %v523_v60 = vadd.f32 %v522_v44, %v4132_v7  ;;  %v597_v44 = vmul.f32 %v4156_v15, %v4156_v15  ;;  %v659_v48 = vadd.f32 %v658_v28, %v596_v20 }
 0x22d   :  { %v524_v57 = vadd.f32 %v523_v60, %v4138_v9  ;;  %v598_v60 = vmul.f32 %v4162_v17, %v4162_v17  ;;  %v660_v9 = vadd.f32 %v659_v48, %v597_v44 }
 0x22f   :  { %v525_v12 = vadd.f32 %v524_v57, %v4144_v11  ;;  %v661_v4 = vadd.f32 %v660_v9, %v598_v60  ;;  %v603_v60 = vmul.f32 %v4192_v34, %v4192_v34 }
 0x230   :  { %v4351_v41 = vpop.f32.mrf.mxu0 }
 0x231   :  { %8831 = vst [vmem:[#allocation20_spill] sm:$0xff] %v4351_v41  ;;  %v526_v36 = vadd.f32 %v525_v12, %v4150_v13  ;;  %v600_v12 = vmul.f32 %v4174_v22, %v4174_v22  ;;  %v662_v20 = vadd.f32 %v661_v4, %v599_v0 }
 0x233   :  { %v527_v56 = vadd.f32 %v526_v36, %v4156_v15  ;;  %v601_v36 = vmul.f32 %v4180_v26, %v4180_v26  ;;  %v663_v44 = vadd.f32 %v662_v20, %v600_v12 }
 0x235   :  { %v528_v1 = vadd.f32 %v527_v56, %v4162_v17  ;;  %v602_v56 = vmul.f32 %v4186_v30, %v4186_v30  ;;  %v664_v17 = vadd.f32 %v663_v44, %v601_v36 }
 0x237   :  { %v529_v8 = vadd.f32 %v528_v1, %v4168_v19  ;;  %v665_v0 = vadd.f32 %v664_v17, %v602_v56  ;;  %v607_v56 = vmul.f32 %v4216_v50, %v4216_v50 }
 0x238   :  { %v4365_v49 = vpop.f32.mrf.mxu0 }
 0x239   :  { %8832 = vst [vmem:[#allocation21_spill] sm:$0xff] %v4365_v49  ;;  %v530_v28 = vadd.f32 %v529_v8, %v4174_v22  ;;  %v604_v8 = vmul.f32 %v4198_v38, %v4198_v38  ;;  %v666_v12 = vadd.f32 %v665_v0, %v603_v60 }
 0x23b   :  { %v531_v48 = vadd.f32 %v530_v28, %v4180_v26  ;;  %v605_v28 = vmul.f32 %v4204_v42, %v4204_v42  ;;  %v667_v36 = vadd.f32 %v666_v12, %v604_v8 }
 0x23d   :  { %v532_v9 = vadd.f32 %v531_v48, %v4186_v30  ;;  %v606_v48 = vmul.f32 %v4210_v46, %v4210_v46  ;;  %v668_v30 = vadd.f32 %v667_v36, %v605_v28 }
 0x23f   :  { %v533_v4 = vadd.f32 %v532_v9, %v4192_v34  ;;  %v669_v60 = vadd.f32 %v668_v30, %v606_v48  ;;  %v611_v48 = vmul.f32 %v4240_v2, %v4240_v2 }
 0x240   :  { %v4379_v57 = vpop.f32.mrf.mxu0 }
 0x241   :  { %8833 = vst [vmem:[#allocation22_spill] sm:$0xff] %v4379_v57  ;;  %v534_v20 = vadd.f32 %v533_v4, %v4198_v38  ;;  %v608_v4 = vmul.f32 %v4222_v54, %v4222_v54  ;;  %v670_v8 = vadd.f32 %v669_v60, %v607_v56 }
 0x243   :  { %v535_v44 = vadd.f32 %v534_v20, %v4204_v42  ;;  %v609_v20 = vmul.f32 %v4228_v58, %v4228_v58  ;;  %v671_v28 = vadd.f32 %v670_v8, %v608_v4 }
 0x245   :  { %v536_v17 = vadd.f32 %v535_v44, %v4210_v46  ;;  %v610_v44 = vmul.f32 %v4234_v62, %v4234_v62  ;;  %v672_v46 = vadd.f32 %v671_v28, %v609_v20 }
 0x247   :  { %v537_v0 = vadd.f32 %v536_v17, %v4216_v50  ;;  %v673_v56 = vadd.f32 %v672_v46, %v610_v44  ;;  %v615_v44 = vmul.f32 %v4264_v18, %v4264_v18 }
 0x248   :  { %v4393_v1 = vpop.f32.mrf.mxu0 }
 0x249   :  { %8834 = vst [vmem:[#allocation23_spill] sm:$0xff] %v4393_v1  ;;  %v538_v12 = vadd.f32 %v537_v0, %v4222_v54  ;;  %v612_v0 = vmul.f32 %v4246_v6, %v4246_v6  ;;  %v674_v4 = vadd.f32 %v673_v56, %v611_v48 }
 0x24b   :  { %v539_v36 = vadd.f32 %v538_v12, %v4228_v58  ;;  %v613_v12 = vmul.f32 %v4252_v10, %v4252_v10  ;;  %v675_v28 = vadd.f32 %v674_v4, %v612_v0  ;;  %v617_v4 = vmul.f32 %v4295_v40, %v4295_v40 }
 0x24d   :  { %v540_v30 = vadd.f32 %v539_v36, %v4234_v62  ;;  %v614_v36 = vmul.f32 %v4258_v14, %v4258_v14  ;;  %v676_v62 = vadd.f32 %v675_v28, %v613_v12 }
 0x24f   :  { %v541_v60 = vadd.f32 %v540_v30, %v4240_v2  ;;  %v677_v48 = vadd.f32 %v676_v62, %v614_v36  ;;  %v619_v36 = vmul.f32 %v4323_v24, %v4323_v24 }
 0x250   :  { %v4407_v9 = vpop.f32.mrf.mxu0 }
 0x251   :  { %8835 = vst [vmem:[#allocation24_spill] sm:$0xff] %v4407_v9  ;;  %v542_v8 = vadd.f32 %v541_v60, %v4246_v6  ;;  %v616_v60 = vmul.f32 %v4281_v52, %v4281_v52  ;;  %v678_v6 = vadd.f32 %v677_v48, %v615_v44 }
 0x253   :  { %v543_v20 = vadd.f32 %v542_v8, %v4252_v10  ;;  %v679_v8 = vadd.f32 %v678_v6, %v616_v60 }
 0x255   :  { %v544_v46 = vadd.f32 %v543_v20, %v4258_v14  ;;  %v618_v20 = vmul.f32 %v4309_v32, %v4309_v32  ;;  %v680_v28 = vadd.f32 %v679_v8, %v617_v4 }
 0x257   :  { %v545_v56 = vadd.f32 %v544_v46, %v4264_v18  ;;  %v681_v44 = vadd.f32 %v680_v28, %v618_v20  ;;  %v623_v28 = vmul.f32 %v4379_v57, %v4379_v57 }
 0x258   :  { %v4421_v17 = vpop.f32.mrf.mxu0 }
 0x259   :  { %8836 = vst [vmem:[#allocation25_spill] sm:$0xff] %v4421_v17  ;;  %v546_v0 = vadd.f32 %v545_v56, %v4281_v52  ;;  %v620_v56 = vmul.f32 %v4337_v16, %v4337_v16  ;;  %v682_v6 = vadd.f32 %v681_v44, %v619_v36 }
 0x25b   :  { %v547_v12 = vadd.f32 %v546_v0, %v4295_v40  ;;  %v621_v0 = vmul.f32 %v4351_v41, %v4351_v41  ;;  %v683_v4 = vadd.f32 %v682_v6, %v620_v56 }
 0x25d   :  { %v548_v62 = vadd.f32 %v547_v12, %v4309_v32  ;;  %v622_v12 = vmul.f32 %v4365_v49, %v4365_v49  ;;  %v684_v32 = vadd.f32 %v683_v4, %v621_v0 }
 0x25f   :  { %v549_v48 = vadd.f32 %v548_v62, %v4323_v24  ;;  %v685_v36 = vadd.f32 %v684_v32, %v622_v12 }
 0x260   :  { %v4435_v30 = vpop.f32.mrf.mxu0 }
 0x261   :  { %8837 = vst [vmem:[#allocation26_spill] sm:$0xff] %v4435_v30  ;;  %v550_v60 = vadd.f32 %v549_v48, %v4337_v16  ;;  %v624_v48 = vmul.f32 %v4393_v1, %v4393_v1  ;;  %v686_v56 = vadd.f32 %v685_v36, %v623_v28  ;;  %v627_v12 = vmul.f32 %v4435_v30, %v4435_v30 }
 0x263   :  { %v551_v8 = vadd.f32 %v550_v60, %v4351_v41  ;;  %v625_v60 = vmul.f32 %v4407_v9, %v4407_v9  ;;  %v687_v0 = vadd.f32 %v686_v56, %v624_v48 }
 0x265   :  { %v552_v20 = vadd.f32 %v551_v8, %v4365_v49  ;;  %v626_v8 = vmul.f32 %v4421_v17, %v4421_v17  ;;  %v688_v49 = vadd.f32 %v687_v0, %v625_v60 }
 0x267   :  { %v553_v44 = vadd.f32 %v552_v20, %v4379_v57  ;;  %v689_v28 = vadd.f32 %v688_v49, %v626_v8 }
 0x268   :  { %v4449_v46 = vpop.f32.mrf.mxu0 }
 0x269   :  { %8838 = vst [vmem:[#allocation27_spill] sm:$0xff] %v4449_v46  ;;  %v554_v6 = vadd.f32 %v553_v44, %v4393_v1  ;;  %v628_v44 = vmul.f32 %v4449_v46, %v4449_v46  ;;  %v690_v48 = vadd.f32 %v689_v28, %v627_v12 }
 0x26b   :  { %v555_v4 = vadd.f32 %v554_v6, %v4407_v9  ;;  %v691_v60 = vadd.f32 %v690_v48, %v628_v44 }
 0x26d   :  { %v556_v32 = vadd.f32 %v555_v4, %v4421_v17 }
 0x26f   :  { %v557_v36 = vadd.f32 %v556_v32, %v4435_v30 }
 0x270   :  { %v4463_v62 = vpop.f32.mrf.mxu0 }
 0x271   :  { %8839 = vst [vmem:[#allocation28_spill] sm:$0xff] %v4463_v62  ;;  %v558_v56 = vadd.f32 %v557_v36, %v4449_v46  ;;  %v629_v6 = vmul.f32 %v4463_v62, %v4463_v62 }
 0x273   :  { %v559_v0 = vadd.f32 %v558_v56, %v4463_v62  ;;  %v692_v17 = vadd.f32 %v691_v60, %v629_v6 }
 0x278   :  { %v4477_v20 = vpop.f32.mrf.mxu0  ;;  %v8860_v52 = vld [vmem:[#allocation28_spill] sm:$0xff] }
 0x279   :  { %8840 = vst [vmem:[#allocation29_spill] sm:$0xff] %v4477_v20  ;;  %v630_v4 = vmul.f32 %v4477_v20, %v4477_v20  ;;  %v560_v49 = vadd.f32 %v559_v0, %v4477_v20 }
 0x27b   :  { %v693_v32 = vadd.f32 %v692_v17, %v630_v4 }
 0x280   :  { %v4489_v8 = vpop.f32.mrf.mxu0  ;;  %v8861_v40 = vld [vmem:[#allocation29_spill] sm:$0xff] }
 0x281   :  { %8841 = vst [vmem:[#allocation30_spill] sm:$0xff] %v4489_v8  ;;  %v561_v30 = vadd.f32 %v560_v49, %v4489_v8  ;;  %v631_v12 = vmul.f32 %v4489_v8, %v4489_v8 }
 0x283   :  { %v562_v28 = vrot.slane %v561_v30, 4  ;;  %v694_v36 = vadd.f32 %v693_v32, %v631_v12 }
 0x285   :  { %v563_v46 = vadd.f32 %v562_v28, %v561_v30  ;;  %v695_v44 = vrot.slane %v694_v36, 4 }
 0x287   :  { %v564_v48 = vrot.slane %v563_v46, 2  ;;  %v696_v56 = vadd.f32 %v695_v44, %v694_v36  ;;  %v8850_v36 = vld [vmem:[#allocation13_spill] sm:$0xff] }
 0x289   :  { %v565_v62 = vadd.f32 %v564_v48, %v563_v46  ;;  %v697_v9 = vrot.slane %v696_v56, 2  ;;  %v8845_v48 = vld [vmem:[#allocation8_spill] sm:$0xff] }
 0x28b   :  { %v566_v1 = vrot.slane %v565_v62, 1  ;;  %v698_v6 = vadd.f32 %v697_v9, %v696_v56 }
 0x28d   :  { %v567_v60 = vadd.f32 %v566_v1, %v565_v62  ;;  %v699_v0 = vrot.slane %v698_v6, 1  ;;  %v8851_v62 = vld [vmem:[#allocation14_spill] sm:$0xff]  ;;  %v8856_v1 = vld [vmem:[#allocation24_spill] sm:$0xff] }
 0x28f   :  { %v700_v20 = vadd.f32 %v699_v0, %v698_v6  ;;  %v4494_v57 = vmul.f32 0.001953125, %v567_v60  ;;  %v8842_v60 = vld [vmem:[#allocation5_spill] sm:$0xff]  ;;  %v8859_v0 = vld [vmem:[#allocation27_spill] sm:$0xff] }
 0x291   :  { %v702_v17 = vmul.f32 0.001953125, %v700_v20  ;;  %v703_v4 = vmul.f32 %v4494_v57, %v4494_v57  ;;  %v8862_v20 = vld [vmem:[#allocation30_spill] sm:$0xff]  ;;  %v8863_v24 = vsub.f32 %v3982_v21, %v4494_v57  ;;  %v8865_v44 = vsub.f32 %v3994_v25, %v4494_v57 }
 0x293   :  { %v704_v49 = vsub.f32 %v702_v17, %v703_v4  ;;  %v8844_v17 = vld [vmem:[#allocation7_spill] sm:$0xff]  ;;  %v8846_v4 = vld [vmem:[#allocation9_spill] sm:$0xff] }
 0x295   :  { %v705_v8 = vmax.f32 %v704_v49, 0.0  ;;  %v8848_v49 = vld [vmem:[#allocation11_spill] sm:$0xff] }
 0x297   :  { %v770_v32 = vadd.f32 1e-05, %v705_v8 }
 0x299   :  { %3829 = vrsqrt.f32 %v770_v32  ;;  %vm777_vm3 = vweird.f32 %v770_v32 }
 0x29f   :  { %v4498_v30 = vpop.eup %3829 }
 0x2a0   :  { %v772_v46 = vmul.f32 %v4498_v30, %v770_v32  ;;  %vm778_vm2 = vweird.f32 %v4498_v30  ;;  %v8857_v32 = vld [vmem:[#allocation25_spill] sm:$0xff] }
 0x2a1   :  { %vm779_vm4 = vmor %vm777_vm3, %vm778_vm2 }
 0x2a2   :  { %v773_v12 = vmul.f32 %v4498_v30, %v772_v46  ;;  %v8843_v46 = vld [vmem:[#allocation6_spill] sm:$0xff] }
 0x2a4   :  { %v774_v6 = vmul.f32 0.5, %v773_v12  ;;  %v8847_v12 = vld [vmem:[#allocation10_spill] sm:$0xff] }
 0x2a6   :  { %v775_v28 = vsub.f32 1.5, %v774_v6  ;;  %v8849_v6 = vld [vmem:[#allocation12_spill] sm:$0xff] }
 0x2a8   :  { %v776_v56 = vmul.f32 %v4498_v30, %v775_v28  ;;  %v8866_v28 = vsub.f32 %v4000_v27, %v4494_v57 }
 0x2aa   :  { %v4611_v8 = vsel %vm779_vm4, %v4498_v30, %v776_v56  ;;  %v8858_v30 = vld [vmem:[#allocation26_spill] sm:$0xff]  ;;  %v8864_v56 = vsub.f32 %v3988_v23, %v4494_v57 }
 0x2ab   :  { %v4639_v16 = vmul.f32 %v4611_v8, %v8863_v24  ;;  %v4651_v9 = vmul.f32 %v4611_v8, %v8865_v44  ;;  %v4657_v21 = vmul.f32 %v4611_v8, %v8866_v28  ;;  %v8867_v24 = vsub.f32 %v4006_v29, %v4494_v57 }
 0x2ac   :  { %v4645_v41 = vmul.f32 %v4611_v8, %v8864_v56  ;;  %v8868_v56 = vsub.f32 %v4012_v31, %v4494_v57  ;;  %v8869_v44 = vsub.f32 %v4018_v33, %v4494_v57  ;;  %v8870_v28 = vsub.f32 %v4024_v35, %v4494_v57 }
 0x2ad   :  { %v4663_v23 = vmul.f32 %v4611_v8, %v8867_v24  ;;  %v8871_v24 = vsub.f32 %v4030_v37, %v4494_v57 }
 0x2ae   :  { %v4669_v25 = vmul.f32 %v4611_v8, %v8868_v56  ;;  %v4675_v27 = vmul.f32 %v4611_v8, %v8869_v44  ;;  %v4681_v29 = vmul.f32 %v4611_v8, %v8870_v28  ;;  %v8872_v56 = vsub.f32 %v4036_v39, %v4494_v57 }
 0x2af   :  { %v4687_v31 = vmul.f32 %v4611_v8, %v8871_v24  ;;  %v8873_v44 = vsub.f32 %v8842_v60, %v4494_v57  ;;  %v8874_v28 = vsub.f32 %v4048_v43, %v4494_v57  ;;  %v8875_v24 = vsub.f32 %v4054_v45, %v4494_v57 }
 0x2b0   :  { %v4693_v33 = vmul.f32 %v4611_v8, %v8872_v56  ;;  %v8876_v56 = vsub.f32 %v4060_v47, %v4494_v57 }
 0x2b1   :  { %v4699_v35 = vmul.f32 %v4611_v8, %v8873_v44  ;;  %v4705_v37 = vmul.f32 %v4611_v8, %v8874_v28  ;;  %v4711_v39 = vmul.f32 %v4611_v8, %v8875_v24  ;;  %v8877_v44 = vsub.f32 %v8843_v46, %v4494_v57 }
 0x2b2   :  { %v4717_v60 = vmul.f32 %v4611_v8, %v8876_v56  ;;  %v8878_v28 = vsub.f32 %v4072_v51, %v4494_v57  ;;  %v8879_v24 = vsub.f32 %v4078_v53, %v4494_v57  ;;  %v8880_v56 = vsub.f32 %v4084_v55, %v4494_v57 }
 0x2b3   :  { %v4723_v43 = vmul.f32 %v4611_v8, %v8877_v44  ;;  %v8881_v44 = vsub.f32 %v8844_v17, %v4494_v57 }
 0x2b4   :  { %v4729_v45 = vmul.f32 %v4611_v8, %v8878_v28  ;;  %v4735_v47 = vmul.f32 %v4611_v8, %v8879_v24  ;;  %v4741_v46 = vmul.f32 %v4611_v8, %v8880_v56  ;;  %v8882_v28 = vsub.f32 %v4096_v59, %v4494_v57 }
 0x2b5   :  { %v4747_v51 = vmul.f32 %v4611_v8, %v8881_v44  ;;  %v8883_v24 = vsub.f32 %v4102_v61, %v4494_v57  ;;  %v8884_v56 = vsub.f32 %v4108_v63, %v4494_v57  ;;  %v8885_v44 = vsub.f32 %v8845_v48, %v4494_v57 }
 0x2b6   :  { %v4753_v53 = vmul.f32 %v4611_v8, %v8882_v28  ;;  %v8886_v28 = vsub.f32 %v4120_v3, %v4494_v57 }
 0x2b7   :  { %v4759_v55 = vmul.f32 %v4611_v8, %v8883_v24  ;;  %v4765_v17 = vmul.f32 %v4611_v8, %v8884_v56  ;;  %v4771_v59 = vmul.f32 %v4611_v8, %v8885_v44  ;;  %v8887_v24 = vsub.f32 %v4126_v5, %v4494_v57 }
 0x2b8   :  { %v4777_v61 = vmul.f32 %v4611_v8, %v8886_v28  ;;  %v8888_v56 = vsub.f32 %v4132_v7, %v4494_v57  ;;  %v8889_v44 = vsub.f32 %v8846_v4, %v4494_v57  ;;  %v8890_v28 = vsub.f32 %v4144_v11, %v4494_v57 }
 0x2b9   :  { %v4783_v63 = vmul.f32 %v4611_v8, %v8887_v24  ;;  %v8891_v24 = vsub.f32 %v4150_v13, %v4494_v57 }
 0x2ba   :  { %v4789_v48 = vmul.f32 %v4611_v8, %v8888_v56  ;;  %v4795_v3 = vmul.f32 %v4611_v8, %v8889_v44  ;;  %v4801_v5 = vmul.f32 %v4611_v8, %v8890_v28  ;;  %v8892_v56 = vsub.f32 %v4156_v15, %v4494_v57 }
 0x2bb   :  { %v4807_v7 = vmul.f32 %v4611_v8, %v8891_v24  ;;  %v8894_v44 = vsub.f32 %v8847_v12, %v4494_v57  ;;  %v8895_v28 = vsub.f32 %v4168_v19, %v4494_v57  ;;  %v8896_v24 = vsub.f32 %v4174_v22, %v4494_v57 }
 0x2bc   :  { %v4813_v4 = vmul.f32 %v4611_v8, %v8892_v56  ;;  %v8897_v56 = vsub.f32 %v4180_v26, %v4494_v57  ;;  %v8898_v12 = vsub.f32 %v8848_v49, %v4494_v57  ;;  %v8899_v19 = vsub.f32 %v4192_v34, %v4494_v57 }
 0x2bd   :  { %v4819_v11 = vmul.f32 %v4611_v8, %v8894_v44  ;;  %v4825_v13 = vmul.f32 %v4611_v8, %v8895_v28  ;;  %v813_v15 = vmul.f32 %v4611_v8, %v8896_v24  ;;  %v8900_v22 = vsub.f32 %v4198_v38, %v4494_v57 }
 0x2be   :  { %8893 = vst [vmem:[#allocation5_spill] sm:$0xff] %v4813_v4  ;;  %v814_v4 = vmul.f32 %v4611_v8, %v8897_v56  ;;  %v4839_v44 = vmul.f32 %v4611_v8, %v8898_v12  ;;  %v4845_v28 = vmul.f32 %v4611_v8, %v8899_v19  ;;  %v8901_v26 = vsub.f32 %v4204_v42, %v4494_v57 }
 0x2bf   :  { %v4851_v24 = vmul.f32 %v4611_v8, %v8900_v22  ;;  %v8902_v56 = vsub.f32 %v8849_v6, %v4494_v57  ;;  %v8903_v12 = vsub.f32 %v4216_v50, %v4494_v57  ;;  %v8904_v19 = vsub.f32 %v4222_v54, %v4494_v57 }
 0x2c0   :  { %v4857_v49 = vmul.f32 %v4611_v8, %v8901_v26  ;;  %v8906_v22 = vsub.f32 %v4228_v58, %v4494_v57  ;;  %v8908_v26 = vsub.f32 %v8850_v36, %v4494_v57 }
 0x2c1   :  { %v4863_v34 = vmul.f32 %v4611_v8, %v8902_v56  ;;  %v4869_v38 = vmul.f32 %v4611_v8, %v8903_v12  ;;  %v4875_v42 = vmul.f32 %v4611_v8, %v8904_v19  ;;  %v8910_v56 = vsub.f32 %v4240_v2, %v4494_v57 }
 0x2c2   :  { %v4881_v6 = vmul.f32 %v4611_v8, %v8906_v22  ;;  %v4887_v50 = vmul.f32 %v4611_v8, %v8908_v26  ;;  %v8912_v12 = vsub.f32 %v8851_v62, %v4494_v57  ;;  %v8914_v19 = vsub.f32 %v4252_v10, %v4494_v57 }
 0x2c3   :  { %8905 = vst [vmem:[#allocation6_spill] sm:$0xff] %v4875_v42  ;;  %v4893_v54 = vmul.f32 %v4611_v8, %v8910_v56  ;;  %v8916_v22 = vsub.f32 %v4258_v14, %v4494_v57  ;;  %v8918_v26 = vsub.f32 %v4264_v18, %v4494_v57  ;;  %v8920_v56 = vld [vmem:[#allocation15_spill] sm:$0xff]  ;;  %v8924_v14 = vld [vmem:[#allocation17_spill] sm:$0xff]  ;;  %v8926_v18 = vld [vmem:[#allocation18_spill] sm:$0xff] }
 0x2c4   :  { %8907 = vst [vmem:[#allocation7_spill] sm:$0xff] %v4881_v6  ;;  %v4899_v58 = vmul.f32 %v4611_v8, %v8912_v12  ;;  %v4905_v36 = vmul.f32 %v4611_v8, %v8914_v19  ;;  %v8921_v12 = vsub.f32 %v8920_v56, %v4494_v57  ;;  %v8928_v56 = vld [vmem:[#allocation19_spill] sm:$0xff] }
 0x2c5   :  { %8909 = vst [vmem:[#allocation8_spill] sm:$0xff] %v4887_v50  ;;  %v4911_v2 = vmul.f32 %v4611_v8, %v8916_v22  ;;  %v4917_v62 = vmul.f32 %v4611_v8, %v8918_v26  ;;  %v8925_v22 = vsub.f32 %v8924_v14, %v4494_v57  ;;  %v8927_v26 = vsub.f32 %v8926_v18, %v4494_v57 }
 0x2c6   :  { %8911 = vst [vmem:[#allocation9_spill] sm:$0xff] %v4893_v54  ;;  %v829_v10 = vmul.f32 %v4611_v8, %v8921_v12  ;;  %v8929_v12 = vsub.f32 %v8928_v56, %v4494_v57 }
 0x2c7   :  { %8913 = vst [vmem:[#allocation10_spill] sm:$0xff] %v4899_v58  ;;  %v8922_v58 = vld [vmem:[#allocation16_spill] sm:$0xff] }
 0x2c8   :  { %8915 = vst [vmem:[#allocation11_spill] sm:$0xff] %v4905_v36  ;;  %v8923_v19 = vsub.f32 %v8922_v58, %v4494_v57  ;;  %v4943_v54 = vmul.f32 %v4611_v8, %v8929_v12  ;;  %v8930_v58 = vld [vmem:[#allocation20_spill] sm:$0xff]  ;;  %v8936_v12 = vld [vmem:[#allocation23_spill] sm:$0xff] }
 0x2c9   :  { %8917 = vst [vmem:[#allocation12_spill] sm:$0xff] %v4911_v2  ;;  %v4931_v2 = vmul.f32 %v4611_v8, %v8925_v22  ;;  %v8932_v22 = vld [vmem:[#allocation21_spill] sm:$0xff]  ;;  %v8937_v42 = vsub.f32 %v8936_v12, %v4494_v57 }
 0x2ca   :  { %8919 = vst [vmem:[#allocation13_spill] sm:$0xff] %v4917_v62  ;;  %v830_v36 = vmul.f32 %v4611_v8, %v8923_v19  ;;  %v4937_v62 = vmul.f32 %v4611_v8, %v8927_v26  ;;  %v8931_v19 = vsub.f32 %v8930_v58, %v4494_v57  ;;  %v8933_v50 = vsub.f32 %v8932_v22, %v4494_v57  ;;  %v8934_v26 = vld [vmem:[#allocation22_spill] sm:$0xff] }
 0x2cb   :  { %v8935_v6 = vsub.f32 %v8934_v26, %v4494_v57  ;;  %v4967_v58 = vmul.f32 %v4611_v8, %v8937_v42  ;;  %v8943_v42 = vsub.f32 %v8859_v0, %v4494_v57  ;;  %v847_v0 = vmax.f32 %v4651_v9, 0.0 }
 0x2cc   :  { %v4949_v14 = vmul.f32 %v4611_v8, %v8931_v19  ;;  %v4955_v18 = vmul.f32 %v4611_v8, %v8933_v50  ;;  %v8938_v19 = vsub.f32 %v8856_v1, %v4494_v57  ;;  %v8939_v50 = vsub.f32 %v8857_v32, %v4494_v57 }
 0x2cd   :  { %v4961_v56 = vmul.f32 %v4611_v8, %v8935_v6  ;;  %v8941_v6 = vsub.f32 %v8858_v30, %v4494_v57  ;;  %v4991_v1 = vmul.f32 %v4611_v8, %v8943_v42  ;;  %v853_v9 = vmax.f32 %v4687_v31, 0.0 }
 0x2ce   :  { %v4973_v22 = vmul.f32 %v4611_v8, %v8938_v19  ;;  %v4979_v26 = vmul.f32 %v4611_v8, %v8939_v50  ;;  %v8945_v19 = vsub.f32 %v8860_v52, %v4494_v57  ;;  %v8947_v50 = vsub.f32 %v8861_v40, %v4494_v57  ;;  %v1219_v52 = vld [vmem:[%s8765_s4 + $0x1e0] sm:$0xff] }
 0x2cf   :  { %v4985_v12 = vmul.f32 %v4611_v8, %v8941_v6  ;;  %8944 = vst [vmem:[#allocation25_spill] sm:$0xff] %v4991_v1  ;;  %v845_v6 = vmax.f32 %v4639_v16, 0.0  ;;  %v861_v40 = vmax.f32 %v4735_v47, 0.0  ;;  %v878_v16 = vmax.f32 %v814_v4, 0.0  ;;  %2183 = vmatpush.msra.mxu1 %v1219_v52 }
 0x2d0   :  { %8940 = vst [vmem:[#allocation14_spill] sm:$0xff] %v4979_v26  ;;  %v4997_v32 = vmul.f32 %v4611_v8, %v8945_v19  ;;  %v5003_v30 = vmul.f32 %v4611_v8, %v8947_v50  ;;  %v862_v50 = vmax.f32 %v4741_v46, 0.0  ;;  %v893_v26 = vmax.f32 %v829_v10, 0.0 }
 0x2d1   :  { %8942 = vst [vmem:[#allocation24_spill] sm:$0xff] %v4985_v12  ;;  %v846_v12 = vmax.f32 %v4645_v41, 0.0  ;;  %v894_v41 = vmax.f32 %v830_v36, 0.0  ;;  %v863_v4 = vmax.f32 %v4747_v51, 0.0  ;;  %v879_v36 = vmax.f32 %v4839_v44, 0.0 }
 0x2d2   :  { %8946 = vst [vmem:[#allocation26_spill] sm:$0xff] %v4997_v32  ;;  %v895_v10 = vmax.f32 %v4931_v2, 0.0  ;;  %v1222_v32 = vld [vmem:[%s8765_s4 + $0x1f8] sm:$0xff]  ;;  %v909_v19 = vmax.f32 %v845_v6, %v861_v40  ;;  %v8949_v51 = vsub.f32 %v8862_v20, %v4494_v57  ;;  %v865_v44 = vmax.f32 %v4759_v55, 0.0  ;;  %v1347_v57 = vld [vmem:[%s8765_s4 + $0x5e0] sm:$0xff] }
 0x2d3   :  { %8948 = vst [vmem:[#allocation27_spill] sm:$0xff] %v5003_v30  ;;  %v877_v30 = vmax.f32 %v813_v15, 0.0  ;;  %v864_v15 = vmax.f32 %v4753_v53, 0.0  ;;  %v910_v47 = vmax.f32 %v846_v12, %v862_v50  ;;  %v926_v46 = vmax.f32 %v878_v16, %v894_v41  ;;  %3143 = vmatpush.msrb.mxu0 %v1222_v32  ;;  %v1215_v12 = vld [vmem:[%s8765_s4 + $0x1c0] sm:$0xff]  ;;  %2223 = vmatpush.msra.mxu3 %v1347_v57 }
 0x2d4   :  { %v5037_v53 = vmul.f32 %v4611_v8, %v8949_v51  ;;  %v866_v2 = vmax.f32 %v4765_v17, 0.0  ;;  %v867_v42 = vmax.f32 %v4771_v59, 0.0  ;;  %v868_v20 = vmax.f32 %v4777_v61, 0.0  ;;  %2184 = vmatpush.msra.mxu1 %v1215_v12  ;;  %v1218_v59 = vld [vmem:[%s8765_s4 + $0x1d8] sm:$0xff]  ;;  %v1279_v41 = vld [vmem:[%s8765_s4 + $0x3c0] sm:$0xff] }
 0x2d5   :  { %v925_v1 = vmax.f32 %v877_v30, %v893_v26  ;;  %v1283_v26 = vld [vmem:[%s8765_s4 + $0x3e0] sm:$0xff]  ;;  %v869_v8 = vmax.f32 %v4783_v63, 0.0  ;;  %v880_v55 = vmax.f32 %v4845_v28, 0.0  ;;  %v896_v17 = vmax.f32 %v4937_v62, 0.0  ;;  %3144 = vmatpush.msrb.mxu0 %v1218_v59 }
 0x2d6   :  { %v870_v32 = vmax.f32 %v4789_v48, 0.0  ;;  %v871_v30 = vmax.f32 %v4795_v3, 0.0  ;;  %v881_v6 = vmax.f32 %v4851_v24, 0.0  ;;  %v897_v52 = vmax.f32 %v4943_v54, 0.0  ;;  %2203 = vmatpush.msra.mxu2 %v1283_v26  ;;  %v1211_v28 = vld [vmem:[%s8765_s4 + $0x1a0] sm:$0xff] }
 0x2d7   :  { %v911_v40 = vmax.f32 %v847_v0, %v863_v4  ;;  %v927_v62 = vmax.f32 %v879_v36, %v895_v10  ;;  %v5065_v50 = vmax.f32 %v909_v19, %v925_v1  ;;  %v5067_v16 = vmax.f32 %v910_v47, %v926_v46  ;;  %v1343_v1 = vld [vmem:[%s8765_s4 + $0x5c0] sm:$0xff]  ;;  %2185 = vmatpush.msra.mxu1 %v1211_v28 }
 0x2d8   :  { %v872_v24 = vmax.f32 %v4801_v5, 0.0  ;;  %v873_v54 = vmax.f32 %v4807_v7, 0.0  ;;  %v882_v51 = vmax.f32 %v4857_v49, 0.0  ;;  %v898_v12 = vmax.f32 %v4949_v14, 0.0  ;;  %v8950_v0 = vld [vmem:[#allocation5_spill] sm:$0xff]  ;;  %v1214_v49 = vld [vmem:[%s8765_s4 + $0x1b8] sm:$0xff]  ;;  %2204 = vmatpush.msra.mxu2 %v1279_v41  ;;  %2224 = vmatpush.msra.mxu3 %v1343_v1 }
 0x2d9   :  { %v874_v19 = vmax.f32 %v8950_v0, 0.0  ;;  %v875_v47 = vmax.f32 %v4819_v11, 0.0  ;;  %v8951_v46 = vmax.f32 %v4657_v21, 0.0  ;;  %v928_v36 = vmax.f32 %v880_v55, %v896_v17  ;;  %v1207_v21 = vld [vmem:[%s8765_s4 + $0x180] sm:$0xff]  ;;  %3145 = vmatpush.msrb.mxu0 %v1214_v49  ;;  %v8954_v41 = vld [vmem:[#allocation6_spill] sm:$0xff] }
 0x2da   :  { %v883_v14 = vmax.f32 %v4863_v34, 0.0  ;;  %v899_v10 = vmax.f32 %v4955_v18, 0.0  ;;  %v8952_v26 = vmax.f32 %v4663_v23, 0.0  ;;  %v929_v59 = vmax.f32 %v881_v6, %v897_v52  ;;  %v1275_v23 = vld [vmem:[%s8765_s4 + $0x3a0] sm:$0xff]  ;;  %2186 = vmatpush.msra.mxu1 %v1207_v21 }
 0x2db   :  { %v912_v4 = vmax.f32 %v8951_v46, %v864_v15  ;;  %v5093_v15 = vmax.f32 %v911_v40, %v927_v62  ;;  %v957_v55 = vadd.f32 %v5067_v16, %v5065_v50  ;;  %v978_v17 = vmul.f32 %v5065_v50, %v5065_v50  ;;  %v1339_v40 = vld [vmem:[%s8765_s4 + $0x5a0] sm:$0xff]  ;;  %2205 = vmatpush.msra.mxu2 %v1275_v23 }
 0x2dc   :  { %v913_v57 = vmax.f32 %v8952_v26, %v865_v44  ;;  %v979_v34 = vmul.f32 %v5067_v16, %v5067_v16  ;;  %v884_v18 = vmax.f32 %v4869_v38, 0.0  ;;  %v900_v44 = vmax.f32 %v4961_v56, 0.0  ;;  %v1203_v38 = vld [vmem:[%s8765_s4 + $0x160] sm:$0xff]  ;;  %v8955_v56 = vld [vmem:[#allocation7_spill] sm:$0xff]  ;;  %2225 = vmatpush.msra.mxu3 %v1339_v40 }
 0x2dd   :  { %v8953_v6 = vmax.f32 %v4669_v25, 0.0  ;;  %v930_v28 = vmax.f32 %v882_v51, %v898_v12  ;;  %v876_v62 = vmax.f32 %v4825_v13, 0.0  ;;  %v885_v1 = vmax.f32 %v8954_v41, 0.0  ;;  %v1210_v25 = vld [vmem:[%s8765_s4 + $0x198] sm:$0xff]  ;;  %v1335_v21 = vld [vmem:[%s8765_s4 + $0x580] sm:$0xff]  ;;  %2187 = vmatpush.msra.mxu1 %v1203_v38 }
 0x2de   :  { %v5113_v46 = vmax.f32 %v912_v4, %v928_v36  ;;  %v958_v26 = vadd.f32 %v957_v55, %v5093_v15  ;;  %v901_v51 = vmax.f32 %v4967_v58, 0.0  ;;  %v8956_v12 = vmax.f32 %v4675_v27, 0.0  ;;  %v1271_v36 = vld [vmem:[%s8765_s4 + $0x380] sm:$0xff]  ;;  %v1206_v27 = vld [vmem:[%s8765_s4 + $0x178] sm:$0xff]  ;;  %3146 = vmatpush.msrb.mxu0 %v1210_v25  ;;  %2226 = vmatpush.msra.mxu3 %v1335_v21 }
 0x2df   :  { %v914_v52 = vmax.f32 %v8953_v6, %v866_v2  ;;  %v886_v2 = vmax.f32 %v8955_v56, 0.0  ;;  %v931_v4 = vmax.f32 %v883_v14, %v899_v10  ;;  %v5132_v55 = vmax.f32 %v913_v57, %v929_v59  ;;  %v8958_v40 = vld [vmem:[#allocation8_spill] sm:$0xff]  ;;  %2206 = vmatpush.msra.mxu2 %v1271_v36  ;;  %v8960_v36 = vld [vmem:[#allocation9_spill] sm:$0xff] }
 0x2e0   :  { %v915_v49 = vmax.f32 %v8956_v12, %v867_v42  ;;  %v959_v6 = vadd.f32 %v958_v26, %v5113_v46  ;;  %v980_v58 = vmul.f32 %v5093_v15, %v5093_v15  ;;  %v994_v41 = vadd.f32 %v979_v34, %v978_v17  ;;  %v1199_v42 = vld [vmem:[%s8765_s4 + $0x140] sm:$0xff]  ;;  %3147 = vmatpush.msrb.mxu0 %v1206_v27 }
 0x2e1   :  { %v902_v14 = vmax.f32 %v4973_v22, 0.0  ;;  %v8957_v10 = vmax.f32 %v4681_v29, 0.0  ;;  %v932_v59 = vmax.f32 %v884_v18, %v900_v44  ;;  %v5148_v23 = vmax.f32 %v914_v52, %v930_v28  ;;  %v1267_v17 = vld [vmem:[%s8765_s4 + $0x360] sm:$0xff]  ;;  %v1202_v18 = vld [vmem:[%s8765_s4 + $0x158] sm:$0xff]  ;;  %v8959_v52 = vld [vmem:[#allocation14_spill] sm:$0xff]  ;;  %2188 = vmatpush.msra.mxu1 %v1199_v42 }
 0x2e2   :  { %v1331_v34 = vld [vmem:[%s8765_s4 + $0x560] sm:$0xff]  ;;  %v887_v22 = vmax.f32 %v8958_v40, 0.0  ;;  %v960_v61 = vadd.f32 %v959_v6, %v5132_v55  ;;  %v981_v29 = vmul.f32 %v5113_v46, %v5113_v46  ;;  %v903_v28 = vmax.f32 %v8959_v52, 0.0  ;;  %2207 = vmatpush.msra.mxu2 %v1267_v17  ;;  %3148 = vmatpush.msrb.mxu0 %v1202_v18 }
 0x2e3   :  { %v916_v57 = vmax.f32 %v8957_v10, %v868_v20  ;;  %v995_v20 = vadd.f32 %v994_v41, %v980_v58  ;;  %v1195_v44 = vld [vmem:[%s8765_s4 + $0x120] sm:$0xff]  ;;  %v917_v26 = vmax.f32 %v853_v9, %v869_v8  ;;  %v933_v25 = vmax.f32 %v885_v1, %v901_v51  ;;  %2227 = vmatpush.msra.mxu3 %v1331_v34  ;;  %v1198_v8 = vld [vmem:[%s8765_s4 + $0x138] sm:$0xff]  ;;  %v8963_v10 = vld [vmem:[#allocation10_spill] sm:$0xff] }
 0x2e4   :  { %v5171_v38 = vmax.f32 %v915_v49, %v931_v4  ;;  %v1263_v56 = vld [vmem:[%s8765_s4 + $0x340] sm:$0xff]  ;;  %v888_v21 = vmax.f32 %v8960_v36, 0.0  ;;  %v961_v63 = vadd.f32 %v960_v61, %v5148_v23  ;;  %v982_v31 = vmul.f32 %v5132_v55, %v5132_v55  ;;  %2189 = vmatpush.msra.mxu1 %v1195_v44  ;;  %3149 = vmatpush.msrb.mxu0 %v1198_v8  ;;  %v8966_v44 = vld [vmem:[#allocation11_spill] sm:$0xff] }
 0x2e5   :  { %v1327_v12 = vld [vmem:[%s8765_s4 + $0x540] sm:$0xff]  ;;  %v996_v9 = vadd.f32 %v995_v20, %v981_v29  ;;  %v8962_v4 = vmax.f32 %v4693_v33, 0.0  ;;  %v934_v58 = vmax.f32 %v886_v2, %v902_v14  ;;  %v5194_v41 = vmax.f32 %v916_v57, %v932_v59  ;;  %2208 = vmatpush.msra.mxu2 %v1263_v56  ;;  %v1194_v2 = vld [vmem:[%s8765_s4 + $0x118] sm:$0xff] }
 0x2e6   :  { %v1191_v1 = vld [vmem:[%s8765_s4 + $0x100] sm:$0xff]  ;;  %v889_v17 = vmax.f32 %v8963_v10, 0.0  ;;  %v962_v48 = vadd.f32 %v961_v63, %v5171_v38  ;;  %v983_v33 = vmul.f32 %v5148_v23, %v5148_v23  ;;  %2228 = vmatpush.msra.mxu3 %v1327_v12  ;;  %v8965_v34 = vmax.f32 %v4699_v35, 0.0  ;;  %3150 = vmatpush.msrb.mxu0 %v1194_v2 }
 0x2e7   :  { %v8961_v51 = vld [vmem:[#allocation24_spill] sm:$0xff]  ;;  %v918_v6 = vmax.f32 %v8962_v4, %v870_v32  ;;  %v997_v32 = vadd.f32 %v996_v9, %v982_v31  ;;  %v8964_v57 = vld [vmem:[#allocation25_spill] sm:$0xff]  ;;  %v935_v61 = vmax.f32 %v887_v22, %v903_v28  ;;  %v5217_v29 = vmax.f32 %v917_v26, %v933_v25  ;;  %2190 = vmatpush.msra.mxu1 %v1191_v1  ;;  %v8967_v26 = vld [vmem:[#allocation26_spill] sm:$0xff] }
 0x2e8   :  { %v904_v49 = vmax.f32 %v8961_v51, 0.0  ;;  %v1259_v27 = vld [vmem:[%s8765_s4 + $0x320] sm:$0xff]  ;;  %v905_v59 = vmax.f32 %v8964_v57, 0.0  ;;  %v919_v40 = vmax.f32 %v8965_v34, %v871_v30  ;;  %v890_v52 = vmax.f32 %v8966_v44, 0.0  ;;  %v1190_v22 = vld [vmem:[%s8765_s4 + $0xf8] sm:$0xff] }
 0x2e9   :  { %v1323_v42 = vld [vmem:[%s8765_s4 + $0x520] sm:$0xff]  ;;  %v963_v3 = vadd.f32 %v962_v48, %v5194_v41  ;;  %v984_v35 = vmul.f32 %v5171_v38, %v5171_v38  ;;  %v998_v30 = vadd.f32 %v997_v32, %v983_v33  ;;  %2209 = vmatpush.msra.mxu2 %v1259_v27  ;;  %v906_v25 = vmax.f32 %v8967_v26, 0.0  ;;  %3151 = vmatpush.msrb.mxu0 %v1190_v22 }
 0x2ea   :  { %v1187_v14 = vld [vmem:[%s8765_s4 + $0xe0] sm:$0xff]  ;;  %2229 = vmatpush.msra.mxu3 %v1323_v42  ;;  %v8968_v56 = vmax.f32 %v4705_v37, 0.0  ;;  %v936_v36 = vmax.f32 %v888_v21, %v904_v49  ;;  %v5240_v63 = vmax.f32 %v918_v6, %v934_v58  ;;  %v985_v37 = vmul.f32 %v5194_v41, %v5194_v41  ;;  %v1186_v21 = vld [vmem:[%s8765_s4 + $0xd8] sm:$0xff] }
 0x2eb   :  { %v1255_v20 = vld [vmem:[%s8765_s4 + $0x300] sm:$0xff]  ;;  %2191 = vmatpush.msra.mxu1 %v1187_v14  ;;  %v964_v5 = vadd.f32 %v963_v3, %v5217_v29  ;;  %v8970_v49 = vld [vmem:[#allocation27_spill] sm:$0xff]  ;;  %v8971_v6 = vmax.f32 %v4711_v39, 0.0  ;;  %v937_v27 = vmax.f32 %v889_v17, %v905_v59  ;;  %v5263_v42 = vmax.f32 %v919_v40, %v935_v61  ;;  %3152 = vmatpush.msrb.mxu0 %v1186_v21 }
 0x2ec   :  { %v1319_v18 = vld [vmem:[%s8765_s4 + $0x500] sm:$0xff]  ;;  %v920_v12 = vmax.f32 %v8968_v56, %v872_v24  ;;  %v999_v24 = vadd.f32 %v998_v30, %v984_v35  ;;  %2210 = vmatpush.msra.mxu2 %v1255_v20  ;;  %v907_v4 = vmax.f32 %v8970_v49, 0.0  ;;  %v986_v39 = vmul.f32 %v5217_v29, %v5217_v29  ;;  %v1182_v17 = vld [vmem:[%s8765_s4 + $0xb8] sm:$0xff] }
 0x2ed   :  { %v1183_v28 = vld [vmem:[%s8765_s4 + $0xc0] sm:$0xff]  ;;  %2230 = vmatpush.msra.mxu3 %v1319_v18  ;;  %v921_v58 = vmax.f32 %v8971_v6, %v873_v54  ;;  %v965_v7 = vadd.f32 %v964_v5, %v5240_v63  ;;  %v908_v14 = vmax.f32 %v5037_v53, 0.0  ;;  %v8973_v57 = vmax.f32 %v4717_v60, 0.0  ;;  %3153 = vmatpush.msrb.mxu0 %v1182_v17 }
 0x2ee   :  { %v1251_v31 = vld [vmem:[%s8765_s4 + $0x2e0] sm:$0xff]  ;;  %2192 = vmatpush.msra.mxu1 %v1183_v28  ;;  %v1000_v54 = vadd.f32 %v999_v24, %v985_v37  ;;  %v938_v34 = vmax.f32 %v890_v52, %v906_v25  ;;  %v5286_v40 = vmax.f32 %v920_v12, %v936_v36  ;;  %v987_v0 = vmul.f32 %v5240_v63, %v5240_v63 }
 0x2ef   :  { %v1315_v9 = vld [vmem:[%s8765_s4 + $0x4e0] sm:$0xff]  ;;  %2211 = vmatpush.msra.mxu2 %v1251_v31  ;;  %v922_v59 = vmax.f32 %v8973_v57, %v874_v19  ;;  %v966_v53 = vadd.f32 %v965_v7, %v5263_v42  ;;  %v1178_v19 = vld [vmem:[%s8765_s4 + $0x98] sm:$0xff]  ;;  %v8974_v44 = vmax.f32 %v4723_v43, 0.0  ;;  %v5307_v35 = vmax.f32 %v921_v58, %v937_v27 }
 0x2f0   :  { %v8969_v8 = vld [vmem:[#allocation12_spill] sm:$0xff]  ;;  %v8972_v33 = vld [vmem:[#allocation13_spill] sm:$0xff]  ;;  %2231 = vmatpush.msra.mxu3 %v1315_v9  ;;  %v1001_v60 = vadd.f32 %v1000_v54, %v986_v39  ;;  %v988_v11 = vmul.f32 %v5263_v42, %v5263_v42  ;;  %v8975_v25 = vmax.f32 %v4729_v45, 0.0  ;;  %3154 = vmatpush.msrb.mxu0 %v1178_v19  ;;  %v989_v13 = vmul.f32 %v5286_v40, %v5286_v40 }
 0x2f1   :  { %v891_v1 = vmax.f32 %v8969_v8, 0.0  ;;  %v1179_v51 = vld [vmem:[%s8765_s4 + $0xa0] sm:$0xff]  ;;  %v892_v32 = vmax.f32 %v8972_v33, 0.0  ;;  %v923_v52 = vmax.f32 %v8974_v44, %v875_v47  ;;  %v967_v28 = vadd.f32 %v966_v53, %v5286_v40  ;;  %v1174_v47 = vld [vmem:[%s8765_s4 + $0x78] sm:$0xff] }
 0x2f2   :  { %v1247_v10 = vld [vmem:[%s8765_s4 + $0x2c0] sm:$0xff]  ;;  %2193 = vmatpush.msra.mxu1 %v1179_v51  ;;  %v1002_v43 = vadd.f32 %v1001_v60, %v987_v0  ;;  %v924_v56 = vmax.f32 %v8975_v25, %v876_v62  ;;  %v5328_v36 = vmax.f32 %v922_v59, %v938_v34  ;;  %v1170_v62 = vld [vmem:[%s8765_s4 + $0x58] sm:$0xff]  ;;  %3155 = vmatpush.msrb.mxu0 %v1174_v47 }
 0x2f3   :  { %v1311_v48 = vld [vmem:[%s8765_s4 + $0x4c0] sm:$0xff]  ;;  %2212 = vmatpush.msra.mxu2 %v1247_v10  ;;  %v939_v3 = vmax.f32 %v891_v1, %v907_v4  ;;  %v940_v12 = vmax.f32 %v892_v32, %v908_v14  ;;  %v968_v8 = vadd.f32 %v967_v28, %v5307_v35  ;;  %v990_v51 = vmul.f32 %v5307_v35, %v5307_v35  ;;  %v1166_v4 = vld [vmem:[%s8765_s4 + $0x38] sm:$0xff] }
 0x2f4   :  { %v1175_v2 = vld [vmem:[%s8765_s4 + $0x80] sm:$0xff]  ;;  %2232 = vmatpush.msra.mxu3 %v1311_v48  ;;  %v1003_v45 = vadd.f32 %v1002_v43, %v988_v11  ;;  %3156 = vmatpush.msrb.mxu0 %v1170_v62  ;;  %v991_v33 = vmul.f32 %v5328_v36, %v5328_v36  ;;  %v1162_v7 = vld [vmem:[%s8765_s4 + $0x18] sm:$0xff] }
 0x2f5   :  { %v1243_v61 = vld [vmem:[%s8765_s4 + $0x2a0] sm:$0xff]  ;;  %2194 = vmatpush.msra.mxu1 %v1175_v2  ;;  %v5345_v5 = vmax.f32 %v923_v52, %v939_v3  ;;  %v969_v21 = vadd.f32 %v968_v8, %v5328_v36  ;;  %v5362_v58 = vmax.f32 %v924_v56, %v940_v12  ;;  %v1478_v54 = vld [vmem:[%s8765_s4 + $0x9f8] sm:$0xff] }
 0x2f6   :  { %v1307_v20 = vld [vmem:[%s8765_s4 + $0x4a0] sm:$0xff]  ;;  %2213 = vmatpush.msra.mxu2 %v1243_v61  ;;  %v1004_v49 = vadd.f32 %v1003_v45, %v989_v13  ;;  %3157 = vmatpush.msrb.mxu0 %v1166_v4  ;;  %v1474_v19 = vld [vmem:[%s8765_s4 + $0x9d8] sm:$0xff] }
 0x2f7   :  { %v1171_v18 = vld [vmem:[%s8765_s4 + $0x60] sm:$0xff]  ;;  %2233 = vmatpush.msra.mxu3 %v1307_v20  ;;  %v970_v48 = vadd.f32 %v969_v21, %v5345_v5  ;;  %v992_v14 = vmul.f32 %v5345_v5, %v5345_v5  ;;  %v993_v0 = vmul.f32 %v5362_v58, %v5362_v58  ;;  %v1466_v25 = vld [vmem:[%s8765_s4 + $0x998] sm:$0xff] }
 0x2f8   :  { %v1239_v30 = vld [vmem:[%s8765_s4 + $0x280] sm:$0xff]  ;;  %2195 = vmatpush.msra.mxu1 %v1171_v18  ;;  %v1005_v32 = vadd.f32 %v1004_v49, %v990_v51  ;;  %3158 = vmatpush.msrb.mxu0 %v1162_v7  ;;  %v1462_v13 = vld [vmem:[%s8765_s4 + $0x978] sm:$0xff] }
 0x2f9   :  { %v1303_v22 = vld [vmem:[%s8765_s4 + $0x480] sm:$0xff]  ;;  %2214 = vmatpush.msra.mxu2 %v1239_v30  ;;  %v971_v2 = vadd.f32 %v970_v48, %v5362_v58  ;;  %v1458_v21 = vld [vmem:[%s8765_s4 + $0x958] sm:$0xff] }
 0x2fa   :  { %v1167_v26 = vld [vmem:[%s8765_s4 + $0x40] sm:$0xff]  ;;  %2234 = vmatpush.msra.mxu3 %v1303_v22  ;;  %v1006_v57 = vadd.f32 %v1005_v32, %v991_v33  ;;  %3223 = vmatpush.msra.mxu0 %v1478_v54  ;;  %v1470_v22 = vld [vmem:[%s8765_s4 + $0x9b8] sm:$0xff] }
 0x2fb   :  { %v1235_v31 = vld [vmem:[%s8765_s4 + $0x260] sm:$0xff]  ;;  %2196 = vmatpush.msra.mxu1 %v1167_v26  ;;  %v972_v53 = vrot.slane %v971_v2, 4  ;;  %v1450_v54 = vld [vmem:[%s8765_s4 + $0x918] sm:$0xff] }
 0x2fc   :  { %v1299_v9 = vld [vmem:[%s8765_s4 + $0x460] sm:$0xff]  ;;  %2215 = vmatpush.msra.mxu2 %v1235_v31  ;;  %v1007_v60 = vadd.f32 %v1006_v57, %v992_v14  ;;  %3224 = vmatpush.msra.mxu0 %v1474_v19 }
 0x2fd   :  { %v1163_v1 = vld [vmem:[%s8765_s4 + $0x20] sm:$0xff]  ;;  %2235 = vmatpush.msra.mxu3 %v1299_v9  ;;  %v973_v3 = vadd.f32 %v972_v53, %v971_v2 }
 0x2fe   :  { %v1231_v37 = vld [vmem:[%s8765_s4 + $0x240] sm:$0xff]  ;;  %2197 = vmatpush.msra.mxu1 %v1163_v1  ;;  %v1008_v30 = vadd.f32 %v1007_v60, %v993_v0  ;;  %3225 = vmatpush.msra.mxu0 %v1470_v22 }
 0x2ff   :  { %v1295_v24 = vld [vmem:[%s8765_s4 + $0x440] sm:$0xff]  ;;  %2216 = vmatpush.msra.mxu2 %v1231_v37  ;;  %v974_v47 = vrot.slane %v973_v3, 2 }
 0x300   :  { %v1159_v6 = vld [vmem:[%s8765_s4] sm:$0xff]  ;;  %2236 = vmatpush.msra.mxu3 %v1295_v24  ;;  %v1009_v26 = vrot.slane %v1008_v30, 4  ;;  %3226 = vmatpush.msra.mxu0 %v1466_v25  ;;  %v1438_v25 = vld [vmem:[%s8765_s4 + $0x8b8] sm:$0xff] }
 0x301   :  { %v1227_v27 = vld [vmem:[%s8765_s4 + $0x220] sm:$0xff]  ;;  %2198 = vmatpush.msra.mxu1 %v1159_v6  ;;  %v975_v9 = vadd.f32 %v974_v47, %v973_v3 }
 0x302   :  { %v1291_v10 = vld [vmem:[%s8765_s4 + $0x420] sm:$0xff]  ;;  %2217 = vmatpush.msra.mxu2 %v1227_v27  ;;  %v1010_v8 = vadd.f32 %v1009_v26, %v1008_v30  ;;  %3227 = vmatpush.msra.mxu0 %v1462_v13 }
 0x303   :  { %v1411_v39 = vld [vmem:[%s8765_s4 + $0x7e0] sm:$0xff]  ;;  %2237 = vmatpush.msra.mxu3 %v1291_v10  ;;  %v976_v37 = vrot.slane %v975_v9, 1  ;;  %v1454_v10 = vld [vmem:[%s8765_s4 + $0x938] sm:$0xff] }
 0x304   :  { %v1223_v17 = vld [vmem:[%s8765_s4 + $0x200] sm:$0xff]  ;;  %2243 = vmatpush.msrb.mxu1 %v1411_v39  ;;  %v1011_v24 = vrot.slane %v1010_v8, 2  ;;  %3228 = vmatpush.msra.mxu0 %v1458_v21 }
 0x305   :  { %v1287_v59 = vld [vmem:[%s8765_s4 + $0x400] sm:$0xff]  ;;  %2218 = vmatpush.msra.mxu2 %v1223_v17  ;;  %v977_v6 = vadd.f32 %v976_v37, %v975_v9  ;;  %v1434_v37 = vld [vmem:[%s8765_s4 + $0x898] sm:$0xff] }
 0x306   :  { %v1407_v34 = vld [vmem:[%s8765_s4 + $0x7c0] sm:$0xff]  ;;  %2238 = vmatpush.msra.mxu3 %v1287_v59  ;;  %v1012_v27 = vadd.f32 %v1011_v24, %v1010_v8  ;;  %3229 = vmatpush.msra.mxu0 %v1454_v10 }
 0x307   :  { %v1475_v61 = vld [vmem:[%s8765_s4 + $0x9e0] sm:$0xff]  ;;  %2244 = vmatpush.msrb.mxu1 %v1407_v34  ;;  %v5471_v7 = vmul.f32 0.0078125, %v977_v6 }
 0x308   :  { %v1539_v20 = vld [vmem:[%s8765_s4 + $0xbe0] sm:$0xff]  ;;  %2263 = vmatpush.msrb.mxu2 %v1475_v61  ;;  %v1013_v32 = vrot.slane %v1012_v27, 1  ;;  %3230 = vmatpush.msra.mxu0 %v1450_v54  ;;  %v1422_v54 = vld [vmem:[%s8765_s4 + $0x838] sm:$0xff] }
 0x309   :  { %v1403_v18 = vld [vmem:[%s8765_s4 + $0x7a0] sm:$0xff]  ;;  %2283 = vmatpush.msrb.mxu3 %v1539_v20  ;;  %v1017_v57 = vmul.f32 %v5471_v7, %v5471_v7  ;;  %v1031_v59 = vsub.f32 %v5286_v40, %v5471_v7  ;;  %v1035_v34 = vsub.f32 %v5362_v58, %v5471_v7  ;;  %v1446_v20 = vld [vmem:[%s8765_s4 + $0x8f8] sm:$0xff]  ;;  %v1020_v60 = vsub.f32 %v5065_v50, %v5471_v7 }
 0x30a   :  { %v1471_v44 = vld [vmem:[%s8765_s4 + $0x9c0] sm:$0xff]  ;;  %2245 = vmatpush.msrb.mxu1 %v1403_v18  ;;  %v1014_v14 = vadd.f32 %v1013_v32, %v1012_v27  ;;  %v1021_v3 = vsub.f32 %v5067_v16, %v5471_v7  ;;  %v1025_v30 = vsub.f32 %v5148_v23, %v5471_v7  ;;  %3231 = vmatpush.msra.mxu0 %v1446_v20 }
 0x30b   :  { %v1535_v52 = vld [vmem:[%s8765_s4 + $0xbc0] sm:$0xff]  ;;  %2264 = vmatpush.msrb.mxu2 %v1471_v44  ;;  %v1442_v44 = vld [vmem:[%s8765_s4 + $0x8d8] sm:$0xff]  ;;  %v1034_v8 = vsub.f32 %v5345_v5, %v5471_v7  ;;  %v1023_v13 = vsub.f32 %v5113_v46, %v5471_v7 }
 0x30c   :  { %v1399_v28 = vld [vmem:[%s8765_s4 + $0x780] sm:$0xff]  ;;  %2284 = vmatpush.msrb.mxu3 %v1535_v52  ;;  %v1016_v19 = vmul.f32 0.0078125, %v1014_v14  ;;  %v1032_v52 = vsub.f32 %v5307_v35, %v5471_v7  ;;  %3232 = vmatpush.msra.mxu0 %v1442_v44 }
 0x30d   :  { %v1467_v11 = vld [vmem:[%s8765_s4 + $0x9a0] sm:$0xff]  ;;  %2246 = vmatpush.msrb.mxu1 %v1399_v28 }
 0x30e   :  { %v1531_v43 = vld [vmem:[%s8765_s4 + $0xba0] sm:$0xff]  ;;  %2265 = vmatpush.msrb.mxu2 %v1467_v11  ;;  %v1033_v11 = vsub.f32 %v5328_v36, %v5471_v7  ;;  %v1018_v47 = vsub.f32 %v1016_v19, %v1017_v57  ;;  %3233 = vmatpush.msra.mxu0 %v1438_v25  ;;  %v1418_v57 = vld [vmem:[%s8765_s4 + $0x818] sm:$0xff]  ;;  %v1028_v25 = vsub.f32 %v5217_v29, %v5471_v7 }
 0x30f   :  { %v1395_v56 = vld [vmem:[%s8765_s4 + $0x760] sm:$0xff]  ;;  %2285 = vmatpush.msrb.mxu3 %v1531_v43  ;;  %v1022_v43 = vsub.f32 %v5093_v15, %v5471_v7 }
 0x310   :  { %v1463_v12 = vld [vmem:[%s8765_s4 + $0x980] sm:$0xff]  ;;  %2247 = vmatpush.msrb.mxu1 %v1395_v56  ;;  %v1026_v56 = vsub.f32 %v5171_v38, %v5471_v7  ;;  %3234 = vmatpush.msra.mxu0 %v1434_v37 }
 0x311   :  { %v1527_v31 = vld [vmem:[%s8765_s4 + $0xb80] sm:$0xff]  ;;  %2266 = vmatpush.msrb.mxu2 %v1463_v12  ;;  %v1030_v12 = vsub.f32 %v5263_v42, %v5471_v7 }
 0x312   :  { %v1391_v45 = vld [vmem:[%s8765_s4 + $0x740] sm:$0xff]  ;;  %2286 = vmatpush.msrb.mxu3 %v1527_v31 }
 0x313   :  { %v1459_v62 = vld [vmem:[%s8765_s4 + $0x960] sm:$0xff]  ;;  %2248 = vmatpush.msrb.mxu1 %v1391_v45  ;;  %v1027_v45 = vsub.f32 %v5194_v41, %v5471_v7  ;;  %v1722_v41 = vld [vmem:[%s8765_s4 + $0x1198] sm:$0xff] }
 0x314   :  { %v1523_v1 = vld [vmem:[%s8765_s4 + $0xb60] sm:$0xff]  ;;  %2267 = vmatpush.msrb.mxu2 %v1459_v62  ;;  %v1019_v62 = vmax.f32 %v1018_v47, 0.0  ;;  %v1024_v47 = vsub.f32 %v5132_v55, %v5471_v7 }
 0x315   :  { %v1387_v51 = vld [vmem:[%s8765_s4 + $0x720] sm:$0xff]  ;;  %2287 = vmatpush.msrb.mxu3 %v1523_v1 }
 0x316   :  { %v1455_v49 = vld [vmem:[%s8765_s4 + $0x940] sm:$0xff]  ;;  %2249 = vmatpush.msrb.mxu1 %v1387_v51  ;;  %v1036_v51 = vadd.f32 1e-05, %v1019_v62 }
 0x317   :  { %v1519_v4 = vld [vmem:[%s8765_s4 + $0xb40] sm:$0xff]  ;;  %2268 = vmatpush.msrb.mxu2 %v1455_v49 }
 0x318   :  { %v1383_v48 = vld [vmem:[%s8765_s4 + $0x700] sm:$0xff]  ;;  %2288 = vmatpush.msrb.mxu3 %v1519_v4  ;;  %v1430_v4 = vld [vmem:[%s8765_s4 + $0x878] sm:$0xff]  ;;  %3831 = vrsqrt.f32 %v1036_v51  ;;  %vm1043_vm6 = vweird.f32 %v1036_v51 }
 0x319   :  { %v1451_v33 = vld [vmem:[%s8765_s4 + $0x920] sm:$0xff]  ;;  %2250 = vmatpush.msrb.mxu1 %v1383_v48  ;;  %v1426_v48 = vld [vmem:[%s8765_s4 + $0x858] sm:$0xff]  ;;  %3235 = vmatpush.msra.mxu0 %v1430_v4 }
 0x31a   :  { %v1515_v39 = vld [vmem:[%s8765_s4 + $0xb20] sm:$0xff]  ;;  %2269 = vmatpush.msrb.mxu2 %v1451_v33 }
 0x31b   :  { %v1379_v17 = vld [vmem:[%s8765_s4 + $0x6e0] sm:$0xff]  ;;  %2289 = vmatpush.msrb.mxu3 %v1515_v39  ;;  %3236 = vmatpush.msra.mxu0 %v1426_v48 }
 0x31c   :  { %v1447_v2 = vld [vmem:[%s8765_s4 + $0x900] sm:$0xff]  ;;  %2251 = vmatpush.msrb.mxu1 %v1379_v17 }
 0x31d   :  { %v1511_v61 = vld [vmem:[%s8765_s4 + $0xb00] sm:$0xff]  ;;  %2270 = vmatpush.msrb.mxu2 %v1447_v2  ;;  %3237 = vmatpush.msra.mxu0 %v1422_v54 }
 0x31e   :  { %v1375_v53 = vld [vmem:[%s8765_s4 + $0x6c0] sm:$0xff]  ;;  %2290 = vmatpush.msrb.mxu3 %v1511_v61  ;;  %v3832_v20 = vpop.eup %3831 }
 0x31f   :  { %v1443_v0 = vld [vmem:[%s8765_s4 + $0x8e0] sm:$0xff]  ;;  %2252 = vmatpush.msrb.mxu1 %v1375_v53  ;;  %3238 = vmatpush.msra.mxu0 %v1418_v57  ;;  %vm1044_vm5 = vweird.f32 %v3832_v20 }
 0x320   :  { %v1507_v18 = vld [vmem:[%s8765_s4 + $0xae0] sm:$0xff]  ;;  %2271 = vmatpush.msrb.mxu2 %v1443_v0  ;;  %v1038_v0 = vmul.f32 %v3832_v20, %v1036_v51  ;;  %vm1045_vm7 = vmor %vm1043_vm6, %vm1044_vm5 }
 0x321   :  { %v1371_v22 = vld [vmem:[%s8765_s4 + $0x6a0] sm:$0xff]  ;;  %2291 = vmatpush.msrb.mxu3 %v1507_v18 }
 0x322   :  { %v1439_v28 = vld [vmem:[%s8765_s4 + $0x8c0] sm:$0xff]  ;;  %2253 = vmatpush.msrb.mxu1 %v1371_v22  ;;  %v1039_v19 = vmul.f32 %v3832_v20, %v1038_v0 }
 0x323   :  { %v1503_v26 = vld [vmem:[%s8765_s4 + $0xac0] sm:$0xff]  ;;  %2272 = vmatpush.msrb.mxu2 %v1439_v28 }
 0x324   :  { %v1367_v31 = vld [vmem:[%s8765_s4 + $0x680] sm:$0xff]  ;;  %2292 = vmatpush.msrb.mxu3 %v1503_v26  ;;  %v1040_v18 = vmul.f32 0.5, %v1039_v19 }
 0x325   :  { %v1435_v9 = vld [vmem:[%s8765_s4 + $0x8a0] sm:$0xff]  ;;  %2254 = vmatpush.msrb.mxu1 %v1367_v31  ;;  %v1029_v31 = vsub.f32 %v5240_v63, %v5471_v7 }
 0x326   :  { %v1499_v1 = vld [vmem:[%s8765_s4 + $0xaa0] sm:$0xff]  ;;  %2273 = vmatpush.msrb.mxu2 %v1435_v9  ;;  %v1041_v44 = vsub.f32 1.5, %v1040_v18 }
 0x327   :  { %v1363_v24 = vld [vmem:[%s8765_s4 + $0x660] sm:$0xff]  ;;  %2293 = vmatpush.msrb.mxu3 %v1499_v1 }
 0x328   :  { %v1431_v21 = vld [vmem:[%s8765_s4 + $0x880] sm:$0xff]  ;;  %2255 = vmatpush.msrb.mxu1 %v1363_v24  ;;  %v1042_v22 = vmul.f32 %v3832_v20, %v1041_v44 }
 0x329   :  { %v1495_v49 = vld [vmem:[%s8765_s4 + $0xa80] sm:$0xff]  ;;  %2274 = vmatpush.msrb.mxu2 %v1431_v21 }
 0x32a   :  { %v1359_v6 = vld [vmem:[%s8765_s4 + $0x640] sm:$0xff]  ;;  %2294 = vmatpush.msrb.mxu3 %v1495_v49  ;;  %v5616_v26 = vsel %vm1045_vm7, %v3832_v20, %v1042_v22 }
 0x32b   :  { %v1427_v27 = vld [vmem:[%s8765_s4 + $0x860] sm:$0xff]  ;;  %2256 = vmatpush.msrb.mxu1 %v1359_v6  ;;  %v1058_v9 = vmul.f32 %v5616_v26, %v1031_v59  ;;  %v1062_v62 = vmul.f32 %v5616_v26, %v1035_v34  ;;  %v1047_v29 = vmul.f32 %v5616_v26, %v1020_v60  ;;  %v1051_v63 = vmul.f32 %v5616_v26, %v1024_v47 }
 0x32c   :  { %v1491_v10 = vld [vmem:[%s8765_s4 + $0xa60] sm:$0xff]  ;;  %2275 = vmatpush.msrb.mxu2 %v1427_v27  ;;  %v1055_v40 = vmul.f32 %v5616_v26, %v1028_v25  ;;  %v1059_v58 = vmul.f32 %v5616_v26, %v1032_v52  ;;  %v1048_v59 = vmul.f32 %v5616_v26, %v1021_v3  ;;  %v1052_v50 = vmul.f32 %v5616_v26, %v1025_v30 }
 0x32d   :  { %v1355_v33 = vld [vmem:[%s8765_s4 + $0x620] sm:$0xff]  ;;  %2295 = vmatpush.msrb.mxu3 %v1491_v10  ;;  %v1056_v16 = vmul.f32 %v5616_v26, %v1029_v31  ;;  %v1060_v23 = vmul.f32 %v5616_v26, %v1033_v11  ;;  %v1053_v18 = vmul.f32 %v5616_v26, %v1026_v56  ;;  %v1057_v44 = vmul.f32 %v5616_v26, %v1030_v12 }
 0x32e   :  { %v1423_v32 = vld [vmem:[%s8765_s4 + $0x840] sm:$0xff]  ;;  %2257 = vmatpush.msrb.mxu1 %v1355_v33  ;;  %v1061_v38 = vmul.f32 %v5616_v26, %v1034_v8  ;;  %v1054_v46 = vmul.f32 %v5616_v26, %v1027_v45 }
 0x32f   :  { %v1487_v39 = vld [vmem:[%s8765_s4 + $0xa40] sm:$0xff]  ;;  %2276 = vmatpush.msrb.mxu2 %v1423_v32 }
 0x330   :  { %v1351_v17 = vld [vmem:[%s8765_s4 + $0x600] sm:$0xff]  ;;  %2296 = vmatpush.msrb.mxu3 %v1487_v39 }
 0x331   :  { %v1419_v2 = vld [vmem:[%s8765_s4 + $0x820] sm:$0xff]  ;;  %2258 = vmatpush.msrb.mxu1 %v1351_v17 }
 0x332   :  { %v1483_v14 = vld [vmem:[%s8765_s4 + $0xa20] sm:$0xff]  ;;  %2277 = vmatpush.msrb.mxu2 %v1419_v2 }
 0x333   :  { %v1415_v61 = vld [vmem:[%s8765_s4 + $0x800] sm:$0xff]  ;;  %2297 = vmatpush.msrb.mxu3 %v1483_v14 }
 0x334   :  { %v1479_v53 = vld [vmem:[%s8765_s4 + $0xa00] sm:$0xff]  ;;  %2278 = vmatpush.msrb.mxu2 %v1415_v61 }
 0x335   :  { %2298 = vmatpush.msrb.mxu3 %v1479_v53  ;;  %v5612_v28 = vld [vmem:[%s8763_s2] ss:$0 sm:$0xff]  ;;  %v1049_v53 = vmul.f32 %v5616_v26, %v1022_v43  ;;  %v1734_v43 = vld [vmem:[%s8765_s4 + $0x11f8] sm:$0xff] }
 0x336   :  { %v5633_v55 = vld [vmem:[%s8764_s3] ss:$0 sm:$0xff]  ;;  %v1078_v34 = vmul.f32 %v5612_v28, %v1058_v9  ;;  %v1082_v60 = vmul.f32 %v5612_v28, %v1062_v62  ;;  %v1067_v1 = vmul.f32 %v5612_v28, %v1047_v29  ;;  %v1071_v35 = vmul.f32 %v5612_v28, %v1051_v63 }
 0x337   :  { %v1075_v52 = vmul.f32 %v5612_v28, %v1055_v40  ;;  %v1079_v37 = vmul.f32 %v5612_v28, %v1059_v58  ;;  %v1068_v4 = vmul.f32 %v5612_v28, %v1048_v59  ;;  %v1072_v6 = vmul.f32 %v5612_v28, %v1052_v50  ;;  %v1603_v15 = vld [vmem:[%s8765_s4 + $0xde0] sm:$0xff]  ;;  %v1730_v40 = vld [vmem:[%s8765_s4 + $0x11d8] sm:$0xff] }
 0x338   :  { %v1098_v3 = vadd.f32 %v5633_v55, %v1078_v34  ;;  %v1102_v30 = vadd.f32 %v5633_v55, %v1082_v60  ;;  %v1087_v24 = vadd.f32 %v5633_v55, %v1067_v1  ;;  %v1091_v21 = vadd.f32 %v5633_v55, %v1071_v35  ;;  %v1599_v5 = vld [vmem:[%s8765_s4 + $0xdc0] sm:$0xff] }
 0x339   :  { %v1095_v51 = vadd.f32 %v5633_v55, %v1075_v52  ;;  %v1099_v49 = vadd.f32 %v5633_v55, %v1079_v37  ;;  %v1076_v32 = vmul.f32 %v5612_v28, %v1056_v16  ;;  %v1080_v39 = vmul.f32 %v5612_v28, %v1060_v23  ;;  %v1667_v8 = vld [vmem:[%s8765_s4 + $0xfe0] sm:$0xff]  ;;  %v1726_v16 = vld [vmem:[%s8765_s4 + $0x11b8] sm:$0xff] }
 0x33a   :  { %v1114_v27 = vmax.f32 %v1098_v3, 0.0  ;;  %v1118_v36 = vmax.f32 %v1102_v30, 0.0  ;;  %v1103_v10 = vmax.f32 %v1087_v24, 0.0  ;;  %v1107_v11 = vmax.f32 %v1091_v21, 0.0  ;;  %v1731_v63 = vld [vmem:[%s8765_s4 + $0x11e0] sm:$0xff] }
 0x33b   :  { %v1111_v48 = vmax.f32 %v1095_v51, 0.0  ;;  %v1115_v33 = vmax.f32 %v1099_v49, 0.0  ;;  %v1088_v2 = vadd.f32 %v5633_v55, %v1068_v4  ;;  %v1092_v14 = vadd.f32 %v5633_v55, %v1072_v6  ;;  %v1595_v34 = vld [vmem:[%s8765_s4 + $0xda0] sm:$0xff] }
 0x33c   :  { %v5674_v54 = vmax.f32 %v1114_v27, %v1118_v36  ;;  %v1119_v17 = vmax.f32 %v1103_v10, %v1107_v11  ;;  %v1096_v61 = vadd.f32 %v5633_v55, %v1076_v32  ;;  %v1100_v20 = vadd.f32 %v5633_v55, %v1080_v39  ;;  %v1663_v60 = vld [vmem:[%s8765_s4 + $0xfc0] sm:$0xff] }
 0x33d   :  { %v1123_v57 = vmax.f32 %v1111_v48, %v1115_v33  ;;  %v1104_v0 = vmax.f32 %v1088_v2, 0.0  ;;  %v1108_v19 = vmax.f32 %v1092_v14, 0.0  ;;  %v1069_v56 = vmul.f32 %v5612_v28, %v1049_v53  ;;  %v1727_v37 = vld [vmem:[%s8765_s4 + $0x11c0] sm:$0xff]  ;;  %v1718_v48 = vld [vmem:[%s8765_s4 + $0x1178] sm:$0xff] }
 0x33e   :  { %v1112_v47 = vmax.f32 %v1096_v61, 0.0  ;;  %v1116_v25 = vmax.f32 %v1100_v20, 0.0  ;;  %v1073_v12 = vmul.f32 %v5612_v28, %v1053_v18  ;;  %v1077_v31 = vmul.f32 %v5612_v28, %v1057_v44  ;;  %v1659_v24 = vld [vmem:[%s8765_s4 + $0xfa0] sm:$0xff] }
 0x33f   :  { %v5692_v22 = vmax.f32 %v1119_v17, %v1123_v57  ;;  %v1120_v42 = vmax.f32 %v1104_v0, %v1108_v19  ;;  %v1081_v58 = vmul.f32 %v5612_v28, %v1061_v38  ;;  %v1089_v59 = vadd.f32 %v5633_v55, %v1069_v56  ;;  %v1723_v51 = vld [vmem:[%s8765_s4 + $0x11a0] sm:$0xff]  ;;  %v1714_v57 = vld [vmem:[%s8765_s4 + $0x1158] sm:$0xff] }
 0x340   :  { %v1124_v29 = vmax.f32 %v1112_v47, %v1116_v25  ;;  %v1093_v50 = vadd.f32 %v5633_v55, %v1073_v12  ;;  %v1097_v35 = vadd.f32 %v5633_v55, %v1077_v31  ;;  %v1050_v52 = vmul.f32 %v5616_v26, %v1023_v13  ;;  %v1591_v13 = vld [vmem:[%s8765_s4 + $0xd80] sm:$0xff]  ;;  %v1710_v19 = vld [vmem:[%s8765_s4 + $0x1138] sm:$0xff] }
 0x341   :  { %2199 = vmatmul.f32.vlgmr.msra.gmra.mxu1 %v5692_v22  ;;  %3159 = vmatmul.f32.vlgmr.msrb.gmra.mxu0 %v5692_v22  ;;  %v5710_v9 = vrot.slane %v5692_v22, 2  ;;  %v5713_v62 = vrot.slane %v5692_v22, 4  ;;  %v1101_v23 = vadd.f32 %v5633_v55, %v1081_v58  ;;  %v1105_v3 = vmax.f32 %v1089_v59, 0.0  ;;  %v1655_v4 = vld [vmem:[%s8765_s4 + $0xf80] sm:$0xff] }
 0x342   :  { %2303 = vmatpush.msra.mxu1 %v1603_v15  ;;  %3303 = vmatpush.msrb.mxu0 %v1734_v43  ;;  %v5738_v1 = vmax.f32 %v1120_v42, %v1124_v29  ;;  %v1109_v30 = vmax.f32 %v1093_v50, 0.0  ;;  %v1113_v21 = vmax.f32 %v1097_v35, 0.0  ;;  %v1070_v26 = vmul.f32 %v5612_v28, %v1050_v52  ;;  %v1587_v27 = vld [vmem:[%s8765_s4 + $0xd60] sm:$0xff]  ;;  %v1702_v42 = vld [vmem:[%s8765_s4 + $0x10f8] sm:$0xff] }
 0x343   :  { %2219 = vmatmul.f32.vlgmr.msra.gmra.mxu2 %v5710_v9  ;;  %2239 = vmatmul.f32.vlgmr.msra.gmra.mxu3 %v5713_v62  ;;  %v1117_v7 = vmax.f32 %v1101_v23, 0.0  ;;  %v1074_v49 = vmul.f32 %v5612_v28, %v1054_v46  ;;  %v5774_v6 = vrot.slane %v5692_v22, 6  ;;  %v1719_v36 = vld [vmem:[%s8765_s4 + $0x1180] sm:$0xff] }
 0x344   :  { %2304 = vmatpush.msra.mxu1 %v1599_v5  ;;  %2323 = vmatpush.msra.mxu2 %v1667_v8  ;;  %v1121_v45 = vmax.f32 %v1105_v3, %v1109_v30  ;;  %v1090_v10 = vadd.f32 %v5633_v55, %v1070_v26  ;;  %v5791_v17 = vrot.slane %v5738_v1, 2  ;;  %v1651_v2 = vld [vmem:[%s8765_s4 + $0xf60] sm:$0xff]  ;;  %v1698_v5 = vld [vmem:[%s8765_s4 + $0x10d8] sm:$0xff]  ;;  %v5932_v26 = vrot.slane %v5738_v1, 4 }
 0x345   :  { %2343 = vmatpush.msra.mxu3 %v1731_v63  ;;  %3304 = vmatpush.msrb.mxu0 %v1730_v40  ;;  %v1125_v28 = vmax.f32 %v1113_v21, %v1117_v7  ;;  %v1094_v11 = vadd.f32 %v5633_v55, %v1074_v49  ;;  %v1583_v55 = vld [vmem:[%s8765_s4 + $0xd40] sm:$0xff]  ;;  %v1694_v40 = vld [vmem:[%s8765_s4 + $0x10b8] sm:$0xff] }
 0x346   :  { %2305 = vmatpush.msra.mxu1 %v1595_v34  ;;  %2324 = vmatpush.msra.mxu2 %v1663_v60  ;;  %v1106_v32 = vmax.f32 %v1090_v10, 0.0  ;;  %v1715_v14 = vld [vmem:[%s8765_s4 + $0x1160] sm:$0xff]  ;;  %v1690_v34 = vld [vmem:[%s8765_s4 + $0x1098] sm:$0xff] }
 0x347   :  { %2344 = vmatpush.msra.mxu3 %v1727_v37  ;;  %3305 = vmatpush.msrb.mxu0 %v1726_v16  ;;  %v5788_v33 = vmax.f32 %v1121_v45, %v1125_v28  ;;  %v1110_v39 = vmax.f32 %v1094_v11, 0.0  ;;  %v1579_v20 = vld [vmem:[%s8765_s4 + $0xd20] sm:$0xff]  ;;  %v1686_v37 = vld [vmem:[%s8765_s4 + $0x1078] sm:$0xff]  ;;  %v5949_v28 = vrot.slane %v5738_v1, 6 }
 0x348   :  { %2306 = vmatpush.msra.mxu1 %v1591_v13  ;;  %2325 = vmatpush.msra.mxu2 %v1659_v24  ;;  %v1647_v53 = vld [vmem:[%s8765_s4 + $0xf40] sm:$0xff]  ;;  %v1682_v30 = vld [vmem:[%s8765_s4 + $0x1058] sm:$0xff] }
 0x349   :  { %2345 = vmatpush.msra.mxu3 %v1723_v51  ;;  %3306 = vmatpush.msrb.mxu0 %v1722_v41  ;;  %v1122_v61 = vmax.f32 %v1106_v32, %v1110_v39  ;;  %v1711_v0 = vld [vmem:[%s8765_s4 + $0x1140] sm:$0xff]  ;;  %v1678_v21 = vld [vmem:[%s8765_s4 + $0x1038] sm:$0xff] }
 0x34a   :  { %2259 = vmatmul.f32.vlgmr.msrb.gmra.mxu1 %v5774_v6  ;;  %2326 = vmatpush.msra.mxu2 %v1655_v4  ;;  %v1575_v44 = vld [vmem:[%s8765_s4 + $0xd00] sm:$0xff]  ;;  %v1674_v45 = vld [vmem:[%s8765_s4 + $0x1018] sm:$0xff] }
 0x34b   :  { %2307 = vmatpush.msra.mxu1 %v1587_v27  ;;  %2346 = vmatpush.msra.mxu3 %v1719_v36  ;;  %v5821_v18 = vmax.f32 %v1122_v61, %v5674_v54  ;;  %v1643_v15 = vld [vmem:[%s8765_s4 + $0xf20] sm:$0xff]  ;;  %v1706_v54 = vld [vmem:[%s8765_s4 + $0x1118] sm:$0xff] }
 0x34c   :  { %3239 = vmatmul.f32.vlgmr.msra.gmra.mxu0 %v5738_v1  ;;  %2279 = vmatmul.f32.vlgmr.msrb.gmra.mxu2 %v5738_v1  ;;  %v1707_v43 = vld [vmem:[%s8765_s4 + $0x1120] sm:$0xff]  ;;  %v1990_v4 = vld [vmem:[%s8765_s4 + $0x19f8] sm:$0xff] }
 0x34d   :  { %3307 = vmatpush.msrb.mxu0 %v1718_v48  ;;  %2299 = vmatmul.f32.vlgmr.msrb.gmra.mxu3 %v5791_v17  ;;  %v1571_v47 = vld [vmem:[%s8765_s4 + $0xce0] sm:$0xff]  ;;  %v1986_v32 = vld [vmem:[%s8765_s4 + $0x19d8] sm:$0xff] }
 0x34e   :  { %2308 = vmatpush.msra.mxu1 %v1583_v55  ;;  %2327 = vmatpush.msra.mxu2 %v1651_v2  ;;  %v1639_v25 = vld [vmem:[%s8765_s4 + $0xf00] sm:$0xff] }
 0x34f   :  { %2347 = vmatpush.msra.mxu3 %v1715_v14  ;;  %3308 = vmatpush.msrb.mxu0 %v1714_v57  ;;  %v1703_v38 = vld [vmem:[%s8765_s4 + $0x1100] sm:$0xff]  ;;  %v1982_v14 = vld [vmem:[%s8765_s4 + $0x19b8] sm:$0xff] }
 0x350   :  { %2309 = vmatpush.msra.mxu1 %v1579_v20  ;;  %2328 = vmatpush.msra.mxu2 %v1647_v53  ;;  %v1567_v56 = vld [vmem:[%s8765_s4 + $0xcc0] sm:$0xff]  ;;  %v1978_v53 = vld [vmem:[%s8765_s4 + $0x1998] sm:$0xff] }
 0x351   :  { %2348 = vmatpush.msra.mxu3 %v1711_v0  ;;  %3309 = vmatpush.msrb.mxu0 %v1710_v19  ;;  %v1635_v12 = vld [vmem:[%s8765_s4 + $0xee0] sm:$0xff] }
 0x352   :  { %2310 = vmatpush.msra.mxu1 %v1575_v44  ;;  %2329 = vmatpush.msra.mxu2 %v1643_v15  ;;  %v1699_v31 = vld [vmem:[%s8765_s4 + $0x10e0] sm:$0xff]  ;;  %v1974_v15 = vld [vmem:[%s8765_s4 + $0x1978] sm:$0xff] }
 0x353   :  { %2349 = vmatpush.msra.mxu3 %v1707_v43  ;;  %3310 = vmatpush.msrb.mxu0 %v1706_v54  ;;  %v1563_v8 = vld [vmem:[%s8765_s4 + $0xca0] sm:$0xff] }
 0x354   :  { %2311 = vmatpush.msra.mxu1 %v1571_v47  ;;  %2330 = vmatpush.msra.mxu2 %v1639_v25  ;;  %v1631_v29 = vld [vmem:[%s8765_s4 + $0xec0] sm:$0xff]  ;;  %v1970_v25 = vld [vmem:[%s8765_s4 + $0x1958] sm:$0xff] }
 0x355   :  { %2350 = vmatpush.msra.mxu3 %v1703_v38  ;;  %3311 = vmatpush.msrb.mxu0 %v1702_v42  ;;  %v1695_v63 = vld [vmem:[%s8765_s4 + $0x10c0] sm:$0xff] }
 0x356   :  { %2312 = vmatpush.msra.mxu1 %v1567_v56  ;;  %2331 = vmatpush.msra.mxu2 %v1635_v12  ;;  %v1559_v58 = vld [vmem:[%s8765_s4 + $0xc80] sm:$0xff]  ;;  %v1966_v12 = vld [vmem:[%s8765_s4 + $0x1938] sm:$0xff] }
 0x357   :  { %2351 = vmatpush.msra.mxu3 %v1699_v31  ;;  %3312 = vmatpush.msrb.mxu0 %v1698_v5  ;;  %v1627_v59 = vld [vmem:[%s8765_s4 + $0xea0] sm:$0xff] }
 0x358   :  { %2313 = vmatpush.msra.mxu1 %v1563_v8  ;;  %2332 = vmatpush.msra.mxu2 %v1631_v29  ;;  %v1691_v50 = vld [vmem:[%s8765_s4 + $0x10a0] sm:$0xff]  ;;  %v1962_v29 = vld [vmem:[%s8765_s4 + $0x1918] sm:$0xff] }
 0x359   :  { %2352 = vmatpush.msra.mxu3 %v1695_v63  ;;  %3313 = vmatpush.msrb.mxu0 %v1694_v40  ;;  %v1555_v60 = vld [vmem:[%s8765_s4 + $0xc60] sm:$0xff] }
 0x35a   :  { %v1623_v35 = vld [vmem:[%s8765_s4 + $0xe80] sm:$0xff]  ;;  %2314 = vmatpush.msra.mxu1 %v1559_v58  ;;  %2333 = vmatpush.msra.mxu2 %v1627_v59  ;;  %v1958_v59 = vld [vmem:[%s8765_s4 + $0x18f8] sm:$0xff] }
 0x35b   :  { %v1687_v52 = vld [vmem:[%s8765_s4 + $0x1080] sm:$0xff]  ;;  %2353 = vmatpush.msra.mxu3 %v1691_v50  ;;  %3314 = vmatpush.msrb.mxu0 %v1690_v34 }
 0x35c   :  { %v1551_v16 = vld [vmem:[%s8765_s4 + $0xc40] sm:$0xff]  ;;  %2315 = vmatpush.msra.mxu1 %v1555_v60  ;;  %2334 = vmatpush.msra.mxu2 %v1623_v35  ;;  %v1954_v35 = vld [vmem:[%s8765_s4 + $0x18d8] sm:$0xff] }
 0x35d   :  { %v1619_v23 = vld [vmem:[%s8765_s4 + $0xe60] sm:$0xff]  ;;  %2354 = vmatpush.msra.mxu3 %v1687_v52  ;;  %3315 = vmatpush.msrb.mxu0 %v1686_v37 }
 0x35e   :  { %v1683_v3 = vld [vmem:[%s8765_s4 + $0x1060] sm:$0xff]  ;;  %2316 = vmatpush.msra.mxu1 %v1551_v16  ;;  %2335 = vmatpush.msra.mxu2 %v1619_v23  ;;  %v1950_v23 = vld [vmem:[%s8765_s4 + $0x18b8] sm:$0xff] }
 0x35f   :  { %v1547_v46 = vld [vmem:[%s8765_s4 + $0xc20] sm:$0xff]  ;;  %2355 = vmatpush.msra.mxu3 %v1683_v3  ;;  %3316 = vmatpush.msrb.mxu0 %v1682_v30 }
 0x360   :  { %v1615_v13 = vld [vmem:[%s8765_s4 + $0xe40] sm:$0xff]  ;;  %2317 = vmatpush.msra.mxu1 %v1547_v46 }
 0x361   :  { %v1679_v24 = vld [vmem:[%s8765_s4 + $0x1040] sm:$0xff]  ;;  %2336 = vmatpush.msra.mxu2 %v1615_v13  ;;  %3317 = vmatpush.msrb.mxu0 %v1678_v21  ;;  %v1946_v13 = vld [vmem:[%s8765_s4 + $0x1898] sm:$0xff] }
 0x362   :  { %v1543_v51 = vld [vmem:[%s8765_s4 + $0xc00] sm:$0xff]  ;;  %2356 = vmatpush.msra.mxu3 %v1679_v24 }
 0x363   :  { %v1611_v41 = vld [vmem:[%s8765_s4 + $0xe20] sm:$0xff]  ;;  %2318 = vmatpush.msra.mxu1 %v1543_v51  ;;  %3318 = vmatpush.msrb.mxu0 %v1674_v45 }
 0x364   :  { %v1675_v7 = vld [vmem:[%s8765_s4 + $0x1020] sm:$0xff]  ;;  %2337 = vmatpush.msra.mxu2 %v1611_v41  ;;  %2319 = vmatmul.f32.vlgmr.msra.gmra.mxu1 %v5932_v26  ;;  %v1942_v41 = vld [vmem:[%s8765_s4 + $0x1878] sm:$0xff] }
 0x365   :  { %v1795_v49 = vld [vmem:[%s8765_s4 + $0x13e0] sm:$0xff]  ;;  %2357 = vmatpush.msra.mxu3 %v1675_v7  ;;  %3319 = vmatmul.f32.vlgmr.msrb.gmra.mxu0 %v5788_v33 }
 0x366   :  { %v1607_v27 = vld [vmem:[%s8765_s4 + $0xe00] sm:$0xff]  ;;  %2363 = vmatpush.msrb.mxu1 %v1795_v49  ;;  %3383 = vmatpush.msra.mxu0 %v1990_v4  ;;  %v1938_v4 = vld [vmem:[%s8765_s4 + $0x1858] sm:$0xff] }
 0x367   :  { %v1671_v36 = vld [vmem:[%s8765_s4 + $0x1000] sm:$0xff]  ;;  %2338 = vmatpush.msra.mxu2 %v1607_v27 }
 0x368   :  { %v1791_v10 = vld [vmem:[%s8765_s4 + $0x13c0] sm:$0xff]  ;;  %2358 = vmatpush.msra.mxu3 %v1671_v36  ;;  %2339 = vmatmul.f32.vlgmr.msra.gmra.mxu2 %v5949_v28 }
 0x369   :  { %v1859_v11 = vld [vmem:[%s8765_s4 + $0x15e0] sm:$0xff]  ;;  %2359 = vmatmul.f32.vlgmr.msra.gmra.mxu3 %v5788_v33  ;;  %2364 = vmatpush.msrb.mxu1 %v1791_v10 }
 0x36a   :  { %v1923_v48 = vld [vmem:[%s8765_s4 + $0x17e0] sm:$0xff]  ;;  %2383 = vmatpush.msrb.mxu2 %v1859_v11  ;;  %3384 = vmatpush.msra.mxu0 %v1986_v32  ;;  %v1934_v11 = vld [vmem:[%s8765_s4 + $0x1838] sm:$0xff] }
 0x36b   :  { %v1787_v39 = vld [vmem:[%s8765_s4 + $0x13a0] sm:$0xff]  ;;  %2403 = vmatpush.msrb.mxu3 %v1923_v48 }
 0x36c   :  { %v1855_v55 = vld [vmem:[%s8765_s4 + $0x15c0] sm:$0xff]  ;;  %2365 = vmatpush.msrb.mxu1 %v1787_v39  ;;  %3385 = vmatpush.msra.mxu0 %v1982_v14 }
 0x36d   :  { %v1919_v2 = vld [vmem:[%s8765_s4 + $0x17c0] sm:$0xff]  ;;  %2384 = vmatpush.msrb.mxu2 %v1855_v55  ;;  %v1930_v55 = vld [vmem:[%s8765_s4 + $0x1818] sm:$0xff] }
 0x36e   :  { %v1783_v57 = vld [vmem:[%s8765_s4 + $0x1380] sm:$0xff]  ;;  %2404 = vmatpush.msrb.mxu3 %v1919_v2  ;;  %3386 = vmatpush.msra.mxu0 %v1978_v53  ;;  %v6134_v2 = vrot.slane %v5788_v33, 2 }
 0x36f   :  { %v1851_v61 = vld [vmem:[%s8765_s4 + $0x15a0] sm:$0xff]  ;;  %2366 = vmatpush.msrb.mxu1 %v1783_v57 }
 0x370   :  { %v1915_v20 = vld [vmem:[%s8765_s4 + $0x17a0] sm:$0xff]  ;;  %2385 = vmatpush.msrb.mxu2 %v1851_v61  ;;  %3387 = vmatpush.msra.mxu0 %v1974_v15 }
 0x371   :  { %v1779_v0 = vld [vmem:[%s8765_s4 + $0x1360] sm:$0xff]  ;;  %2405 = vmatpush.msrb.mxu3 %v1915_v20  ;;  %v6148_v20 = vrot.slane %v5788_v33, 4 }
 0x372   :  { %v1847_v19 = vld [vmem:[%s8765_s4 + $0x1580] sm:$0xff]  ;;  %2367 = vmatpush.msrb.mxu1 %v1779_v0  ;;  %3388 = vmatpush.msra.mxu0 %v1970_v25  ;;  %v6154_v0 = vrot.slane %v5788_v33, 6 }
 0x373   :  { %v1911_v44 = vld [vmem:[%s8765_s4 + $0x1780] sm:$0xff]  ;;  %2386 = vmatpush.msrb.mxu2 %v1847_v19 }
 0x374   :  { %v1775_v43 = vld [vmem:[%s8765_s4 + $0x1340] sm:$0xff]  ;;  %2406 = vmatpush.msrb.mxu3 %v1911_v44  ;;  %3389 = vmatpush.msra.mxu0 %v1966_v12 }
 0x375   :  { %v1843_v54 = vld [vmem:[%s8765_s4 + $0x1560] sm:$0xff]  ;;  %2368 = vmatpush.msrb.mxu1 %v1775_v43 }
 0x376   :  { %v1907_v47 = vld [vmem:[%s8765_s4 + $0x1760] sm:$0xff]  ;;  %2387 = vmatpush.msrb.mxu2 %v1843_v54  ;;  %3390 = vmatpush.msra.mxu0 %v1962_v29 }
 0x377   :  { %v1771_v38 = vld [vmem:[%s8765_s4 + $0x1320] sm:$0xff]  ;;  %2407 = vmatpush.msrb.mxu3 %v1907_v47 }
 0x378   :  { %v1839_v42 = vld [vmem:[%s8765_s4 + $0x1540] sm:$0xff]  ;;  %2369 = vmatpush.msrb.mxu1 %v1771_v38  ;;  %3391 = vmatpush.msra.mxu0 %v1958_v59 }
 0x379   :  { %v1903_v56 = vld [vmem:[%s8765_s4 + $0x1740] sm:$0xff]  ;;  %2388 = vmatpush.msrb.mxu2 %v1839_v42 }
 0x37a   :  { %v1767_v31 = vld [vmem:[%s8765_s4 + $0x1300] sm:$0xff]  ;;  %2408 = vmatpush.msrb.mxu3 %v1903_v56  ;;  %3392 = vmatpush.msra.mxu0 %v1954_v35 }
 0x37b   :  { %v1835_v5 = vld [vmem:[%s8765_s4 + $0x1520] sm:$0xff]  ;;  %2370 = vmatpush.msrb.mxu1 %v1767_v31 }
 0x37c   :  { %v1899_v8 = vld [vmem:[%s8765_s4 + $0x1720] sm:$0xff]  ;;  %2389 = vmatpush.msrb.mxu2 %v1835_v5  ;;  %3393 = vmatpush.msra.mxu0 %v1950_v23 }
 0x37d   :  { %v1763_v63 = vld [vmem:[%s8765_s4 + $0x12e0] sm:$0xff]  ;;  %2409 = vmatpush.msrb.mxu3 %v1899_v8 }
 0x37e   :  { %v1831_v40 = vld [vmem:[%s8765_s4 + $0x1500] sm:$0xff]  ;;  %2371 = vmatpush.msrb.mxu1 %v1763_v63  ;;  %3394 = vmatpush.msra.mxu0 %v1946_v13 }
 0x37f   :  { %v1895_v58 = vld [vmem:[%s8765_s4 + $0x1700] sm:$0xff]  ;;  %2390 = vmatpush.msrb.mxu2 %v1831_v40 }
 0x380   :  { %v1759_v50 = vld [vmem:[%s8765_s4 + $0x12c0] sm:$0xff]  ;;  %2410 = vmatpush.msrb.mxu3 %v1895_v58  ;;  %3395 = vmatpush.msra.mxu0 %v1942_v41 }
 0x381   :  { %v1827_v34 = vld [vmem:[%s8765_s4 + $0x14e0] sm:$0xff]  ;;  %2372 = vmatpush.msrb.mxu1 %v1759_v50 }
 0x382   :  { %v1891_v60 = vld [vmem:[%s8765_s4 + $0x16e0] sm:$0xff]  ;;  %2391 = vmatpush.msrb.mxu2 %v1827_v34  ;;  %3396 = vmatpush.msra.mxu0 %v1938_v4 }
 0x383   :  { %v1755_v52 = vld [vmem:[%s8765_s4 + $0x12a0] sm:$0xff]  ;;  %2411 = vmatpush.msrb.mxu3 %v1891_v60 }
 0x384   :  { %v1823_v37 = vld [vmem:[%s8765_s4 + $0x14c0] sm:$0xff]  ;;  %2373 = vmatpush.msrb.mxu1 %v1755_v52  ;;  %3397 = vmatpush.msra.mxu0 %v1934_v11 }
 0x385   :  { %v1887_v16 = vld [vmem:[%s8765_s4 + $0x16c0] sm:$0xff]  ;;  %2392 = vmatpush.msrb.mxu2 %v1823_v37 }
 0x386   :  { %v1751_v3 = vld [vmem:[%s8765_s4 + $0x1280] sm:$0xff]  ;;  %2412 = vmatpush.msrb.mxu3 %v1887_v16  ;;  %3398 = vmatpush.msra.mxu0 %v1930_v55 }
 0x387   :  { %v1819_v30 = vld [vmem:[%s8765_s4 + $0x14a0] sm:$0xff]  ;;  %2374 = vmatpush.msrb.mxu1 %v1751_v3  ;;  %3399 = vmatmul.f32.vlgmr.msra.gmra.mxu0 %v5821_v18 }
 0x388   :  { %v1883_v46 = vld [vmem:[%s8765_s4 + $0x16a0] sm:$0xff]  ;;  %2393 = vmatpush.msrb.mxu2 %v1819_v30 }
 0x389   :  { %v1747_v24 = vld [vmem:[%s8765_s4 + $0x1260] sm:$0xff]  ;;  %2413 = vmatpush.msrb.mxu3 %v1883_v46 }
 0x38a   :  { %v1815_v21 = vld [vmem:[%s8765_s4 + $0x1480] sm:$0xff]  ;;  %2375 = vmatpush.msrb.mxu1 %v1747_v24 }
 0x38b   :  { %v1879_v51 = vld [vmem:[%s8765_s4 + $0x1680] sm:$0xff]  ;;  %2394 = vmatpush.msrb.mxu2 %v1815_v21 }
 0x38c   :  { %v1743_v7 = vld [vmem:[%s8765_s4 + $0x1240] sm:$0xff]  ;;  %2414 = vmatpush.msrb.mxu3 %v1879_v51 }
 0x38d   :  { %v1811_v45 = vld [vmem:[%s8765_s4 + $0x1460] sm:$0xff]  ;;  %2376 = vmatpush.msrb.mxu1 %v1743_v7 }
 0x38e   :  { %v1875_v49 = vld [vmem:[%s8765_s4 + $0x1660] sm:$0xff]  ;;  %2395 = vmatpush.msrb.mxu2 %v1811_v45 }
 0x38f   :  { %v1739_v27 = vld [vmem:[%s8765_s4 + $0x1220] sm:$0xff]  ;;  %2415 = vmatpush.msrb.mxu3 %v1875_v49 }
 0x390   :  { %v1807_v36 = vld [vmem:[%s8765_s4 + $0x1440] sm:$0xff]  ;;  %2377 = vmatpush.msrb.mxu1 %v1739_v27 }
 0x391   :  { %v1871_v10 = vld [vmem:[%s8765_s4 + $0x1640] sm:$0xff]  ;;  %2396 = vmatpush.msrb.mxu2 %v1807_v36 }
 0x392   :  { %v1735_v48 = vld [vmem:[%s8765_s4 + $0x1200] sm:$0xff]  ;;  %2416 = vmatpush.msrb.mxu3 %v1871_v10 }
 0x393   :  { %v1803_v32 = vld [vmem:[%s8765_s4 + $0x1420] sm:$0xff]  ;;  %2378 = vmatpush.msrb.mxu1 %v1735_v48 }
 0x394   :  { %v1867_v39 = vld [vmem:[%s8765_s4 + $0x1620] sm:$0xff]  ;;  %2397 = vmatpush.msrb.mxu2 %v1803_v32  ;;  %2379 = vmatmul.f32.vlgmr.msrb.gmra.mxu1 %v6134_v2 }
 0x395   :  { %v1987_v14 = vld [vmem:[%s8765_s4 + $0x19e0] sm:$0xff]  ;;  %2417 = vmatpush.msrb.mxu3 %v1867_v39 }
 0x396   :  { %v1799_v57 = vld [vmem:[%s8765_s4 + $0x1400] sm:$0xff]  ;;  %2423 = vmatpush.msra.mxu1 %v1987_v14  ;;  %v6301_v14 = vrot.slane %v5821_v18, 2 }
 0x397   :  { %v1863_v61 = vld [vmem:[%s8765_s4 + $0x1600] sm:$0xff]  ;;  %2398 = vmatpush.msrb.mxu2 %v1799_v57 }
 0x398   :  { %v1983_v53 = vld [vmem:[%s8765_s4 + $0x19c0] sm:$0xff]  ;;  %2418 = vmatpush.msrb.mxu3 %v1863_v61  ;;  %2399 = vmatmul.f32.vlgmr.msrb.gmra.mxu2 %v6148_v20  ;;  %v6307_v61 = vrot.slane %v5821_v18, 4 }
 0x399   :  { %v2051_v19 = vld [vmem:[%s8765_s4 + $0x1be0] sm:$0xff]  ;;  %2419 = vmatmul.f32.vlgmr.msrb.gmra.mxu3 %v6154_v0  ;;  %2424 = vmatpush.msra.mxu1 %v1983_v53  ;;  %v1220_v53 = vld [vmem:[%s8765_s4 + $0x1e8] sm:$0xff] }
 0x39a   :  { %v2115_v44 = vld [vmem:[%s8765_s4 + $0x1de0] sm:$0xff]  ;;  %2443 = vmatpush.msra.mxu2 %v2051_v19  ;;  %v1284_v19 = vld [vmem:[%s8765_s4 + $0x3e8] sm:$0xff] }
 0x39b   :  { %v1979_v15 = vld [vmem:[%s8765_s4 + $0x19a0] sm:$0xff]  ;;  %2463 = vmatpush.msra.mxu3 %v2115_v44 }
 0x39c   :  { %v2047_v43 = vld [vmem:[%s8765_s4 + $0x1bc0] sm:$0xff]  ;;  %2425 = vmatpush.msra.mxu1 %v1979_v15  ;;  %v1216_v15 = vld [vmem:[%s8765_s4 + $0x1c8] sm:$0xff] }
 0x39d   :  { %v2111_v54 = vld [vmem:[%s8765_s4 + $0x1dc0] sm:$0xff]  ;;  %2444 = vmatpush.msra.mxu2 %v2047_v43  ;;  %v1280_v43 = vld [vmem:[%s8765_s4 + $0x3c8] sm:$0xff] }
 0x39e   :  { %v1975_v47 = vld [vmem:[%s8765_s4 + $0x1980] sm:$0xff]  ;;  %2464 = vmatpush.msra.mxu3 %v2111_v54 }
 0x39f   :  { %v2043_v25 = vld [vmem:[%s8765_s4 + $0x1ba0] sm:$0xff]  ;;  %2426 = vmatpush.msra.mxu1 %v1975_v47  ;;  %v1212_v47 = vld [vmem:[%s8765_s4 + $0x1a8] sm:$0xff] }
 0x3a0   :  { %v2107_v38 = vld [vmem:[%s8765_s4 + $0x1da0] sm:$0xff]  ;;  %2445 = vmatpush.msra.mxu2 %v2043_v25  ;;  %v1276_v25 = vld [vmem:[%s8765_s4 + $0x3a8] sm:$0xff] }
 0x3a1   :  { %v1971_v42 = vld [vmem:[%s8765_s4 + $0x1960] sm:$0xff]  ;;  %2465 = vmatpush.msra.mxu3 %v2107_v38 }
 0x3a2   :  { %v2039_v56 = vld [vmem:[%s8765_s4 + $0x1b80] sm:$0xff]  ;;  %2427 = vmatpush.msra.mxu1 %v1971_v42  ;;  %v1208_v42 = vld [vmem:[%s8765_s4 + $0x188] sm:$0xff] }
 0x3a3   :  { %v2103_v12 = vld [vmem:[%s8765_s4 + $0x1d80] sm:$0xff]  ;;  %2446 = vmatpush.msra.mxu2 %v2039_v56  ;;  %v1272_v56 = vld [vmem:[%s8765_s4 + $0x388] sm:$0xff] }
 0x3a4   :  { %v1967_v31 = vld [vmem:[%s8765_s4 + $0x1940] sm:$0xff]  ;;  %2466 = vmatpush.msra.mxu3 %v2103_v12 }
 0x3a5   :  { %v2035_v5 = vld [vmem:[%s8765_s4 + $0x1b60] sm:$0xff]  ;;  %2428 = vmatpush.msra.mxu1 %v1967_v31  ;;  %v1204_v31 = vld [vmem:[%s8765_s4 + $0x168] sm:$0xff] }
 0x3a6   :  { %v2099_v8 = vld [vmem:[%s8765_s4 + $0x1d60] sm:$0xff]  ;;  %2447 = vmatpush.msra.mxu2 %v2035_v5  ;;  %v1268_v5 = vld [vmem:[%s8765_s4 + $0x368] sm:$0xff] }
 0x3a7   :  { %v1963_v29 = vld [vmem:[%s8765_s4 + $0x1920] sm:$0xff]  ;;  %2467 = vmatpush.msra.mxu3 %v2099_v8 }
 0x3a8   :  { %v2031_v63 = vld [vmem:[%s8765_s4 + $0x1b40] sm:$0xff]  ;;  %2429 = vmatpush.msra.mxu1 %v1963_v29  ;;  %v1200_v29 = vld [vmem:[%s8765_s4 + $0x148] sm:$0xff] }
 0x3a9   :  { %v2095_v40 = vld [vmem:[%s8765_s4 + $0x1d40] sm:$0xff]  ;;  %2448 = vmatpush.msra.mxu2 %v2031_v63  ;;  %v1264_v63 = vld [vmem:[%s8765_s4 + $0x348] sm:$0xff] }
 0x3aa   :  { %v1959_v58 = vld [vmem:[%s8765_s4 + $0x1900] sm:$0xff]  ;;  %2468 = vmatpush.msra.mxu3 %v2095_v40 }
 0x3ab   :  { %v2027_v59 = vld [vmem:[%s8765_s4 + $0x1b20] sm:$0xff]  ;;  %2430 = vmatpush.msra.mxu1 %v1959_v58  ;;  %v1196_v58 = vld [vmem:[%s8765_s4 + $0x128] sm:$0xff] }
 0x3ac   :  { %v2091_v50 = vld [vmem:[%s8765_s4 + $0x1d20] sm:$0xff]  ;;  %2449 = vmatpush.msra.mxu2 %v2027_v59  ;;  %v1260_v59 = vld [vmem:[%s8765_s4 + $0x328] sm:$0xff] }
 0x3ad   :  { %v1955_v34 = vld [vmem:[%s8765_s4 + $0x18e0] sm:$0xff]  ;;  %2469 = vmatpush.msra.mxu3 %v2091_v50 }
 0x3ae   :  { %v2023_v60 = vld [vmem:[%s8765_s4 + $0x1b00] sm:$0xff]  ;;  %2431 = vmatpush.msra.mxu1 %v1955_v34  ;;  %v1192_v34 = vld [vmem:[%s8765_s4 + $0x108] sm:$0xff] }
 0x3af   :  { %v2087_v35 = vld [vmem:[%s8765_s4 + $0x1d00] sm:$0xff]  ;;  %2450 = vmatpush.msra.mxu2 %v2023_v60  ;;  %v1256_v60 = vld [vmem:[%s8765_s4 + $0x308] sm:$0xff] }
 0x3b0   :  { %v1951_v52 = vld [vmem:[%s8765_s4 + $0x18c0] sm:$0xff]  ;;  %2470 = vmatpush.msra.mxu3 %v2087_v35 }
 0x3b1   :  { %v2019_v37 = vld [vmem:[%s8765_s4 + $0x1ae0] sm:$0xff]  ;;  %2432 = vmatpush.msra.mxu1 %v1951_v52  ;;  %v1188_v52 = vld [vmem:[%s8765_s4 + $0xe8] sm:$0xff] }
 0x3b2   :  { %v2083_v16 = vld [vmem:[%s8765_s4 + $0x1ce0] sm:$0xff]  ;;  %2451 = vmatpush.msra.mxu2 %v2019_v37  ;;  %v1252_v37 = vld [vmem:[%s8765_s4 + $0x2e8] sm:$0xff] }
 0x3b3   :  { %v1947_v23 = vld [vmem:[%s8765_s4 + $0x18a0] sm:$0xff]  ;;  %2471 = vmatpush.msra.mxu3 %v2083_v16 }
 0x3b4   :  { %v2015_v3 = vld [vmem:[%s8765_s4 + $0x1ac0] sm:$0xff]  ;;  %2433 = vmatpush.msra.mxu1 %v1947_v23  ;;  %v1184_v23 = vld [vmem:[%s8765_s4 + $0xc8] sm:$0xff] }
 0x3b5   :  { %v2079_v30 = vld [vmem:[%s8765_s4 + $0x1cc0] sm:$0xff]  ;;  %2452 = vmatpush.msra.mxu2 %v2015_v3  ;;  %v1248_v3 = vld [vmem:[%s8765_s4 + $0x2c8] sm:$0xff] }
 0x3b6   :  { %v1943_v46 = vld [vmem:[%s8765_s4 + $0x1880] sm:$0xff]  ;;  %2472 = vmatpush.msra.mxu3 %v2079_v30 }
 0x3b7   :  { %v2011_v13 = vld [vmem:[%s8765_s4 + $0x1aa0] sm:$0xff]  ;;  %2434 = vmatpush.msra.mxu1 %v1943_v46  ;;  %v1180_v46 = vld [vmem:[%s8765_s4 + $0xa8] sm:$0xff] }
 0x3b8   :  { %v2075_v24 = vld [vmem:[%s8765_s4 + $0x1ca0] sm:$0xff]  ;;  %2453 = vmatpush.msra.mxu2 %v2011_v13  ;;  %v1244_v13 = vld [vmem:[%s8765_s4 + $0x2a8] sm:$0xff] }
 0x3b9   :  { %v1939_v21 = vld [vmem:[%s8765_s4 + $0x1860] sm:$0xff]  ;;  %2473 = vmatpush.msra.mxu3 %v2075_v24 }
 0x3ba   :  { %v2007_v51 = vld [vmem:[%s8765_s4 + $0x1a80] sm:$0xff]  ;;  %2435 = vmatpush.msra.mxu1 %v1939_v21  ;;  %v1176_v21 = vld [vmem:[%s8765_s4 + $0x88] sm:$0xff] }
 0x3bb   :  { %v2071_v41 = vld [vmem:[%s8765_s4 + $0x1c80] sm:$0xff]  ;;  %2454 = vmatpush.msra.mxu2 %v2007_v51  ;;  %v1240_v51 = vld [vmem:[%s8765_s4 + $0x288] sm:$0xff] }
 0x3bc   :  { %v1935_v7 = vld [vmem:[%s8765_s4 + $0x1840] sm:$0xff]  ;;  %2474 = vmatpush.msra.mxu3 %v2071_v41 }
 0x3bd   :  { %v2003_v45 = vld [vmem:[%s8765_s4 + $0x1a60] sm:$0xff]  ;;  %2436 = vmatpush.msra.mxu1 %v1935_v7  ;;  %v1172_v7 = vld [vmem:[%s8765_s4 + $0x68] sm:$0xff] }
 0x3be   :  { %v2067_v49 = vld [vmem:[%s8765_s4 + $0x1c60] sm:$0xff]  ;;  %2455 = vmatpush.msra.mxu2 %v2003_v45  ;;  %v1236_v45 = vld [vmem:[%s8765_s4 + $0x268] sm:$0xff] }
 0x3bf   :  { %v1931_v4 = vld [vmem:[%s8765_s4 + $0x1820] sm:$0xff]  ;;  %2475 = vmatpush.msra.mxu3 %v2067_v49 }
 0x3c0   :  { %v1999_v27 = vld [vmem:[%s8765_s4 + $0x1a40] sm:$0xff]  ;;  %2437 = vmatpush.msra.mxu1 %v1931_v4  ;;  %v1168_v4 = vld [vmem:[%s8765_s4 + $0x48] sm:$0xff] }
 0x3c1   :  { %v2063_v36 = vld [vmem:[%s8765_s4 + $0x1c40] sm:$0xff]  ;;  %2456 = vmatpush.msra.mxu2 %v1999_v27  ;;  %v1232_v27 = vld [vmem:[%s8765_s4 + $0x248] sm:$0xff] }
 0x3c2   :  { %v1927_v10 = vld [vmem:[%s8765_s4 + $0x1800] sm:$0xff]  ;;  %2476 = vmatpush.msra.mxu3 %v2063_v36 }
 0x3c3   :  { %v1995_v11 = vld [vmem:[%s8765_s4 + $0x1a20] sm:$0xff]  ;;  %2438 = vmatpush.msra.mxu1 %v1927_v10  ;;  %v1164_v10 = vld [vmem:[%s8765_s4 + $0x28] sm:$0xff] }
 0x3c4   :  { %v2059_v48 = vld [vmem:[%s8765_s4 + $0x1c20] sm:$0xff]  ;;  %2457 = vmatpush.msra.mxu2 %v1995_v11  ;;  %2439 = vmatmul.f32.vlgmr.msra.gmra.mxu1 %v5821_v18  ;;  %v1228_v11 = vld [vmem:[%s8765_s4 + $0x228] sm:$0xff] }
 0x3c5   :  { %v2179_v32 = vld [vmem:[%s8765_s4 + $0x1fe0] sm:$0xff]  ;;  %2477 = vmatpush.msra.mxu3 %v2059_v48  ;;  %v6444_v48 = vrot.slane %v5821_v18, 6 }
 0x3c6   :  { %v1991_v39 = vld [vmem:[%s8765_s4 + $0x1a00] sm:$0xff]  ;;  %2483 = vmatpush.msrb.mxu1 %v2179_v32  ;;  %v1348_v32 = vld [vmem:[%s8765_s4 + $0x5e8] sm:$0xff] }
 0x3c7   :  { %v2055_v55 = vld [vmem:[%s8765_s4 + $0x1c00] sm:$0xff]  ;;  %2458 = vmatpush.msra.mxu2 %v1991_v39  ;;  %v1160_v39 = vld [vmem:[%s8765_s4 + $0x8] sm:$0xff] }
 0x3c8   :  { %v2175_v57 = vld [vmem:[%s8765_s4 + $0x1fc0] sm:$0xff]  ;;  %2478 = vmatpush.msra.mxu3 %v2055_v55  ;;  %2459 = vmatmul.f32.vlgmr.msra.gmra.mxu2 %v6301_v14  ;;  %v1224_v55 = vld [vmem:[%s8765_s4 + $0x208] sm:$0xff] }
 0x3c9   :  { %v2171_v44 = vld [vmem:[%s8765_s4 + $0x1fa0] sm:$0xff]  ;;  %2479 = vmatmul.f32.vlgmr.msra.gmra.mxu3 %v6307_v61  ;;  %2484 = vmatpush.msrb.mxu1 %v2175_v57  ;;  %v1344_v57 = vld [vmem:[%s8765_s4 + $0x5c8] sm:$0xff] }
 0x3ca   :  { %2503 = vmatpush.msrb.mxu2 %v1220_v53  ;;  %2523 = vmatpush.msrb.mxu3 %v1284_v19  ;;  %v2167_v54 = vld [vmem:[%s8765_s4 + $0x1f80] sm:$0xff]  ;;  %v1412_v53 = vld [vmem:[%s8765_s4 + $0x7e8] sm:$0xff] }
 0x3cb   :  { %2485 = vmatpush.msrb.mxu1 %v2171_v44  ;;  %v2163_v38 = vld [vmem:[%s8765_s4 + $0x1f60] sm:$0xff]  ;;  %v1476_v19 = vld [vmem:[%s8765_s4 + $0x9e8] sm:$0xff] }
 0x3cc   :  { %2504 = vmatpush.msrb.mxu2 %v1216_v15  ;;  %2524 = vmatpush.msrb.mxu3 %v1280_v43  ;;  %v2159_v12 = vld [vmem:[%s8765_s4 + $0x1f40] sm:$0xff]  ;;  %v1340_v44 = vld [vmem:[%s8765_s4 + $0x5a8] sm:$0xff] }
 0x3cd   :  { %2486 = vmatpush.msrb.mxu1 %v2167_v54  ;;  %v2155_v8 = vld [vmem:[%s8765_s4 + $0x1f20] sm:$0xff]  ;;  %v1408_v15 = vld [vmem:[%s8765_s4 + $0x7c8] sm:$0xff] }
 0x3ce   :  { %2505 = vmatpush.msrb.mxu2 %v1212_v47  ;;  %2525 = vmatpush.msrb.mxu3 %v1276_v25  ;;  %v2151_v40 = vld [vmem:[%s8765_s4 + $0x1f00] sm:$0xff]  ;;  %v1472_v43 = vld [vmem:[%s8765_s4 + $0x9c8] sm:$0xff] }
 0x3cf   :  { %2487 = vmatpush.msrb.mxu1 %v2163_v38  ;;  %v2147_v50 = vld [vmem:[%s8765_s4 + $0x1ee0] sm:$0xff]  ;;  %v1336_v54 = vld [vmem:[%s8765_s4 + $0x588] sm:$0xff] }
 0x3d0   :  { %2506 = vmatpush.msrb.mxu2 %v1208_v42  ;;  %2526 = vmatpush.msrb.mxu3 %v1272_v56  ;;  %v2143_v35 = vld [vmem:[%s8765_s4 + $0x1ec0] sm:$0xff]  ;;  %v1404_v47 = vld [vmem:[%s8765_s4 + $0x7a8] sm:$0xff] }
 0x3d1   :  { %2488 = vmatpush.msrb.mxu1 %v2159_v12  ;;  %v2139_v16 = vld [vmem:[%s8765_s4 + $0x1ea0] sm:$0xff]  ;;  %v1468_v25 = vld [vmem:[%s8765_s4 + $0x9a8] sm:$0xff] }
 0x3d2   :  { %2507 = vmatpush.msrb.mxu2 %v1204_v31  ;;  %2527 = vmatpush.msrb.mxu3 %v1268_v5  ;;  %v2135_v30 = vld [vmem:[%s8765_s4 + $0x1e80] sm:$0xff]  ;;  %v1332_v38 = vld [vmem:[%s8765_s4 + $0x568] sm:$0xff] }
 0x3d3   :  { %2489 = vmatpush.msrb.mxu1 %v2155_v8  ;;  %v2131_v24 = vld [vmem:[%s8765_s4 + $0x1e60] sm:$0xff]  ;;  %v1400_v42 = vld [vmem:[%s8765_s4 + $0x788] sm:$0xff] }
 0x3d4   :  { %2508 = vmatpush.msrb.mxu2 %v1200_v29  ;;  %2528 = vmatpush.msrb.mxu3 %v1264_v63  ;;  %v2127_v41 = vld [vmem:[%s8765_s4 + $0x1e40] sm:$0xff]  ;;  %v1464_v56 = vld [vmem:[%s8765_s4 + $0x988] sm:$0xff] }
 0x3d5   :  { %2490 = vmatpush.msrb.mxu1 %v2151_v40  ;;  %v2123_v49 = vld [vmem:[%s8765_s4 + $0x1e20] sm:$0xff]  ;;  %v1328_v12 = vld [vmem:[%s8765_s4 + $0x548] sm:$0xff] }
 0x3d6   :  { %2509 = vmatpush.msrb.mxu2 %v1196_v58  ;;  %2529 = vmatpush.msrb.mxu3 %v1260_v59  ;;  %v2119_v36 = vld [vmem:[%s8765_s4 + $0x1e00] sm:$0xff]  ;;  %v1396_v31 = vld [vmem:[%s8765_s4 + $0x768] sm:$0xff] }
 0x3d7   :  { %2491 = vmatpush.msrb.mxu1 %v2147_v50  ;;  %v1460_v5 = vld [vmem:[%s8765_s4 + $0x968] sm:$0xff] }
 0x3d8   :  { %2510 = vmatpush.msrb.mxu2 %v1192_v34  ;;  %2530 = vmatpush.msrb.mxu3 %v1256_v60  ;;  %v1324_v8 = vld [vmem:[%s8765_s4 + $0x528] sm:$0xff] }
 0x3d9   :  { %2492 = vmatpush.msrb.mxu1 %v2143_v35  ;;  %v1392_v29 = vld [vmem:[%s8765_s4 + $0x748] sm:$0xff] }
 0x3da   :  { %2511 = vmatpush.msrb.mxu2 %v1188_v52  ;;  %2531 = vmatpush.msrb.mxu3 %v1252_v37  ;;  %v1456_v63 = vld [vmem:[%s8765_s4 + $0x948] sm:$0xff] }
 0x3db   :  { %2493 = vmatpush.msrb.mxu1 %v2139_v16  ;;  %v1320_v40 = vld [vmem:[%s8765_s4 + $0x508] sm:$0xff] }
 0x3dc   :  { %2512 = vmatpush.msrb.mxu2 %v1184_v23  ;;  %2532 = vmatpush.msrb.mxu3 %v1248_v3  ;;  %v1388_v58 = vld [vmem:[%s8765_s4 + $0x728] sm:$0xff] }
 0x3dd   :  { %2494 = vmatpush.msrb.mxu1 %v2135_v30  ;;  %v1452_v59 = vld [vmem:[%s8765_s4 + $0x928] sm:$0xff] }
 0x3de   :  { %2513 = vmatpush.msrb.mxu2 %v1180_v46  ;;  %2533 = vmatpush.msrb.mxu3 %v1244_v13  ;;  %v1316_v50 = vld [vmem:[%s8765_s4 + $0x4e8] sm:$0xff] }
 0x3df   :  { %2495 = vmatpush.msrb.mxu1 %v2131_v24  ;;  %v1384_v34 = vld [vmem:[%s8765_s4 + $0x708] sm:$0xff] }
 0x3e0   :  { %2514 = vmatpush.msrb.mxu2 %v1176_v21  ;;  %2534 = vmatpush.msrb.mxu3 %v1240_v51  ;;  %v1448_v60 = vld [vmem:[%s8765_s4 + $0x908] sm:$0xff] }
 0x3e1   :  { %2496 = vmatpush.msrb.mxu1 %v2127_v41  ;;  %v1312_v35 = vld [vmem:[%s8765_s4 + $0x4c8] sm:$0xff] }
 0x3e2   :  { %2515 = vmatpush.msrb.mxu2 %v1172_v7  ;;  %2535 = vmatpush.msrb.mxu3 %v1236_v45  ;;  %v1380_v52 = vld [vmem:[%s8765_s4 + $0x6e8] sm:$0xff] }
 0x3e3   :  { %2497 = vmatpush.msrb.mxu1 %v2123_v49  ;;  %v1444_v37 = vld [vmem:[%s8765_s4 + $0x8e8] sm:$0xff] }
 0x3e4   :  { %2516 = vmatpush.msrb.mxu2 %v1168_v4  ;;  %2536 = vmatpush.msrb.mxu3 %v1232_v27  ;;  %v1308_v16 = vld [vmem:[%s8765_s4 + $0x4a8] sm:$0xff] }
 0x3e5   :  { %2498 = vmatpush.msrb.mxu1 %v2119_v36  ;;  %v1376_v23 = vld [vmem:[%s8765_s4 + $0x6c8] sm:$0xff] }
 0x3e6   :  { %2517 = vmatpush.msrb.mxu2 %v1164_v10  ;;  %2537 = vmatpush.msrb.mxu3 %v1228_v11  ;;  %v1440_v3 = vld [vmem:[%s8765_s4 + $0x8c8] sm:$0xff] }
 0x3e7   :  { %2499 = vmatmul.f32.vlgmr.msrb.gmra.mxu1 %v6444_v48  ;;  %v1304_v30 = vld [vmem:[%s8765_s4 + $0x488] sm:$0xff] }
 0x3e8   :  { %2543 = vmatpush.msra.mxu1 %v1348_v32  ;;  %2518 = vmatpush.msrb.mxu2 %v1160_v39  ;;  %v1372_v46 = vld [vmem:[%s8765_s4 + $0x6a8] sm:$0xff] }
 0x3e9   :  { %2538 = vmatpush.msrb.mxu3 %v1224_v55  ;;  %2519 = vmatmul.f32.vlgmr.msrb.gmra.mxu2 %v5692_v22  ;;  %v1436_v13 = vld [vmem:[%s8765_s4 + $0x8a8] sm:$0xff] }
 0x3ea   :  { %2539 = vmatmul.f32.vlgmr.msrb.gmra.mxu3 %v5710_v9  ;;  %2544 = vmatpush.msra.mxu1 %v1344_v57  ;;  %v1300_v24 = vld [vmem:[%s8765_s4 + $0x468] sm:$0xff] }
 0x3eb   :  { %2563 = vmatpush.msra.mxu2 %v1412_v53  ;;  %2583 = vmatpush.msra.mxu3 %v1476_v19  ;;  %v1368_v21 = vld [vmem:[%s8765_s4 + $0x688] sm:$0xff] }
 0x3ec   :  { %2545 = vmatpush.msra.mxu1 %v1340_v44  ;;  %v1432_v51 = vld [vmem:[%s8765_s4 + $0x888] sm:$0xff] }
 0x3ed   :  { %2564 = vmatpush.msra.mxu2 %v1408_v15  ;;  %2584 = vmatpush.msra.mxu3 %v1472_v43  ;;  %v1296_v41 = vld [vmem:[%s8765_s4 + $0x448] sm:$0xff] }
 0x3ee   :  { %2546 = vmatpush.msra.mxu1 %v1336_v54  ;;  %v1364_v7 = vld [vmem:[%s8765_s4 + $0x668] sm:$0xff] }
 0x3ef   :  { %2565 = vmatpush.msra.mxu2 %v1404_v47  ;;  %2585 = vmatpush.msra.mxu3 %v1468_v25  ;;  %v1428_v45 = vld [vmem:[%s8765_s4 + $0x868] sm:$0xff] }
 0x3f0   :  { %2547 = vmatpush.msra.mxu1 %v1332_v38  ;;  %v1292_v49 = vld [vmem:[%s8765_s4 + $0x428] sm:$0xff] }
 0x3f1   :  { %2566 = vmatpush.msra.mxu2 %v1400_v42  ;;  %2586 = vmatpush.msra.mxu3 %v1464_v56  ;;  %v1360_v4 = vld [vmem:[%s8765_s4 + $0x648] sm:$0xff] }
 0x3f2   :  { %2548 = vmatpush.msra.mxu1 %v1328_v12  ;;  %v1424_v27 = vld [vmem:[%s8765_s4 + $0x848] sm:$0xff] }
 0x3f3   :  { %2567 = vmatpush.msra.mxu2 %v1396_v31  ;;  %2587 = vmatpush.msra.mxu3 %v1460_v5  ;;  %v1288_v36 = vld [vmem:[%s8765_s4 + $0x408] sm:$0xff] }
 0x3f4   :  { %2549 = vmatpush.msra.mxu1 %v1324_v8  ;;  %v1356_v10 = vld [vmem:[%s8765_s4 + $0x628] sm:$0xff] }
 0x3f5   :  { %2568 = vmatpush.msra.mxu2 %v1392_v29  ;;  %2588 = vmatpush.msra.mxu3 %v1456_v63  ;;  %v1420_v11 = vld [vmem:[%s8765_s4 + $0x828] sm:$0xff] }
 0x3f6   :  { %2550 = vmatpush.msra.mxu1 %v1320_v40  ;;  %v1540_v32 = vld [vmem:[%s8765_s4 + $0xbe8] sm:$0xff] }
 0x3f7   :  { %2569 = vmatpush.msra.mxu2 %v1388_v58  ;;  %2589 = vmatpush.msra.mxu3 %v1452_v59  ;;  %v1352_v39 = vld [vmem:[%s8765_s4 + $0x608] sm:$0xff] }
 0x3f8   :  { %2551 = vmatpush.msra.mxu1 %v1316_v50  ;;  %v1416_v55 = vld [vmem:[%s8765_s4 + $0x808] sm:$0xff] }
 0x3f9   :  { %2570 = vmatpush.msra.mxu2 %v1384_v34  ;;  %2590 = vmatpush.msra.mxu3 %v1448_v60  ;;  %v1536_v57 = vld [vmem:[%s8765_s4 + $0xbc8] sm:$0xff] }
 0x3fa   :  { %2552 = vmatpush.msra.mxu1 %v1312_v35  ;;  %v1604_v53 = vld [vmem:[%s8765_s4 + $0xde8] sm:$0xff] }
 0x3fb   :  { %2571 = vmatpush.msra.mxu2 %v1380_v52  ;;  %2591 = vmatpush.msra.mxu3 %v1444_v37  ;;  %v1668_v19 = vld [vmem:[%s8765_s4 + $0xfe8] sm:$0xff] }
 0x3fc   :  { %2553 = vmatpush.msra.mxu1 %v1308_v16  ;;  %v1532_v44 = vld [vmem:[%s8765_s4 + $0xba8] sm:$0xff] }
 0x3fd   :  { %2572 = vmatpush.msra.mxu2 %v1376_v23  ;;  %2592 = vmatpush.msra.mxu3 %v1440_v3  ;;  %v1600_v15 = vld [vmem:[%s8765_s4 + $0xdc8] sm:$0xff] }
 0x3fe   :  { %2554 = vmatpush.msra.mxu1 %v1304_v30  ;;  %v1664_v43 = vld [vmem:[%s8765_s4 + $0xfc8] sm:$0xff] }
 0x3ff   :  { %2573 = vmatpush.msra.mxu2 %v1372_v46  ;;  %2593 = vmatpush.msra.mxu3 %v1436_v13  ;;  %v1528_v54 = vld [vmem:[%s8765_s4 + $0xb88] sm:$0xff] }
 0x400   :  { %2555 = vmatpush.msra.mxu1 %v1300_v24  ;;  %v1596_v47 = vld [vmem:[%s8765_s4 + $0xda8] sm:$0xff] }
 0x401   :  { %2574 = vmatpush.msra.mxu2 %v1368_v21  ;;  %2594 = vmatpush.msra.mxu3 %v1432_v51  ;;  %v1660_v25 = vld [vmem:[%s8765_s4 + $0xfa8] sm:$0xff] }
 0x402   :  { %2556 = vmatpush.msra.mxu1 %v1296_v41  ;;  %v1524_v38 = vld [vmem:[%s8765_s4 + $0xb68] sm:$0xff] }
 0x403   :  { %2575 = vmatpush.msra.mxu2 %v1364_v7  ;;  %2595 = vmatpush.msra.mxu3 %v1428_v45  ;;  %v1592_v42 = vld [vmem:[%s8765_s4 + $0xd88] sm:$0xff] }
 0x404   :  { %2557 = vmatpush.msra.mxu1 %v1292_v49  ;;  %v1656_v56 = vld [vmem:[%s8765_s4 + $0xf88] sm:$0xff] }
 0x405   :  { %2576 = vmatpush.msra.mxu2 %v1360_v4  ;;  %2596 = vmatpush.msra.mxu3 %v1424_v27  ;;  %v1520_v12 = vld [vmem:[%s8765_s4 + $0xb48] sm:$0xff] }
 0x406   :  { %2558 = vmatpush.msra.mxu1 %v1288_v36  ;;  %v1588_v31 = vld [vmem:[%s8765_s4 + $0xd68] sm:$0xff] }
 0x407   :  { %2577 = vmatpush.msra.mxu2 %v1356_v10  ;;  %2597 = vmatpush.msra.mxu3 %v1420_v11  ;;  %v1652_v5 = vld [vmem:[%s8765_s4 + $0xf68] sm:$0xff] }
 0x408   :  { %2559 = vmatmul.f32.vlgmr.msra.gmra.mxu1 %v5713_v62  ;;  %v1516_v8 = vld [vmem:[%s8765_s4 + $0xb28] sm:$0xff] }
 0x409   :  { %2603 = vmatpush.msrb.mxu1 %v1540_v32  ;;  %2578 = vmatpush.msra.mxu2 %v1352_v39  ;;  %v1584_v29 = vld [vmem:[%s8765_s4 + $0xd48] sm:$0xff] }
 0x40a   :  { %2598 = vmatpush.msra.mxu3 %v1416_v55  ;;  %2579 = vmatmul.f32.vlgmr.msra.gmra.mxu2 %v5774_v6  ;;  %v1648_v63 = vld [vmem:[%s8765_s4 + $0xf48] sm:$0xff] }
 0x40b   :  { %2599 = vmatmul.f32.vlgmr.msra.gmra.mxu3 %v5738_v1  ;;  %2604 = vmatpush.msrb.mxu1 %v1536_v57  ;;  %v1512_v40 = vld [vmem:[%s8765_s4 + $0xb08] sm:$0xff] }
 0x40c   :  { %2623 = vmatpush.msrb.mxu2 %v1604_v53  ;;  %2643 = vmatpush.msrb.mxu3 %v1668_v19  ;;  %v1580_v58 = vld [vmem:[%s8765_s4 + $0xd28] sm:$0xff] }
 0x40d   :  { %2605 = vmatpush.msrb.mxu1 %v1532_v44  ;;  %v1644_v59 = vld [vmem:[%s8765_s4 + $0xf28] sm:$0xff] }
 0x40e   :  { %2624 = vmatpush.msrb.mxu2 %v1600_v15  ;;  %2644 = vmatpush.msrb.mxu3 %v1664_v43  ;;  %v1508_v50 = vld [vmem:[%s8765_s4 + $0xae8] sm:$0xff] }
 0x40f   :  { %2606 = vmatpush.msrb.mxu1 %v1528_v54  ;;  %v1576_v34 = vld [vmem:[%s8765_s4 + $0xd08] sm:$0xff] }
 0x410   :  { %2625 = vmatpush.msrb.mxu2 %v1596_v47  ;;  %2645 = vmatpush.msrb.mxu3 %v1660_v25  ;;  %v1640_v60 = vld [vmem:[%s8765_s4 + $0xf08] sm:$0xff] }
 0x411   :  { %2607 = vmatpush.msrb.mxu1 %v1524_v38  ;;  %v1504_v35 = vld [vmem:[%s8765_s4 + $0xac8] sm:$0xff] }
 0x412   :  { %2626 = vmatpush.msrb.mxu2 %v1592_v42  ;;  %2646 = vmatpush.msrb.mxu3 %v1656_v56  ;;  %v1572_v52 = vld [vmem:[%s8765_s4 + $0xce8] sm:$0xff] }
 0x413   :  { %2608 = vmatpush.msrb.mxu1 %v1520_v12  ;;  %v1636_v37 = vld [vmem:[%s8765_s4 + $0xee8] sm:$0xff] }
 0x414   :  { %2627 = vmatpush.msrb.mxu2 %v1588_v31  ;;  %2647 = vmatpush.msrb.mxu3 %v1652_v5  ;;  %v1500_v16 = vld [vmem:[%s8765_s4 + $0xaa8] sm:$0xff] }
 0x415   :  { %2609 = vmatpush.msrb.mxu1 %v1516_v8  ;;  %v1568_v23 = vld [vmem:[%s8765_s4 + $0xcc8] sm:$0xff] }
 0x416   :  { %2628 = vmatpush.msrb.mxu2 %v1584_v29  ;;  %2648 = vmatpush.msrb.mxu3 %v1648_v63  ;;  %v1632_v3 = vld [vmem:[%s8765_s4 + $0xec8] sm:$0xff] }
 0x417   :  { %2610 = vmatpush.msrb.mxu1 %v1512_v40  ;;  %v1496_v30 = vld [vmem:[%s8765_s4 + $0xa88] sm:$0xff] }
 0x418   :  { %2629 = vmatpush.msrb.mxu2 %v1580_v58  ;;  %2649 = vmatpush.msrb.mxu3 %v1644_v59  ;;  %v1564_v46 = vld [vmem:[%s8765_s4 + $0xca8] sm:$0xff] }
 0x419   :  { %2611 = vmatpush.msrb.mxu1 %v1508_v50  ;;  %v1628_v13 = vld [vmem:[%s8765_s4 + $0xea8] sm:$0xff] }
 0x41a   :  { %2630 = vmatpush.msrb.mxu2 %v1576_v34  ;;  %2650 = vmatpush.msrb.mxu3 %v1640_v60  ;;  %v1492_v24 = vld [vmem:[%s8765_s4 + $0xa68] sm:$0xff]  ;;  %v2200_v34 = vpop.f32.mrf.mxu1 }
 0x41b   :  { %2612 = vmatpush.msrb.mxu1 %v1504_v35  ;;  %v1560_v21 = vld [vmem:[%s8765_s4 + $0xc88] sm:$0xff] }
 0x41c   :  { %2631 = vmatpush.msrb.mxu2 %v1572_v52  ;;  %2651 = vmatpush.msrb.mxu3 %v1636_v37  ;;  %v1624_v51 = vld [vmem:[%s8765_s4 + $0xe88] sm:$0xff]  ;;  %v2220_v37 = vpop.f32.mrf.mxu2 }
 0x41d   :  { %2613 = vmatpush.msrb.mxu1 %v1500_v16  ;;  %v1488_v41 = vld [vmem:[%s8765_s4 + $0xa48] sm:$0xff] }
 0x41e   :  { %2632 = vmatpush.msrb.mxu2 %v1568_v23  ;;  %2652 = vmatpush.msrb.mxu3 %v1632_v3  ;;  %v1556_v7 = vld [vmem:[%s8765_s4 + $0xc68] sm:$0xff] }
 0x41f   :  { %2614 = vmatpush.msrb.mxu1 %v1496_v30  ;;  %v1620_v45 = vld [vmem:[%s8765_s4 + $0xe68] sm:$0xff] }
 0x420   :  { %2633 = vmatpush.msrb.mxu2 %v1564_v46  ;;  %2653 = vmatpush.msrb.mxu3 %v1628_v13  ;;  %v1484_v49 = vld [vmem:[%s8765_s4 + $0xa28] sm:$0xff]  ;;  %v2221_v13 = vadd.f32 %v2220_v37, %v2200_v34 }
 0x421   :  { %2615 = vmatpush.msrb.mxu1 %v1492_v24  ;;  %v1552_v4 = vld [vmem:[%s8765_s4 + $0xc48] sm:$0xff] }
 0x422   :  { %2634 = vmatpush.msrb.mxu2 %v1560_v21  ;;  %2654 = vmatpush.msrb.mxu3 %v1624_v51  ;;  %v1616_v27 = vld [vmem:[%s8765_s4 + $0xe48] sm:$0xff] }
 0x423   :  { %2616 = vmatpush.msrb.mxu1 %v1488_v41  ;;  %v1480_v36 = vld [vmem:[%s8765_s4 + $0xa08] sm:$0xff] }
 0x424   :  { %2635 = vmatpush.msrb.mxu2 %v1556_v7  ;;  %2655 = vmatpush.msrb.mxu3 %v1620_v45  ;;  %v1548_v10 = vld [vmem:[%s8765_s4 + $0xc28] sm:$0xff]  ;;  %v2240_v7 = vpop.f32.mrf.mxu3 }
 0x425   :  { %2617 = vmatpush.msrb.mxu1 %v1484_v49  ;;  %v1612_v11 = vld [vmem:[%s8765_s4 + $0xe28] sm:$0xff] }
 0x426   :  { %2636 = vmatpush.msrb.mxu2 %v1552_v4  ;;  %2656 = vmatpush.msrb.mxu3 %v1616_v27  ;;  %v1732_v32 = vld [vmem:[%s8765_s4 + $0x11e8] sm:$0xff]  ;;  %v2241_v4 = vadd.f32 %v2240_v7, %v2221_v13 }
 0x427   :  { %2618 = vmatpush.msrb.mxu1 %v1480_v36  ;;  %v1544_v39 = vld [vmem:[%s8765_s4 + $0xc08] sm:$0xff]  ;;  %v2260_v36 = vpop.f32.mrf.mxu1 }
 0x428   :  { %2637 = vmatpush.msrb.mxu2 %v1548_v10  ;;  %2657 = vmatpush.msrb.mxu3 %v1612_v11  ;;  %v1608_v55 = vld [vmem:[%s8765_s4 + $0xe08] sm:$0xff] }
 0x429   :  { %2619 = vmatmul.f32.vlgmr.msrb.gmra.mxu1 %v5791_v17  ;;  %v1728_v57 = vld [vmem:[%s8765_s4 + $0x11c8] sm:$0xff] }
 0x42a   :  { %2663 = vmatpush.msra.mxu1 %v1732_v32  ;;  %2638 = vmatpush.msrb.mxu2 %v1544_v39  ;;  %v1796_v53 = vld [vmem:[%s8765_s4 + $0x13e8] sm:$0xff]  ;;  %v2280_v39 = vpop.f32.mrf.mxu2 }
 0x42b   :  { %v1860_v19 = vld [vmem:[%s8765_s4 + $0x15e8] sm:$0xff]  ;;  %2658 = vmatpush.msrb.mxu3 %v1608_v55  ;;  %2639 = vmatmul.f32.vlgmr.msrb.gmra.mxu2 %v5932_v26 }
 0x42c   :  { %v1724_v44 = vld [vmem:[%s8765_s4 + $0x11a8] sm:$0xff]  ;;  %2659 = vmatmul.f32.vlgmr.msrb.gmra.mxu3 %v5949_v28  ;;  %2664 = vmatpush.msra.mxu1 %v1728_v57 }
 0x42d   :  { %v1792_v15 = vld [vmem:[%s8765_s4 + $0x13c8] sm:$0xff]  ;;  %2683 = vmatpush.msra.mxu2 %v1796_v53  ;;  %2703 = vmatpush.msra.mxu3 %v1860_v19  ;;  %v2261_v53 = vadd.f32 %v2260_v36, %v2241_v4 }
 0x42e   :  { %v1856_v43 = vld [vmem:[%s8765_s4 + $0x15c8] sm:$0xff]  ;;  %2665 = vmatpush.msra.mxu1 %v1724_v44 }
 0x42f   :  { %v1720_v54 = vld [vmem:[%s8765_s4 + $0x1188] sm:$0xff]  ;;  %2684 = vmatpush.msra.mxu2 %v1792_v15  ;;  %2704 = vmatpush.msra.mxu3 %v1856_v43  ;;  %v2281_v43 = vadd.f32 %v2280_v39, %v2261_v53 }
 0x430   :  { %v1788_v47 = vld [vmem:[%s8765_s4 + $0x13a8] sm:$0xff]  ;;  %2666 = vmatpush.msra.mxu1 %v1720_v54 }
 0x431   :  { %v1852_v25 = vld [vmem:[%s8765_s4 + $0x15a8] sm:$0xff]  ;;  %2685 = vmatpush.msra.mxu2 %v1788_v47 }
 0x432   :  { %v1716_v38 = vld [vmem:[%s8765_s4 + $0x1168] sm:$0xff]  ;;  %2705 = vmatpush.msra.mxu3 %v1852_v25 }
 0x433   :  { %v1784_v42 = vld [vmem:[%s8765_s4 + $0x1388] sm:$0xff]  ;;  %2667 = vmatpush.msra.mxu1 %v1716_v38  ;;  %v2300_v38 = vpop.f32.mrf.mxu3 }
 0x434   :  { %v1848_v56 = vld [vmem:[%s8765_s4 + $0x1588] sm:$0xff]  ;;  %2686 = vmatpush.msra.mxu2 %v1784_v42  ;;  %v2320_v42 = vpop.f32.mrf.mxu1 }
 0x435   :  { %v1712_v12 = vld [vmem:[%s8765_s4 + $0x1148] sm:$0xff]  ;;  %2706 = vmatpush.msra.mxu3 %v1848_v56 }
 0x436   :  { %v1780_v31 = vld [vmem:[%s8765_s4 + $0x1368] sm:$0xff]  ;;  %2668 = vmatpush.msra.mxu1 %v1712_v12  ;;  %v2301_v12 = vadd.f32 %v2300_v38, %v2281_v43 }
 0x437   :  { %v1844_v5 = vld [vmem:[%s8765_s4 + $0x1568] sm:$0xff]  ;;  %2687 = vmatpush.msra.mxu2 %v1780_v31 }
 0x438   :  { %v1708_v8 = vld [vmem:[%s8765_s4 + $0x1128] sm:$0xff]  ;;  %2707 = vmatpush.msra.mxu3 %v1844_v5 }
 0x439   :  { %v1776_v29 = vld [vmem:[%s8765_s4 + $0x1348] sm:$0xff]  ;;  %2669 = vmatpush.msra.mxu1 %v1708_v8  ;;  %v2340_v8 = vpop.f32.mrf.mxu2 }
 0x43a   :  { %v1840_v63 = vld [vmem:[%s8765_s4 + $0x1548] sm:$0xff]  ;;  %2688 = vmatpush.msra.mxu2 %v1776_v29 }
 0x43b   :  { %v1704_v40 = vld [vmem:[%s8765_s4 + $0x1108] sm:$0xff]  ;;  %2708 = vmatpush.msra.mxu3 %v1840_v63  ;;  %v2321_v63 = vadd.f32 %v2320_v42, %v2301_v12  ;;  %v3615_v12 = vld [vmem:[%s8766_s5 + $0x78] sm:$0xff] }
 0x43c   :  { %v1772_v58 = vld [vmem:[%s8765_s4 + $0x1328] sm:$0xff]  ;;  %2670 = vmatpush.msra.mxu1 %v1704_v40  ;;  %3664 = vmatpush.msrb.mxu0 %v3615_v12 }
 0x43d   :  { %v1836_v59 = vld [vmem:[%s8765_s4 + $0x1528] sm:$0xff]  ;;  %2689 = vmatpush.msra.mxu2 %v1772_v58 }
 0x43e   :  { %v1700_v50 = vld [vmem:[%s8765_s4 + $0x10e8] sm:$0xff]  ;;  %2709 = vmatpush.msra.mxu3 %v1836_v59 }
 0x43f   :  { %v1768_v60 = vld [vmem:[%s8765_s4 + $0x1308] sm:$0xff]  ;;  %2671 = vmatpush.msra.mxu1 %v1700_v50  ;;  %v2341_v50 = vadd.f32 %v2340_v8, %v2321_v63 }
 0x440   :  { %v1832_v35 = vld [vmem:[%s8765_s4 + $0x1508] sm:$0xff]  ;;  %2690 = vmatpush.msra.mxu2 %v1768_v60 }
 0x441   :  { %v1696_v52 = vld [vmem:[%s8765_s4 + $0x10c8] sm:$0xff]  ;;  %2710 = vmatpush.msra.mxu3 %v1832_v35 }
 0x442   :  { %v1764_v16 = vld [vmem:[%s8765_s4 + $0x12e8] sm:$0xff]  ;;  %2672 = vmatpush.msra.mxu1 %v1696_v52 }
 0x443   :  { %v1828_v23 = vld [vmem:[%s8765_s4 + $0x14e8] sm:$0xff]  ;;  %2691 = vmatpush.msra.mxu2 %v1764_v16  ;;  %v2360_v16 = vpop.f32.mrf.mxu3 }
 0x444   :  { %v1692_v3 = vld [vmem:[%s8765_s4 + $0x10a8] sm:$0xff]  ;;  %2711 = vmatpush.msra.mxu3 %v1828_v23  ;;  %v2380_v23 = vpop.f32.mrf.mxu1 }
 0x445   :  { %v1760_v30 = vld [vmem:[%s8765_s4 + $0x12c8] sm:$0xff]  ;;  %2673 = vmatpush.msra.mxu1 %v1692_v3 }
 0x446   :  { %v1824_v46 = vld [vmem:[%s8765_s4 + $0x14c8] sm:$0xff]  ;;  %2692 = vmatpush.msra.mxu2 %v1760_v30  ;;  %v2361_v30 = vadd.f32 %v2360_v16, %v2341_v50 }
 0x447   :  { %v1688_v24 = vld [vmem:[%s8765_s4 + $0x1088] sm:$0xff]  ;;  %2712 = vmatpush.msra.mxu3 %v1824_v46 }
 0x448   :  { %v1756_v21 = vld [vmem:[%s8765_s4 + $0x12a8] sm:$0xff]  ;;  %2674 = vmatpush.msra.mxu1 %v1688_v24  ;;  %v2400_v24 = vpop.f32.mrf.mxu2 }
 0x449   :  { %v1820_v51 = vld [vmem:[%s8765_s4 + $0x14a8] sm:$0xff]  ;;  %2693 = vmatpush.msra.mxu2 %v1756_v21 }
 0x44a   :  { %v1684_v41 = vld [vmem:[%s8765_s4 + $0x1068] sm:$0xff]  ;;  %2713 = vmatpush.msra.mxu3 %v1820_v51  ;;  %v2381_v51 = vadd.f32 %v2380_v23, %v2361_v30  ;;  %v3612_v23 = vld [vmem:[%s8766_s5 + $0x60] sm:$0xff] }
 0x44b   :  { %v1752_v45 = vld [vmem:[%s8765_s4 + $0x1288] sm:$0xff]  ;;  %2675 = vmatpush.msra.mxu1 %v1684_v41 }
 0x44c   :  { %v1816_v49 = vld [vmem:[%s8765_s4 + $0x1488] sm:$0xff]  ;;  %2694 = vmatpush.msra.mxu2 %v1752_v45  ;;  %v2440_v39 = vpop.f32.mrf.mxu1 }
 0x44d   :  { %v1680_v27 = vld [vmem:[%s8765_s4 + $0x1048] sm:$0xff]  ;;  %2714 = vmatpush.msra.mxu3 %v1816_v49  ;;  %v2401_v49 = vadd.f32 %v2400_v24, %v2381_v51 }
 0x44e   :  { %v1748_v10 = vld [vmem:[%s8765_s4 + $0x1268] sm:$0xff]  ;;  %2676 = vmatpush.msra.mxu1 %v1680_v27 }
 0x44f   :  { %v1812_v11 = vld [vmem:[%s8765_s4 + $0x1468] sm:$0xff]  ;;  %2695 = vmatpush.msra.mxu2 %v1748_v10 }
 0x450   :  { %v1676_v32 = vld [vmem:[%s8765_s4 + $0x1028] sm:$0xff]  ;;  %2715 = vmatpush.msra.mxu3 %v1812_v11 }
 0x451   :  { %v1744_v55 = vld [vmem:[%s8765_s4 + $0x1248] sm:$0xff]  ;;  %2677 = vmatpush.msra.mxu1 %v1676_v32  ;;  %v2420_v32 = vpop.f32.mrf.mxu3 }
 0x452   :  { %v1808_v57 = vld [vmem:[%s8765_s4 + $0x1448] sm:$0xff]  ;;  %2696 = vmatpush.msra.mxu2 %v1744_v55 }
 0x453   :  { %v1672_v19 = vld [vmem:[%s8765_s4 + $0x1008] sm:$0xff]  ;;  %2716 = vmatpush.msra.mxu3 %v1808_v57  ;;  %v2421_v57 = vadd.f32 %v2420_v32, %v2401_v49  ;;  %v3610_v49 = vld [vmem:[%s8766_s5 + $0x50] sm:$0xff] }
 0x454   :  { %v1740_v44 = vld [vmem:[%s8765_s4 + $0x1228] sm:$0xff]  ;;  %2678 = vmatpush.msra.mxu1 %v1672_v19 }
 0x455   :  { %v1804_v15 = vld [vmem:[%s8765_s4 + $0x1428] sm:$0xff]  ;;  %2697 = vmatpush.msra.mxu2 %v1740_v44  ;;  %2679 = vmatmul.f32.vlgmr.msra.gmra.mxu1 %v5788_v33  ;;  %v2460_v44 = vpop.f32.mrf.mxu2  ;;  %v2441_v43 = vadd.f32 %v2440_v39, %v2421_v57 }
 0x456   :  { %v1924_v54 = vld [vmem:[%s8765_s4 + $0x17e8] sm:$0xff]  ;;  %2717 = vmatpush.msra.mxu3 %v1804_v15 }
 0x457   :  { %v1736_v47 = vld [vmem:[%s8765_s4 + $0x1208] sm:$0xff]  ;;  %2723 = vmatpush.msrb.mxu1 %v1924_v54  ;;  %v2461_v38 = vadd.f32 %v2460_v44, %v2441_v43  ;;  %v1217_v43 = vld [vmem:[%s8765_s4 + $0x1d0] sm:$0xff] }
 0x458   :  { %v1800_v25 = vld [vmem:[%s8765_s4 + $0x1408] sm:$0xff]  ;;  %2698 = vmatpush.msra.mxu2 %v1736_v47 }
 0x459   :  { %v1920_v56 = vld [vmem:[%s8765_s4 + $0x17c8] sm:$0xff]  ;;  %2718 = vmatpush.msra.mxu3 %v1800_v25  ;;  %2699 = vmatmul.f32.vlgmr.msra.gmra.mxu2 %v6134_v2  ;;  %v2480_v63 = vpop.f32.mrf.mxu3 }
 0x45a   :  { %v1988_v31 = vld [vmem:[%s8765_s4 + $0x19e8] sm:$0xff]  ;;  %2719 = vmatmul.f32.vlgmr.msra.gmra.mxu3 %v6148_v20  ;;  %2724 = vmatpush.msrb.mxu1 %v1920_v56 }
 0x45b   :  { %v2052_v5 = vld [vmem:[%s8765_s4 + $0x1be8] sm:$0xff]  ;;  %2743 = vmatpush.msrb.mxu2 %v1988_v31 }
 0x45c   :  { %v1916_v29 = vld [vmem:[%s8765_s4 + $0x17a8] sm:$0xff]  ;;  %2763 = vmatpush.msrb.mxu3 %v2052_v5 }
 0x45d   :  { %v1984_v40 = vld [vmem:[%s8765_s4 + $0x19c8] sm:$0xff]  ;;  %2725 = vmatpush.msrb.mxu1 %v1916_v29  ;;  %v3614_v29 = vld [vmem:[%s8766_s5 + $0x70] sm:$0xff] }
 0x45e   :  { %v2048_v58 = vld [vmem:[%s8765_s4 + $0x1bc8] sm:$0xff]  ;;  %2744 = vmatpush.msrb.mxu2 %v1984_v40  ;;  %3665 = vmatpush.msrb.mxu0 %v3614_v29 }
 0x45f   :  { %v1912_v59 = vld [vmem:[%s8765_s4 + $0x1788] sm:$0xff]  ;;  %2764 = vmatpush.msrb.mxu3 %v2048_v58  ;;  %v2481_v58 = vadd.f32 %v2480_v63, %v2461_v38  ;;  %v1209_v63 = vld [vmem:[%s8765_s4 + $0x190] sm:$0xff] }
 0x460   :  { %v1980_v34 = vld [vmem:[%s8765_s4 + $0x19a8] sm:$0xff]  ;;  %2726 = vmatpush.msrb.mxu1 %v1912_v59 }
 0x461   :  { %v2044_v60 = vld [vmem:[%s8765_s4 + $0x1ba8] sm:$0xff]  ;;  %2745 = vmatpush.msrb.mxu2 %v1980_v34 }
 0x462   :  { %v1908_v35 = vld [vmem:[%s8765_s4 + $0x1768] sm:$0xff]  ;;  %2765 = vmatpush.msrb.mxu3 %v2044_v60 }
 0x463   :  { %v1976_v52 = vld [vmem:[%s8765_s4 + $0x1988] sm:$0xff]  ;;  %2727 = vmatpush.msrb.mxu1 %v1908_v35 }
 0x464   :  { %v2040_v37 = vld [vmem:[%s8765_s4 + $0x1b88] sm:$0xff]  ;;  %2746 = vmatpush.msrb.mxu2 %v1976_v52  ;;  %v2500_v35 = vpop.f32.mrf.mxu1 }
 0x465   :  { %v1904_v3 = vld [vmem:[%s8765_s4 + $0x1748] sm:$0xff]  ;;  %2766 = vmatpush.msrb.mxu3 %v2040_v37  ;;  %v7034_v16 = vadd.f32 %v2500_v35, %v2481_v58  ;;  %v3606_v58 = vld [vmem:[%s8766_s5 + $0x30] sm:$0xff] }
 0x466   :  { %v1972_v46 = vld [vmem:[%s8765_s4 + $0x1968] sm:$0xff]  ;;  %2728 = vmatpush.msrb.mxu1 %v1904_v3 }
 0x467   :  { %v2036_v13 = vld [vmem:[%s8765_s4 + $0x1b68] sm:$0xff]  ;;  %2747 = vmatpush.msrb.mxu2 %v1972_v46  ;;  %v3492_v24 = vmul.f32 %v7034_v16, %v7034_v16 }
 0x468   :  { %v1900_v21 = vld [vmem:[%s8765_s4 + $0x1728] sm:$0xff]  ;;  %2767 = vmatpush.msrb.mxu3 %v2036_v13  ;;  %v3464_v13 = vsel %vm3463_vm8, %v7034_v16, 0.0 }
 0x469   :  { %v1968_v41 = vld [vmem:[%s8765_s4 + $0x1948] sm:$0xff]  ;;  %2729 = vmatpush.msrb.mxu1 %v1900_v21  ;;  %v3611_v21 = vld [vmem:[%s8766_s5 + $0x58] sm:$0xff]  ;;  %v3465_v51 = vrot.slane %v3464_v13, 4 }
 0x46a   :  { %v2032_v7 = vld [vmem:[%s8765_s4 + $0x1b48] sm:$0xff]  ;;  %2748 = vmatpush.msrb.mxu2 %v1968_v41 }
 0x46b   :  { %v1896_v45 = vld [vmem:[%s8765_s4 + $0x1708] sm:$0xff]  ;;  %2768 = vmatpush.msrb.mxu3 %v2032_v7  ;;  %v3496_v7 = vsel %vm3463_vm8, %v3492_v24, 0.0 }
 0x46c   :  { %v1964_v4 = vld [vmem:[%s8765_s4 + $0x1928] sm:$0xff]  ;;  %2730 = vmatpush.msrb.mxu1 %v1896_v45 }
 0x46d   :  { %v2028_v27 = vld [vmem:[%s8765_s4 + $0x1b28] sm:$0xff]  ;;  %2749 = vmatpush.msrb.mxu2 %v1964_v4  ;;  %v3466_v4 = vadd.f32 %v3465_v51, %v3464_v13  ;;  %v3604_v13 = vld [vmem:[%s8766_s5 + $0x20] sm:$0xff]  ;;  %v1197_v51 = vld [vmem:[%s8765_s4 + $0x130] sm:$0xff] }
 0x46e   :  { %v1892_v36 = vld [vmem:[%s8765_s4 + $0x16e8] sm:$0xff]  ;;  %2769 = vmatpush.msrb.mxu3 %v2028_v27  ;;  %v3497_v27 = vrot.slane %v3496_v7, 4 }
 0x46f   :  { %v1960_v10 = vld [vmem:[%s8765_s4 + $0x1908] sm:$0xff]  ;;  %2731 = vmatpush.msrb.mxu1 %v1892_v36 }
 0x470   :  { %v2024_v11 = vld [vmem:[%s8765_s4 + $0x1b08] sm:$0xff]  ;;  %2750 = vmatpush.msrb.mxu2 %v1960_v10  ;;  %v3498_v32 = vadd.f32 %v3497_v27, %v3496_v7  ;;  %v3603_v7 = vld [vmem:[%s8766_s5 + $0x18] sm:$0xff] }
 0x471   :  { %v1888_v55 = vld [vmem:[%s8765_s4 + $0x16c8] sm:$0xff]  ;;  %2770 = vmatpush.msrb.mxu3 %v2024_v11  ;;  %v3467_v11 = vrot.slane %v3466_v4, 2 }
 0x472   :  { %v1956_v53 = vld [vmem:[%s8765_s4 + $0x18e8] sm:$0xff]  ;;  %2732 = vmatpush.msrb.mxu1 %v1888_v55  ;;  %v1221_v55 = vld [vmem:[%s8765_s4 + $0x1f0] sm:$0xff]  ;;  %v3499_v44 = vrot.slane %v3498_v32, 2 }
 0x473   :  { %v2020_v19 = vld [vmem:[%s8765_s4 + $0x1ae8] sm:$0xff]  ;;  %2751 = vmatpush.msrb.mxu2 %v1956_v53 }
 0x474   :  { %v1884_v15 = vld [vmem:[%s8765_s4 + $0x16a8] sm:$0xff]  ;;  %2771 = vmatpush.msrb.mxu3 %v2020_v19  ;;  %v3468_v19 = vadd.f32 %v3467_v11, %v3466_v4  ;;  %v3500_v38 = vadd.f32 %v3499_v44, %v3498_v32  ;;  %v1193_v4 = vld [vmem:[%s8765_s4 + $0x110] sm:$0xff]  ;;  %v3600_v44 = vld [vmem:[%s8766_s5] sm:$0xff] }
 0x475   :  { %v1952_v54 = vld [vmem:[%s8765_s4 + $0x18c8] sm:$0xff]  ;;  %2733 = vmatpush.msrb.mxu1 %v1884_v15  ;;  %v1189_v32 = vld [vmem:[%s8765_s4 + $0xf0] sm:$0xff] }
 0x476   :  { %v2016_v47 = vld [vmem:[%s8765_s4 + $0x1ac8] sm:$0xff]  ;;  %2752 = vmatpush.msrb.mxu2 %v1952_v54 }
 0x477   :  { %v1880_v25 = vld [vmem:[%s8765_s4 + $0x1688] sm:$0xff]  ;;  %2772 = vmatpush.msrb.mxu3 %v2016_v47  ;;  %v3608_v47 = vld [vmem:[%s8766_s5 + $0x40] sm:$0xff] }
 0x478   :  { %v1948_v42 = vld [vmem:[%s8765_s4 + $0x18a8] sm:$0xff]  ;;  %2734 = vmatpush.msrb.mxu1 %v1880_v25  ;;  %v3469_v25 = vrot.slane %v3468_v19, 1 }
 0x479   :  { %v2012_v56 = vld [vmem:[%s8765_s4 + $0x1aa8] sm:$0xff]  ;;  %2753 = vmatpush.msrb.mxu2 %v1948_v42 }
 0x47a   :  { %v1876_v31 = vld [vmem:[%s8765_s4 + $0x1668] sm:$0xff]  ;;  %2773 = vmatpush.msrb.mxu3 %v2012_v56  ;;  %v1213_v56 = vld [vmem:[%s8765_s4 + $0x1b0] sm:$0xff] }
 0x47b   :  { %v1944_v5 = vld [vmem:[%s8765_s4 + $0x1888] sm:$0xff]  ;;  %2735 = vmatpush.msrb.mxu1 %v1876_v31  ;;  %v3607_v31 = vld [vmem:[%s8766_s5 + $0x38] sm:$0xff] }
 0x47c   :  { %v2008_v8 = vld [vmem:[%s8765_s4 + $0x1a88] sm:$0xff]  ;;  %2754 = vmatpush.msrb.mxu2 %v1944_v5  ;;  %v3470_v5 = vadd.f32 %v3469_v25, %v3468_v19  ;;  %v1177_v25 = vld [vmem:[%s8765_s4 + $0x90] sm:$0xff] }
 0x47d   :  { %v1872_v40 = vld [vmem:[%s8765_s4 + $0x1648] sm:$0xff]  ;;  %2774 = vmatpush.msrb.mxu3 %v2008_v8  ;;  %v3501_v8 = vrot.slane %v3500_v38, 1 }
 0x47e   :  { %v1940_v59 = vld [vmem:[%s8765_s4 + $0x1868] sm:$0xff]  ;;  %2736 = vmatpush.msrb.mxu1 %v1872_v40 }
 0x47f   :  { %v2004_v50 = vld [vmem:[%s8765_s4 + $0x1a68] sm:$0xff]  ;;  %2755 = vmatpush.msrb.mxu2 %v1940_v59  ;;  %v3502_v59 = vadd.f32 %v3501_v8, %v3500_v38 }
 0x480   :  { %v3613_v34 = vld [vmem:[%s8766_s5 + $0x68] sm:$0xff]  ;;  %2775 = vmatpush.msrb.mxu3 %v2004_v50  ;;  %v7122_v50 = vmul.f32 0.5, %v3470_v5 }
 0x481   :  { %v1868_v60 = vld [vmem:[%s8765_s4 + $0x1628] sm:$0xff]  ;;  %3666 = vmatpush.msrb.mxu0 %v3613_v34 }
 0x482   :  { %v1936_v52 = vld [vmem:[%s8765_s4 + $0x1848] sm:$0xff]  ;;  %2737 = vmatpush.msrb.mxu1 %v1868_v60  ;;  %v1205_v60 = vld [vmem:[%s8765_s4 + $0x170] sm:$0xff] }
 0x483   :  { %v2000_v37 = vld [vmem:[%s8765_s4 + $0x1a48] sm:$0xff]  ;;  %3667 = vmatpush.msrb.mxu0 %v3612_v23  ;;  %2756 = vmatpush.msrb.mxu2 %v1936_v52  ;;  %v3532_v23 = vmul.f32 %v7122_v50, %v7122_v50 }
 0x484   :  { %v1864_v3 = vld [vmem:[%s8765_s4 + $0x1608] sm:$0xff]  ;;  %2776 = vmatpush.msrb.mxu3 %v2000_v37  ;;  %v3528_v37 = vmul.f32 0.5, %v3502_v59  ;;  %v1165_v59 = vld [vmem:[%s8765_s4 + $0x30] sm:$0xff] }
 0x485   :  { %v1932_v30 = vld [vmem:[%s8765_s4 + $0x1828] sm:$0xff]  ;;  %2738 = vmatpush.msrb.mxu1 %v1864_v3  ;;  %3668 = vmatpush.msrb.mxu0 %v3611_v21 }
 0x486   :  { %v1996_v46 = vld [vmem:[%s8765_s4 + $0x1a28] sm:$0xff]  ;;  %2757 = vmatpush.msrb.mxu2 %v1932_v30  ;;  %2739 = vmatmul.f32.vlgmr.msrb.gmra.mxu1 %v6154_v0  ;;  %v1201_v30 = vld [vmem:[%s8765_s4 + $0x150] sm:$0xff]  ;;  %v3536_v24 = vsub.f32 %v3528_v37, %v3532_v23 }
 0x487   :  { %v2116_v41 = vld [vmem:[%s8765_s4 + $0x1de8] sm:$0xff]  ;;  %2777 = vmatpush.msrb.mxu3 %v1996_v46  ;;  %3669 = vmatpush.msrb.mxu0 %v3610_v49  ;;  %v1161_v37 = vld [vmem:[%s8765_s4 + $0x10] sm:$0xff] }
 0x488   :  { %v1928_v45 = vld [vmem:[%s8765_s4 + $0x1808] sm:$0xff]  ;;  %2783 = vmatpush.msra.mxu1 %v2116_v41  ;;  %v1281_v23 = vld [vmem:[%s8765_s4 + $0x3d0] sm:$0xff] }
 0x489   :  { %v1992_v36 = vld [vmem:[%s8765_s4 + $0x1a08] sm:$0xff]  ;;  %2758 = vmatpush.msrb.mxu2 %v1928_v45  ;;  %v3540_v45 = vmax.f32 %v3536_v24, 0.0  ;;  %v1277_v24 = vld [vmem:[%s8765_s4 + $0x3b0] sm:$0xff] }
 0x48a   :  { %v2112_v10 = vld [vmem:[%s8765_s4 + $0x1dc8] sm:$0xff]  ;;  %2778 = vmatpush.msrb.mxu3 %v1992_v36  ;;  %2759 = vmatmul.f32.vlgmr.msrb.gmra.mxu2 %v5821_v18  ;;  %v3602_v36 = vld [vmem:[%s8766_s5 + $0x10] sm:$0xff] }
 0x48b   :  { %v2180_v39 = vld [vmem:[%s8765_s4 + $0x1fe8] sm:$0xff]  ;;  %2779 = vmatmul.f32.vlgmr.msrb.gmra.mxu3 %v6301_v14  ;;  %2784 = vmatpush.msra.mxu1 %v2112_v10  ;;  %v7174_v10 = vadd.f32 1e-05, %v3540_v45 }
 0x48c   :  { %v2108_v57 = vld [vmem:[%s8765_s4 + $0x1da8] sm:$0xff]  ;;  %2803 = vmatpush.msra.mxu2 %v2180_v39  ;;  %2823 = vmatpush.msra.mxu3 %v1221_v55 }
 0x48d   :  { %v3609_v53 = vld [vmem:[%s8766_s5 + $0x48] sm:$0xff]  ;;  %2785 = vmatpush.msra.mxu1 %v2108_v57  ;;  %3833 = vrsqrt.f32 %v7174_v10  ;;  %vm3558_vm10 = vweird.f32 %v7174_v10 }
 0x48e   :  { %v2176_v15 = vld [vmem:[%s8765_s4 + $0x1fc8] sm:$0xff]  ;;  %3670 = vmatpush.msrb.mxu0 %v3609_v53  ;;  %2824 = vmatpush.msra.mxu3 %v1217_v43  ;;  %v1185_v53 = vld [vmem:[%s8765_s4 + $0xd0] sm:$0xff] }
 0x48f   :  { %v2104_v54 = vld [vmem:[%s8765_s4 + $0x1d88] sm:$0xff]  ;;  %2804 = vmatpush.msra.mxu2 %v2176_v15  ;;  %v1181_v43 = vld [vmem:[%s8765_s4 + $0xb0] sm:$0xff] }
 0x490   :  { %v2172_v42 = vld [vmem:[%s8765_s4 + $0x1fa8] sm:$0xff]  ;;  %2786 = vmatpush.msra.mxu1 %v2104_v54  ;;  %3671 = vmatpush.msrb.mxu0 %v3608_v47 }
 0x491   :  { %v2100_v12 = vld [vmem:[%s8765_s4 + $0x1d68] sm:$0xff]  ;;  %2805 = vmatpush.msra.mxu2 %v2172_v42  ;;  %2825 = vmatpush.msra.mxu3 %v1213_v56 }
 0x492   :  { %v2168_v29 = vld [vmem:[%s8765_s4 + $0x1f88] sm:$0xff]  ;;  %2787 = vmatpush.msra.mxu1 %v2100_v12  ;;  %3672 = vmatpush.msrb.mxu0 %v3607_v31  ;;  %v1173_v12 = vld [vmem:[%s8765_s4 + $0x70] sm:$0xff] }
 0x493   :  { %v2096_v40 = vld [vmem:[%s8765_s4 + $0x1d48] sm:$0xff]  ;;  %2806 = vmatpush.msra.mxu2 %v2168_v29  ;;  %2826 = vmatpush.msra.mxu3 %v1209_v63  ;;  %v3834_v42 = vpop.eup %3833  ;;  %v1169_v29 = vld [vmem:[%s8765_s4 + $0x50] sm:$0xff] }
 0x494   :  { %v2164_v34 = vld [vmem:[%s8765_s4 + $0x1f68] sm:$0xff]  ;;  %2788 = vmatpush.msra.mxu1 %v2096_v40  ;;  %3673 = vmatpush.msrb.mxu0 %v3606_v58  ;;  %v3553_v31 = vmul.f32 %v3834_v42, %v7174_v10  ;;  %vm3559_vm9 = vweird.f32 %v3834_v42  ;;  %v1333_v10 = vld [vmem:[%s8765_s4 + $0x570] sm:$0xff] }
 0x495   :  { %v2092_v35 = vld [vmem:[%s8765_s4 + $0x1d28] sm:$0xff]  ;;  %2807 = vmatpush.msra.mxu2 %v2164_v34  ;;  %2827 = vmatpush.msra.mxu3 %v1205_v60  ;;  %v1285_v60 = vld [vmem:[%s8765_s4 + $0x3f0] sm:$0xff]  ;;  %vm3560_vm11 = vmor %vm3558_vm10, %vm3559_vm9 }
 0x496   :  { %v3605_v52 = vld [vmem:[%s8766_s5 + $0x28] sm:$0xff]  ;;  %2789 = vmatpush.msra.mxu1 %v2092_v35  ;;  %v3554_v63 = vmul.f32 %v3834_v42, %v3553_v31  ;;  %v1309_v31 = vld [vmem:[%s8765_s4 + $0x4b0] sm:$0xff] }
 0x497   :  { %v2160_v3 = vld [vmem:[%s8765_s4 + $0x1f48] sm:$0xff]  ;;  %3674 = vmatpush.msrb.mxu0 %v3605_v52  ;;  %2828 = vmatpush.msra.mxu3 %v1201_v30  ;;  %v1349_v30 = vld [vmem:[%s8765_s4 + $0x5f0] sm:$0xff] }
 0x498   :  { %v2088_v46 = vld [vmem:[%s8765_s4 + $0x1d08] sm:$0xff]  ;;  %2808 = vmatpush.msra.mxu2 %v2160_v3  ;;  %v3555_v34 = vmul.f32 0.5, %v3554_v63  ;;  %v1369_v63 = vld [vmem:[%s8765_s4 + $0x690] sm:$0xff] }
 0x499   :  { %v2156_v21 = vld [vmem:[%s8765_s4 + $0x1f28] sm:$0xff]  ;;  %2790 = vmatpush.msra.mxu1 %v2088_v46  ;;  %3675 = vmatpush.msrb.mxu0 %v3604_v13  ;;  %v1413_v46 = vld [vmem:[%s8765_s4 + $0x7f0] sm:$0xff]  ;;  %v3544_v13 = vsub.f32 %v7034_v16, %v7122_v50 }
 0x49a   :  { %v2084_v41 = vld [vmem:[%s8765_s4 + $0x1ce8] sm:$0xff]  ;;  %2809 = vmatpush.msra.mxu2 %v2156_v21  ;;  %2829 = vmatpush.msra.mxu3 %v1197_v51  ;;  %v3556_v52 = vsub.f32 1.5, %v3555_v34  ;;  %v1345_v51 = vld [vmem:[%s8765_s4 + $0x5d0] sm:$0xff] }
 0x49b   :  { %v2152_v49 = vld [vmem:[%s8765_s4 + $0x1f08] sm:$0xff]  ;;  %2791 = vmatpush.msra.mxu1 %v2084_v41  ;;  %3676 = vmatpush.msrb.mxu0 %v3603_v7  ;;  %v1409_v16 = vld [vmem:[%s8765_s4 + $0x7d0] sm:$0xff] }
 0x49c   :  { %v2080_v27 = vld [vmem:[%s8765_s4 + $0x1cc8] sm:$0xff]  ;;  %2810 = vmatpush.msra.mxu2 %v2152_v49  ;;  %2830 = vmatpush.msra.mxu3 %v1193_v4  ;;  %v3557_v3 = vmul.f32 %v3834_v42, %v3556_v52  ;;  %v1273_v41 = vld [vmem:[%s8765_s4 + $0x390] sm:$0xff] }
 0x49d   :  { %v2148_v11 = vld [vmem:[%s8765_s4 + $0x1ee8] sm:$0xff]  ;;  %2792 = vmatpush.msra.mxu1 %v2080_v27  ;;  %3677 = vmatpush.msrb.mxu0 %v3602_v36  ;;  %v1405_v7 = vld [vmem:[%s8765_s4 + $0x7b0] sm:$0xff] }
 0x49e   :  { %v2076_v39 = vld [vmem:[%s8765_s4 + $0x1ca8] sm:$0xff]  ;;  %2811 = vmatpush.msra.mxu2 %v2148_v11  ;;  %2831 = vmatpush.msra.mxu3 %v1189_v32  ;;  %v3561_v21 = vsel %vm3560_vm11, %v3834_v42, %v3557_v3  ;;  %v1269_v49 = vld [vmem:[%s8765_s4 + $0x370] sm:$0xff] }
 0x49f   :  { %v3601_v55 = vld [vmem:[%s8766_s5 + $0x8] sm:$0xff]  ;;  %2793 = vmatpush.msra.mxu1 %v2076_v39  ;;  %v3592_v50 = vmul.f32 %v3561_v21, %v3544_v13  ;;  %v1337_v4 = vld [vmem:[%s8765_s4 + $0x590] sm:$0xff] }
 0x4a0   :  { %v2144_v57 = vld [vmem:[%s8765_s4 + $0x1ec8] sm:$0xff]  ;;  %3678 = vmatpush.msrb.mxu0 %v3601_v55  ;;  %2832 = vmatpush.msra.mxu3 %v1185_v53  ;;  %v1401_v27 = vld [vmem:[%s8765_s4 + $0x790] sm:$0xff] }
 0x4a1   :  { %v2072_v19 = vld [vmem:[%s8765_s4 + $0x1c88] sm:$0xff]  ;;  %2812 = vmatpush.msra.mxu2 %v2144_v57  ;;  %v3596_v45 = vmax.f32 %v3592_v50, 0.0  ;;  %v1265_v36 = vld [vmem:[%s8765_s4 + $0x350] sm:$0xff] }
 0x4a2   :  { %v2140_v15 = vld [vmem:[%s8765_s4 + $0x1ea8] sm:$0xff]  ;;  %2794 = vmatpush.msra.mxu1 %v2072_v19  ;;  %3679 = vmatpush.msrb.mxu0 %v3600_v44  ;;  %v1397_v11 = vld [vmem:[%s8765_s4 + $0x770] sm:$0xff] }
 0x4a3   :  { %v2068_v54 = vld [vmem:[%s8765_s4 + $0x1c68] sm:$0xff]  ;;  %2813 = vmatpush.msra.mxu2 %v2140_v15  ;;  %2833 = vmatpush.msra.mxu3 %v1181_v43  ;;  %v1261_v32 = vld [vmem:[%s8765_s4 + $0x330] sm:$0xff] }
 0x4a4   :  { %v2136_v47 = vld [vmem:[%s8765_s4 + $0x1e88] sm:$0xff]  ;;  %2795 = vmatpush.msra.mxu1 %v2068_v54  ;;  %3680 = vmatmul.f32.vlgmr.msrb.gmra.mxu0 %v3596_v45  ;;  %v1329_v39 = vld [vmem:[%s8765_s4 + $0x550] sm:$0xff] }
 0x4a5   :  { %v2064_v38 = vld [vmem:[%s8765_s4 + $0x1c48] sm:$0xff]  ;;  %2814 = vmatpush.msra.mxu2 %v2136_v47  ;;  %2834 = vmatpush.msra.mxu3 %v1177_v25  ;;  %v1393_v55 = vld [vmem:[%s8765_s4 + $0x750] sm:$0xff] }
 0x4a6   :  { %v2132_v56 = vld [vmem:[%s8765_s4 + $0x1e68] sm:$0xff]  ;;  %2796 = vmatpush.msra.mxu1 %v2064_v38  ;;  %v1257_v57 = vld [vmem:[%s8765_s4 + $0x310] sm:$0xff] }
 0x4a7   :  { %v2060_v5 = vld [vmem:[%s8765_s4 + $0x1c28] sm:$0xff]  ;;  %2815 = vmatpush.msra.mxu2 %v2132_v56  ;;  %2835 = vmatpush.msra.mxu3 %v1173_v12  ;;  %v1325_v53 = vld [vmem:[%s8765_s4 + $0x530] sm:$0xff] }
 0x4a8   :  { %v2128_v8 = vld [vmem:[%s8765_s4 + $0x1e48] sm:$0xff]  ;;  %2797 = vmatpush.msra.mxu1 %v2060_v5  ;;  %v1389_v19 = vld [vmem:[%s8765_s4 + $0x730] sm:$0xff] }
 0x4a9   :  { %v2056_v40 = vld [vmem:[%s8765_s4 + $0x1c08] sm:$0xff]  ;;  %2816 = vmatpush.msra.mxu2 %v2128_v8  ;;  %2836 = vmatpush.msra.mxu3 %v1169_v29  ;;  %v1253_v44 = vld [vmem:[%s8765_s4 + $0x2f0] sm:$0xff] }
 0x4aa   :  { %v2124_v58 = vld [vmem:[%s8765_s4 + $0x1e28] sm:$0xff]  ;;  %2798 = vmatpush.msra.mxu1 %v2056_v40  ;;  %v1321_v15 = vld [vmem:[%s8765_s4 + $0x510] sm:$0xff] }
 0x4ab   :  { %v2120_v35 = vld [vmem:[%s8765_s4 + $0x1e08] sm:$0xff]  ;;  %2817 = vmatpush.msra.mxu2 %v2124_v58  ;;  %2837 = vmatpush.msra.mxu3 %v1165_v59  ;;  %v1385_v43 = vld [vmem:[%s8765_s4 + $0x710] sm:$0xff] }
 0x4ac   :  { %2799 = vmatmul.f32.vlgmr.msra.gmra.mxu1 %v6307_v61  ;;  %v1249_v54 = vld [vmem:[%s8765_s4 + $0x2d0] sm:$0xff] }
 0x4ad   :  { %2843 = vmatpush.msrb.mxu1 %v1285_v60  ;;  %2818 = vmatpush.msra.mxu2 %v2120_v35  ;;  %v1317_v47 = vld [vmem:[%s8765_s4 + $0x4f0] sm:$0xff] }
 0x4ae   :  { %2838 = vmatpush.msra.mxu3 %v1161_v37  ;;  %2819 = vmatmul.f32.vlgmr.msra.gmra.mxu2 %v6444_v48  ;;  %v1381_v25 = vld [vmem:[%s8765_s4 + $0x6f0] sm:$0xff] }
 0x4af   :  { %2839 = vmatmul.f32.vlgmr.msra.gmra.mxu3 %v5692_v22  ;;  %2844 = vmatpush.msrb.mxu1 %v1281_v23  ;;  %v1341_v22 = vld [vmem:[%s8765_s4 + $0x5b0] sm:$0xff] }
 0x4b0   :  { %2863 = vmatpush.msrb.mxu2 %v1349_v30  ;;  %2883 = vmatpush.msrb.mxu3 %v1413_v46  ;;  %v1245_v38 = vld [vmem:[%s8765_s4 + $0x2b0] sm:$0xff] }
 0x4b1   :  { %2845 = vmatpush.msrb.mxu1 %v1277_v24  ;;  %v1313_v42 = vld [vmem:[%s8765_s4 + $0x4d0] sm:$0xff] }
 0x4b2   :  { %2864 = vmatpush.msrb.mxu2 %v1345_v51  ;;  %2884 = vmatpush.msrb.mxu3 %v1409_v16  ;;  %v1377_v56 = vld [vmem:[%s8765_s4 + $0x6d0] sm:$0xff] }
 0x4b3   :  { %2846 = vmatpush.msrb.mxu1 %v1273_v41  ;;  %v1241_v12 = vld [vmem:[%s8765_s4 + $0x290] sm:$0xff] }
 0x4b4   :  { %2865 = vmatpush.msrb.mxu2 %v1341_v22  ;;  %2885 = vmatpush.msrb.mxu3 %v1405_v7  ;;  %v1373_v5 = vld [vmem:[%s8765_s4 + $0x6b0] sm:$0xff] }
 0x4b5   :  { %2847 = vmatpush.msrb.mxu1 %v1269_v49  ;;  %v1237_v8 = vld [vmem:[%s8765_s4 + $0x270] sm:$0xff] }
 0x4b6   :  { %2866 = vmatpush.msrb.mxu2 %v1337_v4  ;;  %2886 = vmatpush.msrb.mxu3 %v1401_v27  ;;  %v1305_v29 = vld [vmem:[%s8765_s4 + $0x490] sm:$0xff] }
 0x4b7   :  { %2848 = vmatpush.msrb.mxu1 %v1265_v36  ;;  %v1233_v40 = vld [vmem:[%s8765_s4 + $0x250] sm:$0xff] }
 0x4b8   :  { %2867 = vmatpush.msrb.mxu2 %v1333_v10  ;;  %2887 = vmatpush.msrb.mxu3 %v1397_v11  ;;  %v1301_v58 = vld [vmem:[%s8765_s4 + $0x470] sm:$0xff] }
 0x4b9   :  { %2849 = vmatpush.msrb.mxu1 %v1261_v32  ;;  %v1365_v59 = vld [vmem:[%s8765_s4 + $0x670] sm:$0xff] }
 0x4ba   :  { %2868 = vmatpush.msrb.mxu2 %v1329_v39  ;;  %2888 = vmatpush.msrb.mxu3 %v1393_v55  ;;  %v1229_v34 = vld [vmem:[%s8765_s4 + $0x230] sm:$0xff] }
 0x4bb   :  { %2850 = vmatpush.msrb.mxu1 %v1257_v57  ;;  %v1297_v60 = vld [vmem:[%s8765_s4 + $0x450] sm:$0xff] }
 0x4bc   :  { %2869 = vmatpush.msrb.mxu2 %v1325_v53  ;;  %2889 = vmatpush.msrb.mxu3 %v1389_v19  ;;  %v1361_v35 = vld [vmem:[%s8765_s4 + $0x650] sm:$0xff] }
 0x4bd   :  { %2851 = vmatpush.msrb.mxu1 %v1253_v44  ;;  %v1225_v52 = vld [vmem:[%s8765_s4 + $0x210] sm:$0xff] }
 0x4be   :  { %2870 = vmatpush.msrb.mxu2 %v1321_v15  ;;  %2890 = vmatpush.msrb.mxu3 %v1385_v43  ;;  %v1293_v37 = vld [vmem:[%s8765_s4 + $0x430] sm:$0xff] }
 0x4bf   :  { %2852 = vmatpush.msrb.mxu1 %v1249_v54  ;;  %v1357_v23 = vld [vmem:[%s8765_s4 + $0x630] sm:$0xff] }
 0x4c0   :  { %2871 = vmatpush.msrb.mxu2 %v1317_v47  ;;  %2891 = vmatpush.msrb.mxu3 %v1381_v25  ;;  %v1477_v3 = vld [vmem:[%s8765_s4 + $0x9f0] sm:$0xff] }
 0x4c1   :  { %2853 = vmatpush.msrb.mxu1 %v1245_v38  ;;  %v1289_v30 = vld [vmem:[%s8765_s4 + $0x410] sm:$0xff] }
 0x4c2   :  { %2872 = vmatpush.msrb.mxu2 %v1313_v42  ;;  %2892 = vmatpush.msrb.mxu3 %v1377_v56  ;;  %v1353_v46 = vld [vmem:[%s8765_s4 + $0x610] sm:$0xff] }
 0x4c3   :  { %2854 = vmatpush.msrb.mxu1 %v1241_v12  ;;  %v1473_v13 = vld [vmem:[%s8765_s4 + $0x9d0] sm:$0xff] }
 0x4c4   :  { %2873 = vmatpush.msrb.mxu2 %v1309_v31  ;;  %2893 = vmatpush.msrb.mxu3 %v1373_v5  ;;  %v1541_v24 = vld [vmem:[%s8765_s4 + $0xbf0] sm:$0xff] }
 0x4c5   :  { %2855 = vmatpush.msrb.mxu1 %v1237_v8  ;;  %v1605_v21 = vld [vmem:[%s8765_s4 + $0xdf0] sm:$0xff] }
 0x4c6   :  { %2874 = vmatpush.msrb.mxu2 %v1305_v29  ;;  %2894 = vmatpush.msrb.mxu3 %v1369_v63  ;;  %v1469_v51 = vld [vmem:[%s8765_s4 + $0x9b0] sm:$0xff] }
 0x4c7   :  { %2856 = vmatpush.msrb.mxu1 %v1233_v40  ;;  %v1537_v16 = vld [vmem:[%s8765_s4 + $0xbd0] sm:$0xff] }
 0x4c8   :  { %2875 = vmatpush.msrb.mxu2 %v1301_v58  ;;  %2895 = vmatpush.msrb.mxu3 %v1365_v59  ;;  %v1601_v50 = vld [vmem:[%s8765_s4 + $0xdd0] sm:$0xff] }
 0x4c9   :  { %2857 = vmatpush.msrb.mxu1 %v1229_v34  ;;  %v1465_v41 = vld [vmem:[%s8765_s4 + $0x990] sm:$0xff] }
 0x4ca   :  { %2876 = vmatpush.msrb.mxu2 %v1297_v60  ;;  %2896 = vmatpush.msrb.mxu3 %v1361_v35  ;;  %v1533_v22 = vld [vmem:[%s8765_s4 + $0xbb0] sm:$0xff] }
 0x4cb   :  { %2858 = vmatpush.msrb.mxu1 %v1225_v52  ;;  %v1597_v7 = vld [vmem:[%s8765_s4 + $0xdb0] sm:$0xff] }
 0x4cc   :  { %2877 = vmatpush.msrb.mxu2 %v1293_v37  ;;  %2897 = vmatpush.msrb.mxu3 %v1357_v23  ;;  %v1461_v45 = vld [vmem:[%s8765_s4 + $0x970] sm:$0xff] }
 0x4cd   :  { %2859 = vmatmul.f32.vlgmr.msrb.gmra.mxu1 %v5710_v9  ;;  %v1529_v49 = vld [vmem:[%s8765_s4 + $0xb90] sm:$0xff] }
 0x4ce   :  { %2903 = vmatpush.msra.mxu1 %v1477_v3  ;;  %2878 = vmatpush.msrb.mxu2 %v1289_v30  ;;  %v1593_v4 = vld [vmem:[%s8765_s4 + $0xd90] sm:$0xff] }
 0x4cf   :  { %2898 = vmatpush.msrb.mxu3 %v1353_v46  ;;  %2879 = vmatmul.f32.vlgmr.msrb.gmra.mxu2 %v5713_v62  ;;  %v1457_v27 = vld [vmem:[%s8765_s4 + $0x950] sm:$0xff] }
 0x4d0   :  { %2899 = vmatmul.f32.vlgmr.msrb.gmra.mxu3 %v5774_v6  ;;  %2904 = vmatpush.msra.mxu1 %v1473_v13  ;;  %v1525_v36 = vld [vmem:[%s8765_s4 + $0xb70] sm:$0xff] }
 0x4d1   :  { %2923 = vmatpush.msra.mxu2 %v1541_v24  ;;  %2943 = vmatpush.msra.mxu3 %v1605_v21  ;;  %v1589_v10 = vld [vmem:[%s8765_s4 + $0xd70] sm:$0xff] }
 0x4d2   :  { %2905 = vmatpush.msra.mxu1 %v1469_v51  ;;  %v1453_v11 = vld [vmem:[%s8765_s4 + $0x930] sm:$0xff] }
 0x4d3   :  { %2924 = vmatpush.msra.mxu2 %v1537_v16  ;;  %2944 = vmatpush.msra.mxu3 %v1601_v50  ;;  %v1521_v32 = vld [vmem:[%s8765_s4 + $0xb50] sm:$0xff] }
 0x4d4   :  { %2906 = vmatpush.msra.mxu1 %v1465_v41  ;;  %v1585_v39 = vld [vmem:[%s8765_s4 + $0xd50] sm:$0xff] }
 0x4d5   :  { %2925 = vmatpush.msra.mxu2 %v1533_v22  ;;  %2945 = vmatpush.msra.mxu3 %v1597_v7  ;;  %v1449_v55 = vld [vmem:[%s8765_s4 + $0x910] sm:$0xff] }
 0x4d6   :  { %2907 = vmatpush.msra.mxu1 %v1461_v45  ;;  %v1517_v57 = vld [vmem:[%s8765_s4 + $0xb30] sm:$0xff] }
 0x4d7   :  { %2926 = vmatpush.msra.mxu2 %v1529_v49  ;;  %2946 = vmatpush.msra.mxu3 %v1593_v4  ;;  %v1581_v53 = vld [vmem:[%s8765_s4 + $0xd30] sm:$0xff] }
 0x4d8   :  { %2908 = vmatpush.msra.mxu1 %v1457_v27  ;;  %v1445_v19 = vld [vmem:[%s8765_s4 + $0x8f0] sm:$0xff] }
 0x4d9   :  { %2927 = vmatpush.msra.mxu2 %v1525_v36  ;;  %2947 = vmatpush.msra.mxu3 %v1589_v10  ;;  %v1513_v44 = vld [vmem:[%s8765_s4 + $0xb10] sm:$0xff] }
 0x4da   :  { %2909 = vmatpush.msra.mxu1 %v1453_v11  ;;  %v1577_v15 = vld [vmem:[%s8765_s4 + $0xd10] sm:$0xff] }
 0x4db   :  { %2928 = vmatpush.msra.mxu2 %v1521_v32  ;;  %2948 = vmatpush.msra.mxu3 %v1585_v39  ;;  %v1441_v43 = vld [vmem:[%s8765_s4 + $0x8d0] sm:$0xff] }
 0x4dc   :  { %2910 = vmatpush.msra.mxu1 %v1449_v55  ;;  %v1509_v54 = vld [vmem:[%s8765_s4 + $0xaf0] sm:$0xff] }
 0x4dd   :  { %2929 = vmatpush.msra.mxu2 %v1517_v57  ;;  %2949 = vmatpush.msra.mxu3 %v1581_v53  ;;  %v1573_v47 = vld [vmem:[%s8765_s4 + $0xcf0] sm:$0xff] }
 0x4de   :  { %2911 = vmatpush.msra.mxu1 %v1445_v19  ;;  %v1437_v25 = vld [vmem:[%s8765_s4 + $0x8b0] sm:$0xff] }
 0x4df   :  { %2930 = vmatpush.msra.mxu2 %v1513_v44  ;;  %2950 = vmatpush.msra.mxu3 %v1577_v15  ;;  %v1505_v38 = vld [vmem:[%s8765_s4 + $0xad0] sm:$0xff] }
 0x4e0   :  { %2912 = vmatpush.msra.mxu1 %v1441_v43  ;;  %v1569_v42 = vld [vmem:[%s8765_s4 + $0xcd0] sm:$0xff] }
 0x4e1   :  { %2931 = vmatpush.msra.mxu2 %v1509_v54  ;;  %2951 = vmatpush.msra.mxu3 %v1573_v47  ;;  %v1433_v56 = vld [vmem:[%s8765_s4 + $0x890] sm:$0xff] }
 0x4e2   :  { %2913 = vmatpush.msra.mxu1 %v1437_v25  ;;  %v1501_v12 = vld [vmem:[%s8765_s4 + $0xab0] sm:$0xff] }
 0x4e3   :  { %v1565_v31 = vld [vmem:[%s8765_s4 + $0xcb0] sm:$0xff]  ;;  %2932 = vmatpush.msra.mxu2 %v1505_v38  ;;  %2952 = vmatpush.msra.mxu3 %v1569_v42 }
 0x4e4   :  { %v1429_v5 = vld [vmem:[%s8765_s4 + $0x870] sm:$0xff]  ;;  %2914 = vmatpush.msra.mxu1 %v1433_v56 }
 0x4e5   :  { %v1497_v8 = vld [vmem:[%s8765_s4 + $0xa90] sm:$0xff]  ;;  %2933 = vmatpush.msra.mxu2 %v1501_v12  ;;  %2953 = vmatpush.msra.mxu3 %v1565_v31 }
 0x4e6   :  { %v1561_v29 = vld [vmem:[%s8765_s4 + $0xc90] sm:$0xff]  ;;  %2915 = vmatpush.msra.mxu1 %v1429_v5 }
 0x4e7   :  { %v1425_v63 = vld [vmem:[%s8765_s4 + $0x850] sm:$0xff]  ;;  %2934 = vmatpush.msra.mxu2 %v1497_v8  ;;  %2954 = vmatpush.msra.mxu3 %v1561_v29 }
 0x4e8   :  { %v1493_v40 = vld [vmem:[%s8765_s4 + $0xa70] sm:$0xff]  ;;  %2916 = vmatpush.msra.mxu1 %v1425_v63 }
 0x4e9   :  { %v1557_v58 = vld [vmem:[%s8765_s4 + $0xc70] sm:$0xff]  ;;  %2935 = vmatpush.msra.mxu2 %v1493_v40 }
 0x4ea   :  { %v1421_v59 = vld [vmem:[%s8765_s4 + $0x830] sm:$0xff]  ;;  %2955 = vmatpush.msra.mxu3 %v1557_v58 }
 0x4eb   :  { %v1489_v34 = vld [vmem:[%s8765_s4 + $0xa50] sm:$0xff]  ;;  %2917 = vmatpush.msra.mxu1 %v1421_v59 }
 0x4ec   :  { %v1553_v60 = vld [vmem:[%s8765_s4 + $0xc50] sm:$0xff]  ;;  %2936 = vmatpush.msra.mxu2 %v1489_v34 }
 0x4ed   :  { %v1417_v35 = vld [vmem:[%s8765_s4 + $0x810] sm:$0xff]  ;;  %2956 = vmatpush.msra.mxu3 %v1553_v60 }
 0x4ee   :  { %v1485_v52 = vld [vmem:[%s8765_s4 + $0xa30] sm:$0xff]  ;;  %2918 = vmatpush.msra.mxu1 %v1417_v35 }
 0x4ef   :  { %v1549_v37 = vld [vmem:[%s8765_s4 + $0xc30] sm:$0xff]  ;;  %2937 = vmatpush.msra.mxu2 %v1485_v52  ;;  %2919 = vmatmul.f32.vlgmr.msra.gmra.mxu1 %v5738_v1 }
 0x4f0   :  { %v1669_v23 = vld [vmem:[%s8765_s4 + $0xff0] sm:$0xff]  ;;  %2957 = vmatpush.msra.mxu3 %v1549_v37 }
 0x4f1   :  { %v1481_v3 = vld [vmem:[%s8765_s4 + $0xa10] sm:$0xff]  ;;  %2963 = vmatpush.msrb.mxu1 %v1669_v23 }
 0x4f2   :  { %v1545_v30 = vld [vmem:[%s8765_s4 + $0xc10] sm:$0xff]  ;;  %2938 = vmatpush.msra.mxu2 %v1481_v3 }
 0x4f3   :  { %v1665_v46 = vld [vmem:[%s8765_s4 + $0xfd0] sm:$0xff]  ;;  %2958 = vmatpush.msra.mxu3 %v1545_v30  ;;  %2939 = vmatmul.f32.vlgmr.msra.gmra.mxu2 %v5791_v17 }
 0x4f4   :  { %v1733_v13 = vld [vmem:[%s8765_s4 + $0x11f0] sm:$0xff]  ;;  %2959 = vmatmul.f32.vlgmr.msra.gmra.mxu3 %v5932_v26  ;;  %2964 = vmatpush.msrb.mxu1 %v1665_v46 }
 0x4f5   :  { %v1797_v24 = vld [vmem:[%s8765_s4 + $0x13f0] sm:$0xff]  ;;  %2983 = vmatpush.msrb.mxu2 %v1733_v13 }
 0x4f6   :  { %v1661_v1 = vld [vmem:[%s8765_s4 + $0xfb0] sm:$0xff]  ;;  %3003 = vmatpush.msrb.mxu3 %v1797_v24 }
 0x4f7   :  { %v1729_v21 = vld [vmem:[%s8765_s4 + $0x11d0] sm:$0xff]  ;;  %2965 = vmatpush.msrb.mxu1 %v1661_v1 }
 0x4f8   :  { %v1793_v51 = vld [vmem:[%s8765_s4 + $0x13d0] sm:$0xff]  ;;  %2984 = vmatpush.msrb.mxu2 %v1729_v21 }
 0x4f9   :  { %v1657_v16 = vld [vmem:[%s8765_s4 + $0xf90] sm:$0xff]  ;;  %3004 = vmatpush.msrb.mxu3 %v1793_v51 }
 0x4fa   :  { %v1725_v50 = vld [vmem:[%s8765_s4 + $0x11b0] sm:$0xff]  ;;  %2966 = vmatpush.msrb.mxu1 %v1657_v16 }
 0x4fb   :  { %v1789_v41 = vld [vmem:[%s8765_s4 + $0x13b0] sm:$0xff]  ;;  %2985 = vmatpush.msrb.mxu2 %v1725_v50 }
 0x4fc   :  { %v1653_v22 = vld [vmem:[%s8765_s4 + $0xf70] sm:$0xff]  ;;  %3005 = vmatpush.msrb.mxu3 %v1789_v41 }
 0x4fd   :  { %v1721_v7 = vld [vmem:[%s8765_s4 + $0x1190] sm:$0xff]  ;;  %2967 = vmatpush.msrb.mxu1 %v1653_v22 }
 0x4fe   :  { %v1785_v45 = vld [vmem:[%s8765_s4 + $0x1390] sm:$0xff]  ;;  %2986 = vmatpush.msrb.mxu2 %v1721_v7 }
 0x4ff   :  { %v1649_v49 = vld [vmem:[%s8765_s4 + $0xf50] sm:$0xff]  ;;  %3006 = vmatpush.msrb.mxu3 %v1785_v45 }
 0x500   :  { %v1717_v4 = vld [vmem:[%s8765_s4 + $0x1170] sm:$0xff]  ;;  %2968 = vmatpush.msrb.mxu1 %v1649_v49 }
 0x501   :  { %v1781_v27 = vld [vmem:[%s8765_s4 + $0x1370] sm:$0xff]  ;;  %2987 = vmatpush.msrb.mxu2 %v1717_v4 }
 0x502   :  { %v1645_v36 = vld [vmem:[%s8765_s4 + $0xf30] sm:$0xff]  ;;  %3007 = vmatpush.msrb.mxu3 %v1781_v27 }
 0x503   :  { %v1713_v10 = vld [vmem:[%s8765_s4 + $0x1150] sm:$0xff]  ;;  %2969 = vmatpush.msrb.mxu1 %v1645_v36 }
 0x504   :  { %v1777_v11 = vld [vmem:[%s8765_s4 + $0x1350] sm:$0xff]  ;;  %2988 = vmatpush.msrb.mxu2 %v1713_v10 }
 0x505   :  { %v1641_v32 = vld [vmem:[%s8765_s4 + $0xf10] sm:$0xff]  ;;  %3008 = vmatpush.msrb.mxu3 %v1777_v11 }
 0x506   :  { %v1709_v39 = vld [vmem:[%s8765_s4 + $0x1130] sm:$0xff]  ;;  %2970 = vmatpush.msrb.mxu1 %v1641_v32 }
 0x507   :  { %v1773_v55 = vld [vmem:[%s8765_s4 + $0x1330] sm:$0xff]  ;;  %2989 = vmatpush.msrb.mxu2 %v1709_v39 }
 0x508   :  { %v1637_v57 = vld [vmem:[%s8765_s4 + $0xef0] sm:$0xff]  ;;  %3009 = vmatpush.msrb.mxu3 %v1773_v55 }
 0x509   :  { %v1705_v53 = vld [vmem:[%s8765_s4 + $0x1110] sm:$0xff]  ;;  %2971 = vmatpush.msrb.mxu1 %v1637_v57 }
 0x50a   :  { %v1769_v19 = vld [vmem:[%s8765_s4 + $0x1310] sm:$0xff]  ;;  %2990 = vmatpush.msrb.mxu2 %v1705_v53 }
 0x50b   :  { %v1633_v44 = vld [vmem:[%s8765_s4 + $0xed0] sm:$0xff]  ;;  %3010 = vmatpush.msrb.mxu3 %v1769_v19 }
 0x50c   :  { %v1701_v15 = vld [vmem:[%s8765_s4 + $0x10f0] sm:$0xff]  ;;  %2972 = vmatpush.msrb.mxu1 %v1633_v44 }
 0x50d   :  { %v1765_v43 = vld [vmem:[%s8765_s4 + $0x12f0] sm:$0xff]  ;;  %2991 = vmatpush.msrb.mxu2 %v1701_v15 }
 0x50e   :  { %v1629_v54 = vld [vmem:[%s8765_s4 + $0xeb0] sm:$0xff]  ;;  %3011 = vmatpush.msrb.mxu3 %v1765_v43 }
 0x50f   :  { %v1697_v47 = vld [vmem:[%s8765_s4 + $0x10d0] sm:$0xff]  ;;  %2973 = vmatpush.msrb.mxu1 %v1629_v54 }
 0x510   :  { %v1761_v25 = vld [vmem:[%s8765_s4 + $0x12d0] sm:$0xff]  ;;  %2992 = vmatpush.msrb.mxu2 %v1697_v47 }
 0x511   :  { %v1625_v38 = vld [vmem:[%s8765_s4 + $0xe90] sm:$0xff]  ;;  %3012 = vmatpush.msrb.mxu3 %v1761_v25 }
 0x512   :  { %v1693_v42 = vld [vmem:[%s8765_s4 + $0x10b0] sm:$0xff]  ;;  %2974 = vmatpush.msrb.mxu1 %v1625_v38 }
 0x513   :  { %v1757_v56 = vld [vmem:[%s8765_s4 + $0x12b0] sm:$0xff]  ;;  %2993 = vmatpush.msrb.mxu2 %v1693_v42 }
 0x514   :  { %v1621_v12 = vld [vmem:[%s8765_s4 + $0xe70] sm:$0xff]  ;;  %3013 = vmatpush.msrb.mxu3 %v1757_v56 }
 0x515   :  { %v1689_v31 = vld [vmem:[%s8765_s4 + $0x1090] sm:$0xff]  ;;  %2975 = vmatpush.msrb.mxu1 %v1621_v12 }
 0x516   :  { %v1753_v5 = vld [vmem:[%s8765_s4 + $0x1290] sm:$0xff]  ;;  %2994 = vmatpush.msrb.mxu2 %v1689_v31 }
 0x517   :  { %v1617_v8 = vld [vmem:[%s8765_s4 + $0xe50] sm:$0xff]  ;;  %3014 = vmatpush.msrb.mxu3 %v1753_v5 }
 0x518   :  { %v1685_v29 = vld [vmem:[%s8765_s4 + $0x1070] sm:$0xff]  ;;  %2976 = vmatpush.msrb.mxu1 %v1617_v8 }
 0x519   :  { %v1749_v63 = vld [vmem:[%s8765_s4 + $0x1270] sm:$0xff]  ;;  %2995 = vmatpush.msrb.mxu2 %v1685_v29 }
 0x51a   :  { %v1613_v40 = vld [vmem:[%s8765_s4 + $0xe30] sm:$0xff]  ;;  %3015 = vmatpush.msrb.mxu3 %v1749_v63 }
 0x51b   :  { %v1681_v58 = vld [vmem:[%s8765_s4 + $0x1050] sm:$0xff]  ;;  %2977 = vmatpush.msrb.mxu1 %v1613_v40 }
 0x51c   :  { %v1745_v59 = vld [vmem:[%s8765_s4 + $0x1250] sm:$0xff]  ;;  %2996 = vmatpush.msrb.mxu2 %v1681_v58 }
 0x51d   :  { %v1609_v34 = vld [vmem:[%s8765_s4 + $0xe10] sm:$0xff]  ;;  %3016 = vmatpush.msrb.mxu3 %v1745_v59 }
 0x51e   :  { %v1677_v60 = vld [vmem:[%s8765_s4 + $0x1030] sm:$0xff]  ;;  %2978 = vmatpush.msrb.mxu1 %v1609_v34 }
 0x51f   :  { %v1741_v35 = vld [vmem:[%s8765_s4 + $0x1230] sm:$0xff]  ;;  %2997 = vmatpush.msrb.mxu2 %v1677_v60  ;;  %2979 = vmatmul.f32.vlgmr.msrb.gmra.mxu1 %v5949_v28 }
 0x520   :  { %v1861_v52 = vld [vmem:[%s8765_s4 + $0x15f0] sm:$0xff]  ;;  %3017 = vmatpush.msrb.mxu3 %v1741_v35 }
 0x521   :  { %v1673_v37 = vld [vmem:[%s8765_s4 + $0x1010] sm:$0xff]  ;;  %3023 = vmatpush.msra.mxu1 %v1861_v52 }
 0x522   :  { %v1737_v23 = vld [vmem:[%s8765_s4 + $0x1210] sm:$0xff]  ;;  %2998 = vmatpush.msrb.mxu2 %v1673_v37 }
 0x523   :  { %v1857_v3 = vld [vmem:[%s8765_s4 + $0x15d0] sm:$0xff]  ;;  %3018 = vmatpush.msrb.mxu3 %v1737_v23  ;;  %2999 = vmatmul.f32.vlgmr.msrb.gmra.mxu2 %v5788_v33 }
 0x524   :  { %v1925_v30 = vld [vmem:[%s8765_s4 + $0x17f0] sm:$0xff]  ;;  %3019 = vmatmul.f32.vlgmr.msrb.gmra.mxu3 %v6134_v2  ;;  %3024 = vmatpush.msra.mxu1 %v1857_v3 }
 0x525   :  { %v1989_v46 = vld [vmem:[%s8765_s4 + $0x19f0] sm:$0xff]  ;;  %3043 = vmatpush.msra.mxu2 %v1925_v30 }
 0x526   :  { %v1853_v13 = vld [vmem:[%s8765_s4 + $0x15b0] sm:$0xff]  ;;  %3063 = vmatpush.msra.mxu3 %v1989_v46 }
 0x527   :  { %v1921_v24 = vld [vmem:[%s8765_s4 + $0x17d0] sm:$0xff]  ;;  %3025 = vmatpush.msra.mxu1 %v1853_v13 }
 0x528   :  { %v1985_v1 = vld [vmem:[%s8765_s4 + $0x19d0] sm:$0xff]  ;;  %3044 = vmatpush.msra.mxu2 %v1921_v24 }
 0x529   :  { %v1849_v33 = vld [vmem:[%s8765_s4 + $0x1590] sm:$0xff]  ;;  %3064 = vmatpush.msra.mxu3 %v1985_v1 }
 0x52a   :  { %v1917_v21 = vld [vmem:[%s8765_s4 + $0x17b0] sm:$0xff]  ;;  %3026 = vmatpush.msra.mxu1 %v1849_v33 }
 0x52b   :  { %v1981_v51 = vld [vmem:[%s8765_s4 + $0x19b0] sm:$0xff]  ;;  %3045 = vmatpush.msra.mxu2 %v1917_v21 }
 0x52c   :  { %v1845_v16 = vld [vmem:[%s8765_s4 + $0x1570] sm:$0xff]  ;;  %3065 = vmatpush.msra.mxu3 %v1981_v51 }
 0x52d   :  { %v1913_v50 = vld [vmem:[%s8765_s4 + $0x1790] sm:$0xff]  ;;  %3027 = vmatpush.msra.mxu1 %v1845_v16 }
 0x52e   :  { %v1977_v41 = vld [vmem:[%s8765_s4 + $0x1990] sm:$0xff]  ;;  %3046 = vmatpush.msra.mxu2 %v1913_v50 }
 0x52f   :  { %v1841_v22 = vld [vmem:[%s8765_s4 + $0x1550] sm:$0xff]  ;;  %3066 = vmatpush.msra.mxu3 %v1977_v41 }
 0x530   :  { %v1909_v7 = vld [vmem:[%s8765_s4 + $0x1770] sm:$0xff]  ;;  %3028 = vmatpush.msra.mxu1 %v1841_v22 }
 0x531   :  { %v1973_v45 = vld [vmem:[%s8765_s4 + $0x1970] sm:$0xff]  ;;  %3047 = vmatpush.msra.mxu2 %v1909_v7 }
 0x532   :  { %v1837_v49 = vld [vmem:[%s8765_s4 + $0x1530] sm:$0xff]  ;;  %3067 = vmatpush.msra.mxu3 %v1973_v45 }
 0x533   :  { %v1905_v4 = vld [vmem:[%s8765_s4 + $0x1750] sm:$0xff]  ;;  %3029 = vmatpush.msra.mxu1 %v1837_v49 }
 0x534   :  { %v1969_v27 = vld [vmem:[%s8765_s4 + $0x1950] sm:$0xff]  ;;  %3048 = vmatpush.msra.mxu2 %v1905_v4 }
 0x535   :  { %v1833_v36 = vld [vmem:[%s8765_s4 + $0x1510] sm:$0xff]  ;;  %3068 = vmatpush.msra.mxu3 %v1969_v27 }
 0x536   :  { %v1901_v10 = vld [vmem:[%s8765_s4 + $0x1730] sm:$0xff]  ;;  %3030 = vmatpush.msra.mxu1 %v1833_v36 }
 0x537   :  { %v1965_v11 = vld [vmem:[%s8765_s4 + $0x1930] sm:$0xff]  ;;  %3049 = vmatpush.msra.mxu2 %v1901_v10 }
 0x538   :  { %v1829_v32 = vld [vmem:[%s8765_s4 + $0x14f0] sm:$0xff]  ;;  %3069 = vmatpush.msra.mxu3 %v1965_v11 }
 0x539   :  { %v1897_v39 = vld [vmem:[%s8765_s4 + $0x1710] sm:$0xff]  ;;  %3031 = vmatpush.msra.mxu1 %v1829_v32 }
 0x53a   :  { %v1961_v55 = vld [vmem:[%s8765_s4 + $0x1910] sm:$0xff]  ;;  %3050 = vmatpush.msra.mxu2 %v1897_v39 }
 0x53b   :  { %v1825_v57 = vld [vmem:[%s8765_s4 + $0x14d0] sm:$0xff]  ;;  %3070 = vmatpush.msra.mxu3 %v1961_v55 }
 0x53c   :  { %v1893_v53 = vld [vmem:[%s8765_s4 + $0x16f0] sm:$0xff]  ;;  %3032 = vmatpush.msra.mxu1 %v1825_v57 }
 0x53d   :  { %v1957_v19 = vld [vmem:[%s8765_s4 + $0x18f0] sm:$0xff]  ;;  %3051 = vmatpush.msra.mxu2 %v1893_v53 }
 0x53e   :  { %v1821_v44 = vld [vmem:[%s8765_s4 + $0x14b0] sm:$0xff]  ;;  %3071 = vmatpush.msra.mxu3 %v1957_v19 }
 0x53f   :  { %v1889_v15 = vld [vmem:[%s8765_s4 + $0x16d0] sm:$0xff]  ;;  %3033 = vmatpush.msra.mxu1 %v1821_v44 }
 0x540   :  { %v1953_v43 = vld [vmem:[%s8765_s4 + $0x18d0] sm:$0xff]  ;;  %3052 = vmatpush.msra.mxu2 %v1889_v15 }
 0x541   :  { %v1817_v54 = vld [vmem:[%s8765_s4 + $0x1490] sm:$0xff]  ;;  %3072 = vmatpush.msra.mxu3 %v1953_v43 }
 0x542   :  { %v1885_v47 = vld [vmem:[%s8765_s4 + $0x16b0] sm:$0xff]  ;;  %3034 = vmatpush.msra.mxu1 %v1817_v54 }
 0x543   :  { %v1949_v25 = vld [vmem:[%s8765_s4 + $0x18b0] sm:$0xff]  ;;  %3053 = vmatpush.msra.mxu2 %v1885_v47 }
 0x544   :  { %v1813_v38 = vld [vmem:[%s8765_s4 + $0x1470] sm:$0xff]  ;;  %3073 = vmatpush.msra.mxu3 %v1949_v25 }
 0x545   :  { %v1881_v42 = vld [vmem:[%s8765_s4 + $0x1690] sm:$0xff]  ;;  %3035 = vmatpush.msra.mxu1 %v1813_v38 }
 0x546   :  { %v1945_v56 = vld [vmem:[%s8765_s4 + $0x1890] sm:$0xff]  ;;  %3054 = vmatpush.msra.mxu2 %v1881_v42 }
 0x547   :  { %v1809_v12 = vld [vmem:[%s8765_s4 + $0x1450] sm:$0xff]  ;;  %3074 = vmatpush.msra.mxu3 %v1945_v56 }
 0x548   :  { %v1877_v31 = vld [vmem:[%s8765_s4 + $0x1670] sm:$0xff]  ;;  %3036 = vmatpush.msra.mxu1 %v1809_v12 }
 0x549   :  { %v1941_v5 = vld [vmem:[%s8765_s4 + $0x1870] sm:$0xff]  ;;  %3055 = vmatpush.msra.mxu2 %v1877_v31 }
 0x54a   :  { %v1805_v8 = vld [vmem:[%s8765_s4 + $0x1430] sm:$0xff]  ;;  %3075 = vmatpush.msra.mxu3 %v1941_v5 }
 0x54b   :  { %v1873_v29 = vld [vmem:[%s8765_s4 + $0x1650] sm:$0xff]  ;;  %3037 = vmatpush.msra.mxu1 %v1805_v8 }
 0x54c   :  { %v1937_v63 = vld [vmem:[%s8765_s4 + $0x1850] sm:$0xff]  ;;  %3056 = vmatpush.msra.mxu2 %v1873_v29 }
 0x54d   :  { %v1801_v40 = vld [vmem:[%s8765_s4 + $0x1410] sm:$0xff]  ;;  %3076 = vmatpush.msra.mxu3 %v1937_v63  ;;  %v1286_v63 = vld [vmem:[%s8765_s4 + $0x3f8] sm:$0xff] }
 0x54e   :  { %v1869_v58 = vld [vmem:[%s8765_s4 + $0x1630] sm:$0xff]  ;;  %3038 = vmatpush.msra.mxu1 %v1801_v40 }
 0x54f   :  { %v1933_v59 = vld [vmem:[%s8765_s4 + $0x1830] sm:$0xff]  ;;  %3057 = vmatpush.msra.mxu2 %v1869_v58  ;;  %3039 = vmatmul.f32.vlgmr.msra.gmra.mxu1 %v6148_v20 }
 0x550   :  { %v2053_v34 = vld [vmem:[%s8765_s4 + $0x1bf0] sm:$0xff]  ;;  %3077 = vmatpush.msra.mxu3 %v1933_v59  ;;  %v1282_v59 = vld [vmem:[%s8765_s4 + $0x3d8] sm:$0xff] }
 0x551   :  { %v1865_v60 = vld [vmem:[%s8765_s4 + $0x1610] sm:$0xff]  ;;  %3083 = vmatpush.msrb.mxu1 %v2053_v34  ;;  %v1350_v34 = vld [vmem:[%s8765_s4 + $0x5f8] sm:$0xff] }
 0x552   :  { %v1929_v35 = vld [vmem:[%s8765_s4 + $0x1810] sm:$0xff]  ;;  %3058 = vmatpush.msra.mxu2 %v1865_v60  ;;  %v1414_v60 = vld [vmem:[%s8765_s4 + $0x7f8] sm:$0xff] }
 0x553   :  { %v2049_v52 = vld [vmem:[%s8765_s4 + $0x1bd0] sm:$0xff]  ;;  %3078 = vmatpush.msra.mxu3 %v1929_v35  ;;  %3059 = vmatmul.f32.vlgmr.msra.gmra.mxu2 %v6154_v0  ;;  %v1278_v35 = vld [vmem:[%s8765_s4 + $0x3b8] sm:$0xff] }
 0x554   :  { %v2117_v37 = vld [vmem:[%s8765_s4 + $0x1df0] sm:$0xff]  ;;  %3079 = vmatmul.f32.vlgmr.msra.gmra.mxu3 %v5821_v18  ;;  %3084 = vmatpush.msrb.mxu1 %v2049_v52  ;;  %v1346_v52 = vld [vmem:[%s8765_s4 + $0x5d8] sm:$0xff] }
 0x555   :  { %v2181_v23 = vld [vmem:[%s8765_s4 + $0x1ff0] sm:$0xff]  ;;  %3103 = vmatpush.msrb.mxu2 %v2117_v37  ;;  %v1410_v37 = vld [vmem:[%s8765_s4 + $0x7d8] sm:$0xff] }
 0x556   :  { %v2045_v3 = vld [vmem:[%s8765_s4 + $0x1bb0] sm:$0xff]  ;;  %3123 = vmatpush.msrb.mxu3 %v2181_v23  ;;  %v1274_v23 = vld [vmem:[%s8765_s4 + $0x398] sm:$0xff] }
 0x557   :  { %v2113_v30 = vld [vmem:[%s8765_s4 + $0x1dd0] sm:$0xff]  ;;  %3085 = vmatpush.msrb.mxu1 %v2045_v3  ;;  %v1342_v3 = vld [vmem:[%s8765_s4 + $0x5b8] sm:$0xff] }
 0x558   :  { %v2177_v46 = vld [vmem:[%s8765_s4 + $0x1fd0] sm:$0xff]  ;;  %3104 = vmatpush.msrb.mxu2 %v2113_v30  ;;  %v1406_v30 = vld [vmem:[%s8765_s4 + $0x7b8] sm:$0xff] }
 0x559   :  { %v2041_v13 = vld [vmem:[%s8765_s4 + $0x1b90] sm:$0xff]  ;;  %3124 = vmatpush.msrb.mxu3 %v2177_v46  ;;  %v1270_v46 = vld [vmem:[%s8765_s4 + $0x378] sm:$0xff] }
 0x55a   :  { %v2109_v18 = vld [vmem:[%s8765_s4 + $0x1db0] sm:$0xff]  ;;  %3086 = vmatpush.msrb.mxu1 %v2041_v13  ;;  %v1338_v13 = vld [vmem:[%s8765_s4 + $0x598] sm:$0xff] }
 0x55b   :  { %v2173_v24 = vld [vmem:[%s8765_s4 + $0x1fb0] sm:$0xff]  ;;  %3105 = vmatpush.msrb.mxu2 %v2109_v18  ;;  %v1402_v18 = vld [vmem:[%s8765_s4 + $0x798] sm:$0xff] }
 0x55c   :  { %v2037_v1 = vld [vmem:[%s8765_s4 + $0x1b70] sm:$0xff]  ;;  %3125 = vmatpush.msrb.mxu3 %v2173_v24  ;;  %v1266_v24 = vld [vmem:[%s8765_s4 + $0x358] sm:$0xff] }
 0x55d   :  { %v2105_v33 = vld [vmem:[%s8765_s4 + $0x1d90] sm:$0xff]  ;;  %3087 = vmatpush.msrb.mxu1 %v2037_v1  ;;  %v1334_v1 = vld [vmem:[%s8765_s4 + $0x578] sm:$0xff] }
 0x55e   :  { %v2169_v21 = vld [vmem:[%s8765_s4 + $0x1f90] sm:$0xff]  ;;  %3106 = vmatpush.msrb.mxu2 %v2105_v33  ;;  %v1398_v33 = vld [vmem:[%s8765_s4 + $0x778] sm:$0xff] }
 0x55f   :  { %v2033_v51 = vld [vmem:[%s8765_s4 + $0x1b50] sm:$0xff]  ;;  %3126 = vmatpush.msrb.mxu3 %v2169_v21  ;;  %v1262_v21 = vld [vmem:[%s8765_s4 + $0x338] sm:$0xff] }
 0x560   :  { %v2101_v16 = vld [vmem:[%s8765_s4 + $0x1d70] sm:$0xff]  ;;  %3088 = vmatpush.msrb.mxu1 %v2033_v51  ;;  %v1330_v51 = vld [vmem:[%s8765_s4 + $0x558] sm:$0xff] }
 0x561   :  { %v2165_v50 = vld [vmem:[%s8765_s4 + $0x1f70] sm:$0xff]  ;;  %3107 = vmatpush.msrb.mxu2 %v2101_v16  ;;  %v1394_v16 = vld [vmem:[%s8765_s4 + $0x758] sm:$0xff] }
 0x562   :  { %v2029_v41 = vld [vmem:[%s8765_s4 + $0x1b30] sm:$0xff]  ;;  %3127 = vmatpush.msrb.mxu3 %v2165_v50  ;;  %v1258_v50 = vld [vmem:[%s8765_s4 + $0x318] sm:$0xff] }
 0x563   :  { %v2097_v22 = vld [vmem:[%s8765_s4 + $0x1d50] sm:$0xff]  ;;  %3089 = vmatpush.msrb.mxu1 %v2029_v41  ;;  %v1326_v41 = vld [vmem:[%s8765_s4 + $0x538] sm:$0xff] }
 0x564   :  { %v2161_v7 = vld [vmem:[%s8765_s4 + $0x1f50] sm:$0xff]  ;;  %3108 = vmatpush.msrb.mxu2 %v2097_v22  ;;  %v1390_v22 = vld [vmem:[%s8765_s4 + $0x738] sm:$0xff] }
 0x565   :  { %v2025_v45 = vld [vmem:[%s8765_s4 + $0x1b10] sm:$0xff]  ;;  %3128 = vmatpush.msrb.mxu3 %v2161_v7  ;;  %v1254_v7 = vld [vmem:[%s8765_s4 + $0x2f8] sm:$0xff] }
 0x566   :  { %v2093_v49 = vld [vmem:[%s8765_s4 + $0x1d30] sm:$0xff]  ;;  %3090 = vmatpush.msrb.mxu1 %v2025_v45  ;;  %v1322_v45 = vld [vmem:[%s8765_s4 + $0x518] sm:$0xff] }
 0x567   :  { %v2157_v4 = vld [vmem:[%s8765_s4 + $0x1f30] sm:$0xff]  ;;  %3109 = vmatpush.msrb.mxu2 %v2093_v49  ;;  %v1386_v49 = vld [vmem:[%s8765_s4 + $0x718] sm:$0xff] }
 0x568   :  { %v2021_v27 = vld [vmem:[%s8765_s4 + $0x1af0] sm:$0xff]  ;;  %3129 = vmatpush.msrb.mxu3 %v2157_v4  ;;  %v1250_v4 = vld [vmem:[%s8765_s4 + $0x2d8] sm:$0xff] }
 0x569   :  { %v2089_v36 = vld [vmem:[%s8765_s4 + $0x1d10] sm:$0xff]  ;;  %3091 = vmatpush.msrb.mxu1 %v2021_v27  ;;  %v1318_v27 = vld [vmem:[%s8765_s4 + $0x4f8] sm:$0xff] }
 0x56a   :  { %v2153_v10 = vld [vmem:[%s8765_s4 + $0x1f10] sm:$0xff]  ;;  %3110 = vmatpush.msrb.mxu2 %v2089_v36  ;;  %v1382_v36 = vld [vmem:[%s8765_s4 + $0x6f8] sm:$0xff] }
 0x56b   :  { %v2017_v11 = vld [vmem:[%s8765_s4 + $0x1ad0] sm:$0xff]  ;;  %3130 = vmatpush.msrb.mxu3 %v2153_v10  ;;  %v1246_v10 = vld [vmem:[%s8765_s4 + $0x2b8] sm:$0xff] }
 0x56c   :  { %v2085_v32 = vld [vmem:[%s8765_s4 + $0x1cf0] sm:$0xff]  ;;  %3092 = vmatpush.msrb.mxu1 %v2017_v11  ;;  %v1314_v11 = vld [vmem:[%s8765_s4 + $0x4d8] sm:$0xff] }
 0x56d   :  { %v2149_v39 = vld [vmem:[%s8765_s4 + $0x1ef0] sm:$0xff]  ;;  %3111 = vmatpush.msrb.mxu2 %v2085_v32  ;;  %v1378_v32 = vld [vmem:[%s8765_s4 + $0x6d8] sm:$0xff] }
 0x56e   :  { %v2013_v55 = vld [vmem:[%s8765_s4 + $0x1ab0] sm:$0xff]  ;;  %3131 = vmatpush.msrb.mxu3 %v2149_v39  ;;  %v1242_v39 = vld [vmem:[%s8765_s4 + $0x298] sm:$0xff] }
 0x56f   :  { %v2081_v57 = vld [vmem:[%s8765_s4 + $0x1cd0] sm:$0xff]  ;;  %3093 = vmatpush.msrb.mxu1 %v2013_v55  ;;  %v1310_v55 = vld [vmem:[%s8765_s4 + $0x4b8] sm:$0xff] }
 0x570   :  { %v2145_v53 = vld [vmem:[%s8765_s4 + $0x1ed0] sm:$0xff]  ;;  %3112 = vmatpush.msrb.mxu2 %v2081_v57  ;;  %v1374_v57 = vld [vmem:[%s8765_s4 + $0x6b8] sm:$0xff] }
 0x571   :  { %v2009_v19 = vld [vmem:[%s8765_s4 + $0x1a90] sm:$0xff]  ;;  %3132 = vmatpush.msrb.mxu3 %v2145_v53  ;;  %v1238_v53 = vld [vmem:[%s8765_s4 + $0x278] sm:$0xff] }
 0x572   :  { %v2077_v44 = vld [vmem:[%s8765_s4 + $0x1cb0] sm:$0xff]  ;;  %3094 = vmatpush.msrb.mxu1 %v2009_v19  ;;  %v1306_v19 = vld [vmem:[%s8765_s4 + $0x498] sm:$0xff] }
 0x573   :  { %v2141_v15 = vld [vmem:[%s8765_s4 + $0x1eb0] sm:$0xff]  ;;  %3113 = vmatpush.msrb.mxu2 %v2077_v44  ;;  %v1370_v44 = vld [vmem:[%s8765_s4 + $0x698] sm:$0xff] }
 0x574   :  { %v2005_v43 = vld [vmem:[%s8765_s4 + $0x1a70] sm:$0xff]  ;;  %3133 = vmatpush.msrb.mxu3 %v2141_v15  ;;  %v1234_v15 = vld [vmem:[%s8765_s4 + $0x258] sm:$0xff] }
 0x575   :  { %v2073_v54 = vld [vmem:[%s8765_s4 + $0x1c90] sm:$0xff]  ;;  %3095 = vmatpush.msrb.mxu1 %v2005_v43  ;;  %v1302_v43 = vld [vmem:[%s8765_s4 + $0x478] sm:$0xff] }
 0x576   :  { %v2137_v47 = vld [vmem:[%s8765_s4 + $0x1e90] sm:$0xff]  ;;  %3114 = vmatpush.msrb.mxu2 %v2073_v54  ;;  %v1366_v54 = vld [vmem:[%s8765_s4 + $0x678] sm:$0xff] }
 0x577   :  { %v2001_v25 = vld [vmem:[%s8765_s4 + $0x1a50] sm:$0xff]  ;;  %3134 = vmatpush.msrb.mxu3 %v2137_v47  ;;  %v1230_v47 = vld [vmem:[%s8765_s4 + $0x238] sm:$0xff] }
 0x578   :  { %v2069_v38 = vld [vmem:[%s8765_s4 + $0x1c70] sm:$0xff]  ;;  %3096 = vmatpush.msrb.mxu1 %v2001_v25  ;;  %v1298_v25 = vld [vmem:[%s8765_s4 + $0x458] sm:$0xff] }
 0x579   :  { %v2133_v42 = vld [vmem:[%s8765_s4 + $0x1e70] sm:$0xff]  ;;  %3115 = vmatpush.msrb.mxu2 %v2069_v38  ;;  %v1362_v38 = vld [vmem:[%s8765_s4 + $0x658] sm:$0xff] }
 0x57a   :  { %v1997_v56 = vld [vmem:[%s8765_s4 + $0x1a30] sm:$0xff]  ;;  %3135 = vmatpush.msrb.mxu3 %v2133_v42  ;;  %v1226_v42 = vld [vmem:[%s8765_s4 + $0x218] sm:$0xff] }
 0x57b   :  { %v2065_v12 = vld [vmem:[%s8765_s4 + $0x1c50] sm:$0xff]  ;;  %3097 = vmatpush.msrb.mxu1 %v1997_v56  ;;  %v1294_v56 = vld [vmem:[%s8765_s4 + $0x438] sm:$0xff] }
 0x57c   :  { %v2129_v31 = vld [vmem:[%s8765_s4 + $0x1e50] sm:$0xff]  ;;  %3116 = vmatpush.msrb.mxu2 %v2065_v12  ;;  %v1358_v12 = vld [vmem:[%s8765_s4 + $0x638] sm:$0xff] }
 0x57d   :  { %v1993_v5 = vld [vmem:[%s8765_s4 + $0x1a10] sm:$0xff]  ;;  %3136 = vmatpush.msrb.mxu3 %v2129_v31  ;;  %v1542_v31 = vld [vmem:[%s8765_s4 + $0xbf8] sm:$0xff] }
 0x57e   :  { %v2061_v8 = vld [vmem:[%s8765_s4 + $0x1c30] sm:$0xff]  ;;  %3098 = vmatpush.msrb.mxu1 %v1993_v5  ;;  %v1290_v5 = vld [vmem:[%s8765_s4 + $0x418] sm:$0xff] }
 0x57f   :  { %v2125_v29 = vld [vmem:[%s8765_s4 + $0x1e30] sm:$0xff]  ;;  %3117 = vmatpush.msrb.mxu2 %v2061_v8  ;;  %3099 = vmatmul.f32.vlgmr.msrb.gmra.mxu1 %v6301_v14  ;;  %v2520_v8 = vpop.f32.mrf.mxu2 }
 0x580   :  { %v2057_v40 = vld [vmem:[%s8765_s4 + $0x1c10] sm:$0xff]  ;;  %3137 = vmatpush.msrb.mxu3 %v2125_v29  ;;  %3163 = vmatpush.msra.mxu1 %v1286_v63  ;;  %v1354_v29 = vld [vmem:[%s8765_s4 + $0x618] sm:$0xff] }
 0x581   :  { %v2121_v58 = vld [vmem:[%s8765_s4 + $0x1e10] sm:$0xff]  ;;  %3118 = vmatpush.msrb.mxu2 %v2057_v40  ;;  %v1538_v63 = vld [vmem:[%s8765_s4 + $0xbd8] sm:$0xff] }
 0x582   :  { %3138 = vmatpush.msrb.mxu3 %v2121_v58  ;;  %3119 = vmatmul.f32.vlgmr.msrb.gmra.mxu2 %v6307_v61  ;;  %v1606_v40 = vld [vmem:[%s8765_s4 + $0xdf8] sm:$0xff] }
 0x583   :  { %3139 = vmatmul.f32.vlgmr.msrb.gmra.mxu3 %v6444_v48  ;;  %3164 = vmatpush.msra.mxu1 %v1282_v59  ;;  %v1670_v58 = vld [vmem:[%s8765_s4 + $0xff8] sm:$0xff]  ;;  %v2540_v59 = vpop.f32.mrf.mxu3 }
 0x584   :  { %3183 = vmatpush.msra.mxu2 %v1350_v34  ;;  %3203 = vmatpush.msra.mxu3 %v1414_v60  ;;  %v1602_v34 = vld [vmem:[%s8765_s4 + $0xdd8] sm:$0xff] }
 0x585   :  { %3165 = vmatpush.msra.mxu1 %v1278_v35  ;;  %v1666_v60 = vld [vmem:[%s8765_s4 + $0xfd8] sm:$0xff]  ;;  %v2560_v35 = vpop.f32.mrf.mxu1 }
 0x586   :  { %3184 = vmatpush.msra.mxu2 %v1346_v52  ;;  %3204 = vmatpush.msra.mxu3 %v1410_v37  ;;  %v1662_v52 = vld [vmem:[%s8765_s4 + $0xfb8] sm:$0xff]  ;;  %v2541_v37 = vadd.f32 %v2540_v59, %v2520_v8 }
 0x587   :  { %3166 = vmatpush.msra.mxu1 %v1274_v23  ;;  %v1526_v23 = vld [vmem:[%s8765_s4 + $0xb78] sm:$0xff] }
 0x588   :  { %3185 = vmatpush.msra.mxu2 %v1342_v3  ;;  %3205 = vmatpush.msra.mxu3 %v1406_v30  ;;  %v2580_v3 = vpop.f32.mrf.mxu2  ;;  %v1594_v30 = vld [vmem:[%s8765_s4 + $0xd98] sm:$0xff] }
 0x589   :  { %3167 = vmatpush.msra.mxu1 %v1270_v46  ;;  %v1658_v46 = vld [vmem:[%s8765_s4 + $0xf98] sm:$0xff] }
 0x58a   :  { %3186 = vmatpush.msra.mxu2 %v1338_v13  ;;  %3206 = vmatpush.msra.mxu3 %v1402_v18  ;;  %v2561_v13 = vadd.f32 %v2560_v35, %v2541_v37  ;;  %v1522_v18 = vld [vmem:[%s8765_s4 + $0xb58] sm:$0xff] }
 0x58b   :  { %3168 = vmatpush.msra.mxu1 %v1266_v24  ;;  %v1590_v24 = vld [vmem:[%s8765_s4 + $0xd78] sm:$0xff] }
 0x58c   :  { %3187 = vmatpush.msra.mxu2 %v1334_v1  ;;  %3207 = vmatpush.msra.mxu3 %v1398_v33  ;;  %v1654_v1 = vld [vmem:[%s8765_s4 + $0xf78] sm:$0xff]  ;;  %v2581_v33 = vadd.f32 %v2580_v3, %v2561_v13 }
 0x58d   :  { %3169 = vmatpush.msra.mxu1 %v1262_v21  ;;  %v1518_v21 = vld [vmem:[%s8765_s4 + $0xb38] sm:$0xff] }
 0x58e   :  { %3188 = vmatpush.msra.mxu2 %v1330_v51  ;;  %3208 = vmatpush.msra.mxu3 %v1394_v16  ;;  %v1586_v51 = vld [vmem:[%s8765_s4 + $0xd58] sm:$0xff] }
 0x58f   :  { %3170 = vmatpush.msra.mxu1 %v1258_v50  ;;  %v1650_v16 = vld [vmem:[%s8765_s4 + $0xf58] sm:$0xff] }
 0x590   :  { %3189 = vmatpush.msra.mxu2 %v1326_v41  ;;  %3209 = vmatpush.msra.mxu3 %v1390_v22  ;;  %v1514_v50 = vld [vmem:[%s8765_s4 + $0xb18] sm:$0xff]  ;;  %v2600_v41 = vpop.f32.mrf.mxu3  ;;  %v2620_v22 = vpop.f32.mrf.mxu1 }
 0x591   :  { %3171 = vmatpush.msra.mxu1 %v1254_v7  ;;  %v1582_v7 = vld [vmem:[%s8765_s4 + $0xd38] sm:$0xff] }
 0x592   :  { %3190 = vmatpush.msra.mxu2 %v1322_v45  ;;  %3210 = vmatpush.msra.mxu3 %v1386_v49  ;;  %v1646_v45 = vld [vmem:[%s8765_s4 + $0xf38] sm:$0xff]  ;;  %v2601_v49 = vadd.f32 %v2600_v41, %v2581_v33 }
 0x593   :  { %3172 = vmatpush.msra.mxu1 %v1250_v4  ;;  %v1510_v4 = vld [vmem:[%s8765_s4 + $0xaf8] sm:$0xff] }
 0x594   :  { %3191 = vmatpush.msra.mxu2 %v1318_v27  ;;  %3211 = vmatpush.msra.mxu3 %v1382_v36  ;;  %v2640_v27 = vpop.f32.mrf.mxu2  ;;  %v1578_v36 = vld [vmem:[%s8765_s4 + $0xd18] sm:$0xff] }
 0x595   :  { %3173 = vmatpush.msra.mxu1 %v1246_v10  ;;  %v1642_v10 = vld [vmem:[%s8765_s4 + $0xf18] sm:$0xff] }
 0x596   :  { %3192 = vmatpush.msra.mxu2 %v1314_v11  ;;  %3212 = vmatpush.msra.mxu3 %v1378_v32  ;;  %v2621_v11 = vadd.f32 %v2620_v22, %v2601_v49  ;;  %v1506_v32 = vld [vmem:[%s8765_s4 + $0xad8] sm:$0xff] }
 0x597   :  { %3174 = vmatpush.msra.mxu1 %v1242_v39  ;;  %v1574_v39 = vld [vmem:[%s8765_s4 + $0xcf8] sm:$0xff] }
 0x598   :  { %3193 = vmatpush.msra.mxu2 %v1310_v55  ;;  %3213 = vmatpush.msra.mxu3 %v1374_v57  ;;  %v1638_v55 = vld [vmem:[%s8765_s4 + $0xef8] sm:$0xff]  ;;  %v2641_v57 = vadd.f32 %v2640_v27, %v2621_v11 }
 0x599   :  { %3175 = vmatpush.msra.mxu1 %v1238_v53  ;;  %v1502_v53 = vld [vmem:[%s8765_s4 + $0xab8] sm:$0xff] }
 0x59a   :  { %3194 = vmatpush.msra.mxu2 %v1306_v19  ;;  %3214 = vmatpush.msra.mxu3 %v1370_v44  ;;  %v1570_v19 = vld [vmem:[%s8765_s4 + $0xcd8] sm:$0xff] }
 0x59b   :  { %3176 = vmatpush.msra.mxu1 %v1234_v15  ;;  %v1634_v44 = vld [vmem:[%s8765_s4 + $0xed8] sm:$0xff] }
 0x59c   :  { %3195 = vmatpush.msra.mxu2 %v1302_v43  ;;  %3215 = vmatpush.msra.mxu3 %v1366_v54  ;;  %v1498_v15 = vld [vmem:[%s8765_s4 + $0xa98] sm:$0xff]  ;;  %v2660_v43 = vpop.f32.mrf.mxu3  ;;  %v2680_v54 = vpop.f32.mrf.mxu1 }
 0x59d   :  { %3177 = vmatpush.msra.mxu1 %v1230_v47  ;;  %v1566_v47 = vld [vmem:[%s8765_s4 + $0xcb8] sm:$0xff] }
 0x59e   :  { %3196 = vmatpush.msra.mxu2 %v1298_v25  ;;  %3216 = vmatpush.msra.mxu3 %v1362_v38  ;;  %v1630_v25 = vld [vmem:[%s8765_s4 + $0xeb8] sm:$0xff]  ;;  %v2661_v38 = vadd.f32 %v2660_v43, %v2641_v57 }
 0x59f   :  { %3178 = vmatpush.msra.mxu1 %v1226_v42  ;;  %v1494_v42 = vld [vmem:[%s8765_s4 + $0xa78] sm:$0xff] }
 0x5a0   :  { %3197 = vmatpush.msra.mxu2 %v1294_v56  ;;  %3217 = vmatpush.msra.mxu3 %v1358_v12  ;;  %v2700_v56 = vpop.f32.mrf.mxu2  ;;  %v1562_v12 = vld [vmem:[%s8765_s4 + $0xc98] sm:$0xff] }
 0x5a1   :  { %3179 = vmatmul.f32.vlgmr.msra.gmra.mxu1 %v5710_v9  ;;  %v1534_v9 = vld [vmem:[%s8765_s4 + $0xbb8] sm:$0xff] }
 0x5a2   :  { %3243 = vmatpush.msrb.mxu1 %v1542_v31  ;;  %3198 = vmatpush.msra.mxu2 %v1290_v5  ;;  %v1626_v31 = vld [vmem:[%s8765_s4 + $0xe98] sm:$0xff]  ;;  %v2681_v5 = vadd.f32 %v2680_v54, %v2661_v38 }
 0x5a3   :  { %3218 = vmatpush.msra.mxu3 %v1354_v29  ;;  %3199 = vmatmul.f32.vlgmr.msra.gmra.mxu2 %v5713_v62  ;;  %v1530_v62 = vld [vmem:[%s8765_s4 + $0xb98] sm:$0xff] }
 0x5a4   :  { %3219 = vmatmul.f32.vlgmr.msra.gmra.mxu3 %v5774_v6  ;;  %3244 = vmatpush.msrb.mxu1 %v1538_v63  ;;  %v1598_v6 = vld [vmem:[%s8765_s4 + $0xdb8] sm:$0xff] }
 0x5a5   :  { %3263 = vmatpush.msrb.mxu2 %v1606_v40  ;;  %3283 = vmatpush.msrb.mxu3 %v1670_v58  ;;  %v1490_v8 = vld [vmem:[%s8765_s4 + $0xa58] sm:$0xff]  ;;  %v2701_v40 = vadd.f32 %v2700_v56, %v2681_v5 }
 0x5a6   :  { %3245 = vmatpush.msrb.mxu1 %v1534_v9  ;;  %v1558_v29 = vld [vmem:[%s8765_s4 + $0xc78] sm:$0xff] }
 0x5a7   :  { %3264 = vmatpush.msrb.mxu2 %v1602_v34  ;;  %3284 = vmatpush.msrb.mxu3 %v1666_v60  ;;  %v1622_v63 = vld [vmem:[%s8765_s4 + $0xe78] sm:$0xff]  ;;  %v2720_v60 = vpop.f32.mrf.mxu3 }
 0x5a8   :  { %3246 = vmatpush.msrb.mxu1 %v1530_v62  ;;  %v1486_v58 = vld [vmem:[%s8765_s4 + $0xa38] sm:$0xff]  ;;  %v2740_v62 = vpop.f32.mrf.mxu1  ;;  %v2760_v37 = vpop.f32.mrf.mxu2 }
 0x5a9   :  { %3265 = vmatpush.msrb.mxu2 %v1598_v6  ;;  %3285 = vmatpush.msrb.mxu3 %v1662_v52  ;;  %v1554_v9 = vld [vmem:[%s8765_s4 + $0xc58] sm:$0xff]  ;;  %v2721_v52 = vadd.f32 %v2720_v60, %v2701_v40 }
 0x5aa   :  { %3247 = vmatpush.msrb.mxu1 %v1526_v23  ;;  %v1618_v59 = vld [vmem:[%s8765_s4 + $0xe58] sm:$0xff] }
 0x5ab   :  { %3266 = vmatpush.msrb.mxu2 %v1594_v30  ;;  %3286 = vmatpush.msrb.mxu3 %v1658_v46  ;;  %v1482_v34 = vld [vmem:[%s8765_s4 + $0xa18] sm:$0xff]  ;;  %v2741_v30 = vadd.f32 %v2740_v62, %v2721_v52 }
 0x5ac   :  { %3248 = vmatpush.msrb.mxu1 %v1522_v18  ;;  %v1550_v35 = vld [vmem:[%s8765_s4 + $0xc38] sm:$0xff] }
 0x5ad   :  { %3267 = vmatpush.msrb.mxu2 %v1590_v24  ;;  %3287 = vmatpush.msrb.mxu3 %v1654_v1  ;;  %v1614_v6 = vld [vmem:[%s8765_s4 + $0xe38] sm:$0xff]  ;;  %v2761_v18 = vadd.f32 %v2760_v37, %v2741_v30 }
 0x5ae   :  { %3249 = vmatpush.msrb.mxu1 %v1518_v21  ;;  %v1798_v23 = vld [vmem:[%s8765_s4 + $0x13f8] sm:$0xff] }
 0x5af   :  { %3268 = vmatpush.msrb.mxu2 %v1586_v51  ;;  %3288 = vmatpush.msrb.mxu3 %v1650_v16  ;;  %v1546_v3 = vld [vmem:[%s8765_s4 + $0xc18] sm:$0xff]  ;;  %v2780_v51 = vpop.f32.mrf.mxu3 }
 0x5b0   :  { %3250 = vmatpush.msrb.mxu1 %v1514_v50  ;;  %v1610_v46 = vld [vmem:[%s8765_s4 + $0xe18] sm:$0xff]  ;;  %v2800_v16 = vpop.f32.mrf.mxu1  ;;  %v2781_v50 = vadd.f32 %v2780_v51, %v2761_v18  ;;  %v2820_v22 = vpop.f32.mrf.mxu2 }
 0x5b1   :  { %3269 = vmatpush.msrb.mxu2 %v1582_v7  ;;  %3289 = vmatpush.msrb.mxu3 %v1646_v45  ;;  %v1794_v13 = vld [vmem:[%s8765_s4 + $0x13d8] sm:$0xff] }
 0x5b2   :  { %3251 = vmatpush.msrb.mxu1 %v1510_v4  ;;  %v1862_v24 = vld [vmem:[%s8765_s4 + $0x15f8] sm:$0xff]  ;;  %v2801_v45 = vadd.f32 %v2800_v16, %v2781_v50 }
 0x5b3   :  { %3270 = vmatpush.msrb.mxu2 %v1578_v36  ;;  %3290 = vmatpush.msrb.mxu3 %v1642_v10  ;;  %v1926_v1 = vld [vmem:[%s8765_s4 + $0x17f8] sm:$0xff] }
 0x5b4   :  { %3252 = vmatpush.msrb.mxu1 %v1506_v32  ;;  %v1858_v33 = vld [vmem:[%s8765_s4 + $0x15d8] sm:$0xff]  ;;  %v8327_v36 = vadd.f32 %v2820_v22, %v2801_v45 }
 0x5b5   :  { %3271 = vmatpush.msrb.mxu2 %v1574_v39  ;;  %3291 = vmatpush.msrb.mxu3 %v1638_v55  ;;  %v1922_v21 = vld [vmem:[%s8765_s4 + $0x17d8] sm:$0xff] }
 0x5b6   :  { %3253 = vmatpush.msrb.mxu1 %v1502_v53  ;;  %v1918_v41 = vld [vmem:[%s8765_s4 + $0x17b8] sm:$0xff]  ;;  %v3471_v53 = vsel %vm3463_vm8, %v8327_v36, 0.0 }
 0x5b7   :  { %3272 = vmatpush.msrb.mxu2 %v1570_v19  ;;  %3292 = vmatpush.msrb.mxu3 %v1634_v44  ;;  %v1782_v7 = vld [vmem:[%s8765_s4 + $0x1378] sm:$0xff]  ;;  %v3493_v19 = vmul.f32 %v8327_v36, %v8327_v36 }
 0x5b8   :  { %3254 = vmatpush.msrb.mxu1 %v1498_v15  ;;  %v1850_v49 = vld [vmem:[%s8765_s4 + $0x1598] sm:$0xff] }
 0x5b9   :  { %3273 = vmatpush.msrb.mxu2 %v1566_v47  ;;  %3293 = vmatpush.msrb.mxu3 %v1630_v25  ;;  %v1914_v4 = vld [vmem:[%s8765_s4 + $0x1798] sm:$0xff]  ;;  %v3472_v25 = vrot.slane %v3471_v53, 4 }
 0x5ba   :  { %3255 = vmatpush.msrb.mxu1 %v1494_v42  ;;  %v1778_v27 = vld [vmem:[%s8765_s4 + $0x1358] sm:$0xff]  ;;  %v3503_v42 = vsel %vm3463_vm8, %v3493_v19, 0.0 }
 0x5bb   :  { %3274 = vmatpush.msrb.mxu2 %v1562_v12  ;;  %3294 = vmatpush.msrb.mxu3 %v1626_v31  ;;  %v1846_v10 = vld [vmem:[%s8765_s4 + $0x1578] sm:$0xff] }
 0x5bc   :  { %3256 = vmatpush.msrb.mxu1 %v1490_v8  ;;  %v1910_v11 = vld [vmem:[%s8765_s4 + $0x1778] sm:$0xff] }
 0x5bd   :  { %3275 = vmatpush.msrb.mxu2 %v1558_v29  ;;  %3295 = vmatpush.msrb.mxu3 %v1622_v63  ;;  %v1774_v32 = vld [vmem:[%s8765_s4 + $0x1338] sm:$0xff]  ;;  %v3473_v29 = vadd.f32 %v3472_v25, %v3471_v53  ;;  %v3504_v63 = vrot.slane %v3503_v42, 4 }
 0x5be   :  { %3257 = vmatpush.msrb.mxu1 %v1486_v58  ;;  %v1842_v39 = vld [vmem:[%s8765_s4 + $0x1558] sm:$0xff] }
 0x5bf   :  { %3276 = vmatpush.msrb.mxu2 %v1554_v9  ;;  %3296 = vmatpush.msrb.mxu3 %v1618_v59  ;;  %v1906_v55 = vld [vmem:[%s8765_s4 + $0x1758] sm:$0xff]  ;;  %v3474_v62 = vrot.slane %v3473_v29, 2 }
 0x5c0   :  { %3258 = vmatpush.msrb.mxu1 %v1482_v34  ;;  %v1770_v57 = vld [vmem:[%s8765_s4 + $0x1318] sm:$0xff] }
 0x5c1   :  { %3277 = vmatpush.msrb.mxu2 %v1550_v35  ;;  %3297 = vmatpush.msrb.mxu3 %v1614_v6  ;;  %v1838_v44 = vld [vmem:[%s8765_s4 + $0x1538] sm:$0xff]  ;;  %v3505_v35 = vadd.f32 %v3504_v63, %v3503_v42 }
 0x5c2   :  { %3259 = vmatmul.f32.vlgmr.msrb.gmra.mxu1 %v5791_v17  ;;  %v1790_v17 = vld [vmem:[%s8765_s4 + $0x13b8] sm:$0xff] }
 0x5c3   :  { %3323 = vmatpush.msra.mxu1 %v1798_v23  ;;  %3278 = vmatpush.msrb.mxu2 %v1546_v3  ;;  %v1902_v15 = vld [vmem:[%s8765_s4 + $0x1738] sm:$0xff] }
 0x5c4   :  { %3298 = vmatpush.msrb.mxu3 %v1610_v46  ;;  %3279 = vmatmul.f32.vlgmr.msrb.gmra.mxu2 %v5932_v26  ;;  %v1786_v26 = vld [vmem:[%s8765_s4 + $0x1398] sm:$0xff]  ;;  %v3475_v46 = vadd.f32 %v3474_v62, %v3473_v29 }
 0x5c5   :  { %3299 = vmatmul.f32.vlgmr.msrb.gmra.mxu3 %v5949_v28  ;;  %3324 = vmatpush.msra.mxu1 %v1794_v13  ;;  %v1854_v28 = vld [vmem:[%s8765_s4 + $0x15b8] sm:$0xff]  ;;  %v3506_v13 = vrot.slane %v3505_v35, 2 }
 0x5c6   :  { %3343 = vmatpush.msra.mxu2 %v1862_v24  ;;  %3363 = vmatpush.msra.mxu3 %v1926_v1  ;;  %v1766_v43 = vld [vmem:[%s8765_s4 + $0x12f8] sm:$0xff]  ;;  %v2840_v24 = vpop.f32.mrf.mxu3  ;;  %v3476_v16 = vrot.slane %v3475_v46, 1 }
 0x5c7   :  { %3325 = vmatpush.msra.mxu1 %v1790_v17  ;;  %v1834_v54 = vld [vmem:[%s8765_s4 + $0x1518] sm:$0xff] }
 0x5c8   :  { %3344 = vmatpush.msra.mxu2 %v1858_v33  ;;  %3364 = vmatpush.msra.mxu3 %v1922_v21  ;;  %v1898_v47 = vld [vmem:[%s8765_s4 + $0x1718] sm:$0xff]  ;;  %v2860_v33 = vpop.f32.mrf.mxu1 }
 0x5c9   :  { %3326 = vmatpush.msra.mxu1 %v1786_v26  ;;  %v1762_v38 = vld [vmem:[%s8765_s4 + $0x12d8] sm:$0xff]  ;;  %v3507_v26 = vadd.f32 %v3506_v13, %v3505_v35  ;;  %v2861_v22 = vadd.f32 %v2860_v33, %v2840_v24 }
 0x5ca   :  { %3345 = vmatpush.msra.mxu2 %v1854_v28  ;;  %3365 = vmatpush.msra.mxu3 %v1918_v41  ;;  %v1830_v56 = vld [vmem:[%s8765_s4 + $0x14f8] sm:$0xff]  ;;  %v2880_v28 = vpop.f32.mrf.mxu2 }
 0x5cb   :  { %3327 = vmatpush.msra.mxu1 %v1782_v7  ;;  %v1894_v12 = vld [vmem:[%s8765_s4 + $0x16f8] sm:$0xff] }
 0x5cc   :  { %3346 = vmatpush.msra.mxu2 %v1850_v49  ;;  %3366 = vmatpush.msra.mxu3 %v1914_v4  ;;  %v1758_v31 = vld [vmem:[%s8765_s4 + $0x12b8] sm:$0xff]  ;;  %v3477_v49 = vadd.f32 %v3476_v16, %v3475_v46  ;;  %v3508_v4 = vrot.slane %v3507_v26, 1 }
 0x5cd   :  { %3328 = vmatpush.msra.mxu1 %v1778_v27  ;;  %v1826_v5 = vld [vmem:[%s8765_s4 + $0x14d8] sm:$0xff]  ;;  %v2881_v27 = vadd.f32 %v2880_v28, %v2861_v22 }
 0x5ce   :  { %3347 = vmatpush.msra.mxu2 %v1846_v10  ;;  %3367 = vmatpush.msra.mxu3 %v1910_v11  ;;  %v1890_v8 = vld [vmem:[%s8765_s4 + $0x16d8] sm:$0xff]  ;;  %v3509_v53 = vadd.f32 %v3508_v4, %v3507_v26  ;;  %v8472_v19 = vmul.f32 0.5, %v3477_v49 }
 0x5cf   :  { %3329 = vmatpush.msra.mxu1 %v1774_v32  ;;  %v1754_v40 = vld [vmem:[%s8765_s4 + $0x1298] sm:$0xff]  ;;  %v2900_v32 = vpop.f32.mrf.mxu3 }
 0x5d0   :  { %3348 = vmatpush.msra.mxu2 %v1842_v39  ;;  %3368 = vmatpush.msra.mxu3 %v1906_v55  ;;  %v1822_v58 = vld [vmem:[%s8765_s4 + $0x14b8] sm:$0xff]  ;;  %v2920_v55 = vpop.f32.mrf.mxu1 }
 0x5d1   :  { %3330 = vmatpush.msra.mxu1 %v1770_v57  ;;  %v1886_v9 = vld [vmem:[%s8765_s4 + $0x16b8] sm:$0xff] }
 0x5d2   :  { %3349 = vmatpush.msra.mxu2 %v1838_v44  ;;  %3369 = vmatpush.msra.mxu3 %v1902_v15  ;;  %v1750_v59 = vld [vmem:[%s8765_s4 + $0x1278] sm:$0xff]  ;;  %v2901_v44 = vadd.f32 %v2900_v32, %v2881_v27 }
 0x5d3   :  { %3331 = vmatpush.msra.mxu1 %v1766_v43  ;;  %v1818_v34 = vld [vmem:[%s8765_s4 + $0x1498] sm:$0xff] }
 0x5d4   :  { %3350 = vmatpush.msra.mxu2 %v1834_v54  ;;  %3370 = vmatpush.msra.mxu3 %v1898_v47  ;;  %v1882_v60 = vld [vmem:[%s8765_s4 + $0x1698] sm:$0xff]  ;;  %v2940_v54 = vpop.f32.mrf.mxu2  ;;  %v2921_v25 = vadd.f32 %v2920_v55, %v2901_v44 }
 0x5d5   :  { %3332 = vmatpush.msra.mxu1 %v1762_v38  ;;  %v1746_v6 = vld [vmem:[%s8765_s4 + $0x1258] sm:$0xff] }
 0x5d6   :  { %3351 = vmatpush.msra.mxu2 %v1830_v56  ;;  %3371 = vmatpush.msra.mxu3 %v1894_v12  ;;  %v1814_v52 = vld [vmem:[%s8765_s4 + $0x1478] sm:$0xff]  ;;  %v3529_v12 = vmul.f32 0.5, %v3509_v53 }
 0x5d7   :  { %3333 = vmatpush.msra.mxu1 %v1758_v31  ;;  %v1878_v37 = vld [vmem:[%s8765_s4 + $0x1678] sm:$0xff]  ;;  %v3533_v31 = vmul.f32 %v8472_v19, %v8472_v19  ;;  %v2960_v63 = vpop.f32.mrf.mxu3 }
 0x5d8   :  { %3352 = vmatpush.msra.mxu2 %v1826_v5  ;;  %3372 = vmatpush.msra.mxu3 %v1890_v8  ;;  %v1742_v23 = vld [vmem:[%s8765_s4 + $0x1238] sm:$0xff]  ;;  %v2941_v5 = vadd.f32 %v2940_v54, %v2921_v25  ;;  %v3630_v25 = vld [vmem:[%s8766_s5 + $0xf0] sm:$0xff] }
 0x5d9   :  { %3334 = vmatpush.msra.mxu1 %v1754_v40  ;;  %v1810_v3 = vld [vmem:[%s8765_s4 + $0x1458] sm:$0xff] }
 0x5da   :  { %3353 = vmatpush.msra.mxu2 %v1822_v58  ;;  %3373 = vmatpush.msra.mxu3 %v1886_v9  ;;  %v1874_v30 = vld [vmem:[%s8765_s4 + $0x1658] sm:$0xff]  ;;  %v2961_v62 = vadd.f32 %v2960_v63, %v2941_v5  ;;  %v3646_v5 = vld [vmem:[%s8766_s5 + $0x170] sm:$0xff] }
 0x5db   :  { %3335 = vmatpush.msra.mxu1 %v1750_v59  ;;  %v1738_v18 = vld [vmem:[%s8765_s4 + $0x1218] sm:$0xff]  ;;  %v2980_v59 = vpop.f32.mrf.mxu1 }
 0x5dc   :  { %3354 = vmatpush.msra.mxu2 %v1818_v34  ;;  %3374 = vmatpush.msra.mxu3 %v1882_v60  ;;  %v1806_v1 = vld [vmem:[%s8765_s4 + $0x1438] sm:$0xff]  ;;  %v3537_v60 = vsub.f32 %v3529_v12, %v3533_v31 }
 0x5dd   :  { %3336 = vmatpush.msra.mxu1 %v1746_v6  ;;  %v1870_v17 = vld [vmem:[%s8765_s4 + $0x1638] sm:$0xff] }
 0x5de   :  { %3355 = vmatpush.msra.mxu2 %v1814_v52  ;;  %3375 = vmatpush.msra.mxu3 %v1878_v37  ;;  %v2054_v21 = vld [vmem:[%s8765_s4 + $0x1bf8] sm:$0xff]  ;;  %v3000_v52 = vpop.f32.mrf.mxu2  ;;  %v3541_v13 = vmax.f32 %v3537_v60, 0.0  ;;  %v3626_v60 = vld [vmem:[%s8766_s5 + $0xd0] sm:$0xff] }
 0x5df   :  { %3337 = vmatpush.msra.mxu1 %v1742_v23  ;;  %v1802_v51 = vld [vmem:[%s8765_s4 + $0x1418] sm:$0xff]  ;;  %v2981_v23 = vadd.f32 %v2980_v59, %v2961_v62  ;;  %v3644_v59 = vld [vmem:[%s8766_s5 + $0x160] sm:$0xff] }
 0x5e0   :  { %3356 = vmatpush.msra.mxu2 %v1810_v3  ;;  %3376 = vmatpush.msra.mxu3 %v1874_v30  ;;  %v1866_v50 = vld [vmem:[%s8765_s4 + $0x1618] sm:$0xff] }
 0x5e1   :  { %3338 = vmatpush.msra.mxu1 %v1738_v18  ;;  %v2050_v41 = vld [vmem:[%s8765_s4 + $0x1bd8] sm:$0xff]  ;;  %v3001_v18 = vadd.f32 %v3000_v52, %v2981_v23  ;;  %v3625_v52 = vld [vmem:[%s8766_s5 + $0xc8] sm:$0xff] }
 0x5e2   :  { %3357 = vmatpush.msra.mxu2 %v1806_v1  ;;  %3377 = vmatpush.msra.mxu3 %v1870_v17  ;;  %v2118_v7 = vld [vmem:[%s8765_s4 + $0x1df8] sm:$0xff]  ;;  %v3020_v17 = vpop.f32.mrf.mxu3 }
 0x5e3   :  { %3339 = vmatmul.f32.vlgmr.msra.gmra.mxu1 %v6134_v2  ;;  %v2182_v45 = vld [vmem:[%s8765_s4 + $0x1ff8] sm:$0xff]  ;;  %v3040_v16 = vpop.f32.mrf.mxu1  ;;  %v3021_v28 = vadd.f32 %v3020_v17, %v3001_v18 }
 0x5e4   :  { %3403 = vmatpush.msrb.mxu1 %v2054_v21  ;;  %3358 = vmatpush.msra.mxu2 %v1802_v51  ;;  %v2046_v2 = vld [vmem:[%s8765_s4 + $0x1bb8] sm:$0xff] }
 0x5e5   :  { %3378 = vmatpush.msra.mxu3 %v1866_v50  ;;  %3359 = vmatmul.f32.vlgmr.msra.gmra.mxu2 %v6148_v20  ;;  %v2114_v10 = vld [vmem:[%s8765_s4 + $0x1dd8] sm:$0xff]  ;;  %v8548_v50 = vadd.f32 1e-05, %v3541_v13 }
 0x5e6   :  { %3379 = vmatmul.f32.vlgmr.msra.gmra.mxu3 %v6154_v0  ;;  %3404 = vmatpush.msrb.mxu1 %v2050_v41  ;;  %v2178_v11 = vld [vmem:[%s8765_s4 + $0x1fd8] sm:$0xff] }
 0x5e7   :  { %3423 = vmatpush.msrb.mxu2 %v2118_v7  ;;  %3443 = vmatpush.msrb.mxu3 %v2182_v45  ;;  %v2042_v20 = vld [vmem:[%s8765_s4 + $0x1b98] sm:$0xff]  ;;  %v3060_v7 = vpop.f32.mrf.mxu2  ;;  %3835 = vrsqrt.f32 %v8548_v50  ;;  %vm3568_vm13 = vweird.f32 %v8548_v50 }
 0x5e8   :  { %3405 = vmatpush.msrb.mxu1 %v2046_v2  ;;  %v2110_v0 = vld [vmem:[%s8765_s4 + $0x1db8] sm:$0xff]  ;;  %v3041_v2 = vadd.f32 %v3040_v16, %v3021_v28  ;;  %v3622_v16 = vld [vmem:[%s8766_s5 + $0xb0] sm:$0xff] }
 0x5e9   :  { %v2174_v39 = vld [vmem:[%s8765_s4 + $0x1fb8] sm:$0xff]  ;;  %3424 = vmatpush.msrb.mxu2 %v2114_v10  ;;  %3444 = vmatpush.msrb.mxu3 %v2178_v11 }
 0x5ea   :  { %v2038_v57 = vld [vmem:[%s8765_s4 + $0x1b78] sm:$0xff]  ;;  %3406 = vmatpush.msrb.mxu1 %v2042_v20  ;;  %v3061_v10 = vadd.f32 %v3060_v7, %v3041_v2  ;;  %v3080_v20 = vpop.f32.mrf.mxu3 }
 0x5eb   :  { %v2106_v15 = vld [vmem:[%s8765_s4 + $0x1d98] sm:$0xff]  ;;  %3425 = vmatpush.msrb.mxu2 %v2110_v0  ;;  %3445 = vmatpush.msrb.mxu3 %v2174_v39 }
 0x5ec   :  { %v2170_v43 = vld [vmem:[%s8765_s4 + $0x1f98] sm:$0xff]  ;;  %3407 = vmatpush.msrb.mxu1 %v2038_v57  ;;  %v3081_v53 = vadd.f32 %v3080_v20, %v3061_v10 }
 0x5ed   :  { %v2034_v47 = vld [vmem:[%s8765_s4 + $0x1b58] sm:$0xff]  ;;  %3426 = vmatpush.msrb.mxu2 %v2106_v15  ;;  %3446 = vmatpush.msrb.mxu3 %v2170_v43  ;;  %v8593_v54 = vpop.eup %3835 }
 0x5ee   :  { %v2102_v38 = vld [vmem:[%s8765_s4 + $0x1d78] sm:$0xff]  ;;  %3408 = vmatpush.msrb.mxu1 %v2034_v47  ;;  %v3563_v12 = vmul.f32 %v8593_v54, %v8548_v50  ;;  %vm3569_vm12 = vweird.f32 %v8593_v54  ;;  %v3636_v50 = vld [vmem:[%s8766_s5 + $0x120] sm:$0xff] }
 0x5ef   :  { %v2166_v42 = vld [vmem:[%s8765_s4 + $0x1f78] sm:$0xff]  ;;  %3427 = vmatpush.msrb.mxu2 %v2102_v38  ;;  %vm3570_vm14 = vmor %vm3568_vm13, %vm3569_vm12 }
 0x5f0   :  { %v2030_v56 = vld [vmem:[%s8765_s4 + $0x1b38] sm:$0xff]  ;;  %3447 = vmatpush.msrb.mxu3 %v2166_v42 }
 0x5f1   :  { %v2098_v8 = vld [vmem:[%s8765_s4 + $0x1d58] sm:$0xff]  ;;  %3409 = vmatpush.msrb.mxu1 %v2030_v56  ;;  %v3629_v56 = vld [vmem:[%s8766_s5 + $0xe8] sm:$0xff] }
 0x5f2   :  { %v2162_v29 = vld [vmem:[%s8765_s4 + $0x1f58] sm:$0xff]  ;;  %3428 = vmatpush.msrb.mxu2 %v2098_v8 }
 0x5f3   :  { %v2026_v40 = vld [vmem:[%s8765_s4 + $0x1b18] sm:$0xff]  ;;  %3448 = vmatpush.msrb.mxu3 %v2162_v29  ;;  %v3645_v29 = vld [vmem:[%s8766_s5 + $0x168] sm:$0xff] }
 0x5f4   :  { %v2094_v58 = vld [vmem:[%s8765_s4 + $0x1d38] sm:$0xff]  ;;  %3410 = vmatpush.msrb.mxu1 %v2026_v40 }
 0x5f5   :  { %v2158_v9 = vld [vmem:[%s8765_s4 + $0x1f38] sm:$0xff]  ;;  %3429 = vmatpush.msrb.mxu2 %v2094_v58  ;;  %v3564_v58 = vmul.f32 %v8593_v54, %v3563_v12 }
 0x5f6   :  { %v2022_v34 = vld [vmem:[%s8765_s4 + $0x1af8] sm:$0xff]  ;;  %3449 = vmatpush.msrb.mxu3 %v2158_v9 }
 0x5f7   :  { %v2090_v35 = vld [vmem:[%s8765_s4 + $0x1d18] sm:$0xff]  ;;  %3411 = vmatpush.msrb.mxu1 %v2022_v34 }
 0x5f8   :  { %v2154_v6 = vld [vmem:[%s8765_s4 + $0x1f18] sm:$0xff]  ;;  %3430 = vmatpush.msrb.mxu2 %v2090_v35 }
 0x5f9   :  { %v2018_v37 = vld [vmem:[%s8765_s4 + $0x1ad8] sm:$0xff]  ;;  %3450 = vmatpush.msrb.mxu3 %v2154_v6 }
 0x5fa   :  { %v2086_v3 = vld [vmem:[%s8765_s4 + $0x1cf8] sm:$0xff]  ;;  %3412 = vmatpush.msrb.mxu1 %v2018_v37  ;;  %v3565_v37 = vmul.f32 0.5, %v3564_v58 }
 0x5fb   :  { %v2150_v30 = vld [vmem:[%s8765_s4 + $0x1ef8] sm:$0xff]  ;;  %3431 = vmatpush.msrb.mxu2 %v2086_v3 }
 0x5fc   :  { %v2014_v46 = vld [vmem:[%s8765_s4 + $0x1ab8] sm:$0xff]  ;;  %3451 = vmatpush.msrb.mxu3 %v2150_v30  ;;  %v3100_v57 = vpop.f32.mrf.mxu1  ;;  %v3642_v30 = vld [vmem:[%s8766_s5 + $0x150] sm:$0xff]  ;;  %v3566_v17 = vsub.f32 1.5, %v3565_v37 }
 0x5fd   :  { %v2082_v24 = vld [vmem:[%s8765_s4 + $0x1cd8] sm:$0xff]  ;;  %3413 = vmatpush.msrb.mxu1 %v2014_v46  ;;  %v3101_v47 = vadd.f32 %v3100_v57, %v3081_v53  ;;  %v3624_v46 = vld [vmem:[%s8766_s5 + $0xc0] sm:$0xff] }
 0x5fe   :  { %v2146_v1 = vld [vmem:[%s8765_s4 + $0x1ed8] sm:$0xff]  ;;  %3432 = vmatpush.msrb.mxu2 %v2082_v24  ;;  %v3641_v24 = vld [vmem:[%s8766_s5 + $0x148] sm:$0xff]  ;;  %v3567_v7 = vmul.f32 %v8593_v54, %v3566_v17 }
 0x5ff   :  { %v2010_v33 = vld [vmem:[%s8765_s4 + $0x1a98] sm:$0xff]  ;;  %3452 = vmatpush.msrb.mxu3 %v2146_v1 }
 0x600   :  { %v2078_v21 = vld [vmem:[%s8765_s4 + $0x1cb8] sm:$0xff]  ;;  %3414 = vmatpush.msrb.mxu1 %v2010_v33  ;;  %v3571_v20 = vsel %vm3570_vm14, %v8593_v54, %v3567_v7  ;;  %v3633_v54 = vld [vmem:[%s8766_s5 + $0x108] sm:$0xff] }
 0x601   :  { %v2142_v51 = vld [vmem:[%s8765_s4 + $0x1eb8] sm:$0xff]  ;;  %3433 = vmatpush.msrb.mxu2 %v2078_v21 }
 0x602   :  { %v2006_v26 = vld [vmem:[%s8765_s4 + $0x1a78] sm:$0xff]  ;;  %3453 = vmatpush.msrb.mxu3 %v2142_v51  ;;  %v3640_v51 = vld [vmem:[%s8766_s5 + $0x140] sm:$0xff] }
 0x603   :  { %v2074_v41 = vld [vmem:[%s8765_s4 + $0x1c98] sm:$0xff]  ;;  %3415 = vmatpush.msrb.mxu1 %v2006_v26 }
 0x604   :  { %v2138_v22 = vld [vmem:[%s8765_s4 + $0x1e98] sm:$0xff]  ;;  %3434 = vmatpush.msrb.mxu2 %v2074_v41 }
 0x605   :  { %v2002_v45 = vld [vmem:[%s8765_s4 + $0x1a58] sm:$0xff]  ;;  %3454 = vmatpush.msrb.mxu3 %v2138_v22  ;;  %v3120_v38 = vpop.f32.mrf.mxu2  ;;  %v3621_v22 = vld [vmem:[%s8766_s5 + $0xa8] sm:$0xff] }
 0x606   :  { %v2070_v49 = vld [vmem:[%s8765_s4 + $0x1c78] sm:$0xff]  ;;  %3416 = vmatpush.msrb.mxu1 %v2002_v45  ;;  %v3140_v31 = vpop.f32.mrf.mxu3 }
 0x607   :  { %v2134_v4 = vld [vmem:[%s8765_s4 + $0x1e78] sm:$0xff]  ;;  %3435 = vmatpush.msrb.mxu2 %v2070_v49  ;;  %v3638_v49 = vld [vmem:[%s8766_s5 + $0x130] sm:$0xff] }
 0x608   :  { %v1998_v27 = vld [vmem:[%s8765_s4 + $0x1a38] sm:$0xff]  ;;  %3455 = vmatpush.msrb.mxu3 %v2134_v4  ;;  %v3620_v4 = vld [vmem:[%s8766_s5 + $0xa0] sm:$0xff] }
 0x609   :  { %v2066_v11 = vld [vmem:[%s8765_s4 + $0x1c58] sm:$0xff]  ;;  %3417 = vmatpush.msrb.mxu1 %v1998_v27 }
 0x60a   :  { %v2130_v32 = vld [vmem:[%s8765_s4 + $0x1e58] sm:$0xff]  ;;  %3436 = vmatpush.msrb.mxu2 %v2066_v11  ;;  %v3637_v11 = vld [vmem:[%s8766_s5 + $0x128] sm:$0xff] }
 0x60b   :  { %v1994_v0 = vld [vmem:[%s8765_s4 + $0x1a18] sm:$0xff]  ;;  %3456 = vmatpush.msrb.mxu3 %v2130_v32 }
 0x60c   :  { %v2062_v39 = vld [vmem:[%s8765_s4 + $0x1c38] sm:$0xff]  ;;  %3418 = vmatpush.msrb.mxu1 %v1994_v0 }
 0x60d   :  { %v2126_v55 = vld [vmem:[%s8765_s4 + $0x1e38] sm:$0xff]  ;;  %3437 = vmatpush.msrb.mxu2 %v2062_v39  ;;  %3419 = vmatmul.f32.vlgmr.msrb.gmra.mxu1 %v6301_v14  ;;  %v3121_v14 = vadd.f32 %v3120_v38, %v3101_v47  ;;  %v3545_v39 = vsub.f32 %v8327_v36, %v8472_v19  ;;  %v3634_v36 = vld [vmem:[%s8766_s5 + $0x110] sm:$0xff]  ;;  %v3616_v19 = vld [vmem:[%s8766_s5 + $0x80] sm:$0xff] }
 0x60e   :  { %v3631_v44 = vld [vmem:[%s8766_s5 + $0xf8] sm:$0xff]  ;;  %3457 = vmatpush.msrb.mxu3 %v2126_v55  ;;  %v3618_v55 = vld [vmem:[%s8766_s5 + $0x90] sm:$0xff] }
 0x60f   :  { %v2058_v15 = vld [vmem:[%s8765_s4 + $0x1c18] sm:$0xff]  ;;  %3684 = vmatpush.msra.mxu1 %v3631_v44  ;;  %v8615_v8 = vadd.f32 %v3140_v31, %v3121_v14  ;;  %v3593_v44 = vmul.f32 %v3571_v20, %v3545_v39  ;;  %v3654_v39 = vld [vmem:[%s8766_s5 + $0x1b0] sm:$0xff] }
 0x610   :  { %v2122_v43 = vld [vmem:[%s8765_s4 + $0x1e18] sm:$0xff]  ;;  %3438 = vmatpush.msrb.mxu2 %v2058_v15  ;;  %v3617_v15 = vld [vmem:[%s8766_s5 + $0x88] sm:$0xff] }
 0x611   :  { %v3647_v42 = vld [vmem:[%s8766_s5 + $0x178] sm:$0xff]  ;;  %3458 = vmatpush.msrb.mxu3 %v2122_v43  ;;  %3439 = vmatmul.f32.vlgmr.msrb.gmra.mxu2 %v6307_v61  ;;  %v3628_v61 = vld [vmem:[%s8766_s5 + $0xe0] sm:$0xff]  ;;  %v3478_v63 = vsel %vm3463_vm8, %v8615_v8, 0.0  ;;  %v3494_v40 = vmul.f32 %v8615_v8, %v8615_v8  ;;  %v3597_v47 = vmax.f32 %v3593_v44, 0.0 }
 0x612   :  { %3459 = vmatmul.f32.vlgmr.msrb.gmra.mxu3 %v6444_v48  ;;  %3685 = vmatpush.msra.mxu1 %v3630_v25  ;;  %v3627_v48 = vld [vmem:[%s8766_s5 + $0xd8] sm:$0xff]  ;;  %v3479_v9 = vrot.slane %v3478_v63, 4  ;;  %v3632_v25 = vld [vmem:[%s8766_s5 + $0x100] sm:$0xff] }
 0x613   :  { %3704 = vmatpush.msra.mxu2 %v3647_v42  ;;  %v3510_v34 = vsel %vm3463_vm8, %v3494_v40, 0.0  ;;  %v3643_v6 = vld [vmem:[%s8766_s5 + $0x158] sm:$0xff]  ;;  %v3160_v40 = vpop.f32.mrf.mxu0 }
 0x614   :  { %3686 = vmatpush.msra.mxu1 %v3629_v56  ;;  %v3480_v62 = vadd.f32 %v3479_v9, %v3478_v63  ;;  %v3511_v35 = vrot.slane %v3510_v34, 4  ;;  %v3623_v1 = vld [vmem:[%s8766_s5 + $0xb8] sm:$0xff] }
 0x615   :  { %3705 = vmatpush.msra.mxu2 %v3646_v5  ;;  %v3639_v41 = vld [vmem:[%s8766_s5 + $0x138] sm:$0xff] }
 0x616   :  { %3687 = vmatpush.msra.mxu1 %v3628_v61  ;;  %v3481_v23 = vrot.slane %v3480_v62, 2  ;;  %v3512_v3 = vadd.f32 %v3511_v35, %v3510_v34  ;;  %v3619_v32 = vld [vmem:[%s8766_s5 + $0x98] sm:$0xff] }
 0x617   :  { %3706 = vmatpush.msra.mxu2 %v3645_v29  ;;  %v3635_v53 = vld [vmem:[%s8766_s5 + $0x118] sm:$0xff] }
 0x618   :  { %3688 = vmatpush.msra.mxu1 %v3627_v48  ;;  %v3482_v13 = vadd.f32 %v3481_v23, %v3480_v62  ;;  %v3513_v18 = vrot.slane %v3512_v3, 2  ;;  %v3655_v20 = vld [vmem:[%s8766_s5 + $0x1b8] sm:$0xff] }
 0x619   :  { %3707 = vmatpush.msra.mxu2 %v3644_v59 }
 0x61a   :  { %3689 = vmatpush.msra.mxu1 %v3626_v60  ;;  %v3483_v33 = vrot.slane %v3482_v13, 1  ;;  %v3514_v21 = vadd.f32 %v3513_v18, %v3512_v3 }
 0x61b   :  { %3708 = vmatpush.msra.mxu2 %v3643_v6  ;;  %v3240_v62 = vpop.f32.mrf.mxu0 }
 0x61c   :  { %3690 = vmatpush.msra.mxu1 %v3625_v52  ;;  %v3484_v26 = vadd.f32 %v3483_v33, %v3482_v13  ;;  %v3515_v28 = vrot.slane %v3514_v21, 1  ;;  %v3662_v33 = vld [vmem:[%s8766_s5 + $0x1f0] sm:$0xff] }
 0x61d   :  { %3709 = vmatpush.msra.mxu2 %v3642_v30 }
 0x61e   :  { %3691 = vmatpush.msra.mxu1 %v3624_v46  ;;  %v3516_v45 = vadd.f32 %v3515_v28, %v3514_v21  ;;  %v3526_v2 = vmul.f32 0.5, %v3484_v26  ;;  %v3180_v63 = vpop.f32.mrf.mxu1  ;;  %v3661_v21 = vld [vmem:[%s8766_s5 + $0x1e8] sm:$0xff]  ;;  %v3660_v26 = vld [vmem:[%s8766_s5 + $0x1e0] sm:$0xff]  ;;  %v3659_v28 = vld [vmem:[%s8766_s5 + $0x1d8] sm:$0xff] }
 0x61f   :  { %3710 = vmatpush.msra.mxu2 %v3641_v24  ;;  %v3181_v9 = vadd.f32 %v3180_v63, %v3160_v40 }
 0x620   :  { %3692 = vmatpush.msra.mxu1 %v3623_v1  ;;  %v3530_v27 = vmul.f32 0.5, %v3516_v45  ;;  %v3534_v10 = vmul.f32 %v3526_v2, %v3526_v2  ;;  %v3546_v5 = vsub.f32 %v8615_v8, %v3526_v2  ;;  %v3663_v1 = vld [vmem:[%s8766_s5 + $0x1f8] sm:$0xff]  ;;  %v3658_v45 = vld [vmem:[%s8766_s5 + $0x1d0] sm:$0xff] }
 0x621   :  { %3711 = vmatpush.msra.mxu2 %v3640_v51  ;;  %3724 = vmatpush.msra.mxu3 %v3663_v1 }
 0x622   :  { %3693 = vmatpush.msra.mxu1 %v3622_v16  ;;  %v3538_v0 = vsub.f32 %v3530_v27, %v3534_v10  ;;  %v3656_v10 = vld [vmem:[%s8766_s5 + $0x1c0] sm:$0xff] }
 0x623   :  { %3712 = vmatpush.msra.mxu2 %v3639_v41  ;;  %v3320_v30 = vpop.f32.mrf.mxu0  ;;  %3725 = vmatpush.msra.mxu3 %v3662_v33 }
 0x624   :  { %3694 = vmatpush.msra.mxu1 %v3621_v22  ;;  %v3542_v57 = vmax.f32 %v3538_v0, 0.0 }
 0x625   :  { %3713 = vmatpush.msra.mxu2 %v3638_v49  ;;  %3726 = vmatpush.msra.mxu3 %v3661_v21  ;;  %v3657_v49 = vld [vmem:[%s8766_s5 + $0x1c8] sm:$0xff] }
 0x626   :  { %3695 = vmatpush.msra.mxu1 %v3620_v4  ;;  %v3550_v43 = vadd.f32 1e-05, %v3542_v57  ;;  %v3200_v58 = vpop.f32.mrf.mxu2 }
 0x627   :  { %3714 = vmatpush.msra.mxu2 %v3637_v11  ;;  %v3201_v59 = vadd.f32 %v3200_v58, %v3181_v9  ;;  %v3220_v34 = vpop.f32.mrf.mxu3  ;;  %3727 = vmatpush.msra.mxu3 %v3660_v26 }
 0x628   :  { %3696 = vmatpush.msra.mxu1 %v3619_v32  ;;  %3837 = vrsqrt.f32 %v3550_v43  ;;  %vm3578_vm0 = vweird.f32 %v3550_v43 }
 0x629   :  { %3715 = vmatpush.msra.mxu2 %v3636_v50  ;;  %v3221_v60 = vadd.f32 %v3220_v34, %v3201_v59  ;;  %3728 = vmatpush.msra.mxu3 %v3659_v28 }
 0x62a   :  { %3697 = vmatpush.msra.mxu1 %v3618_v55 }
 0x62b   :  { %3716 = vmatpush.msra.mxu2 %v3635_v53  ;;  %v3241_v6 = vadd.f32 %v3240_v62, %v3221_v60  ;;  %v3400_v41 = vpop.f32.mrf.mxu0  ;;  %3729 = vmatpush.msra.mxu3 %v3658_v45  ;;  %v3653_v53 = vld [vmem:[%s8766_s5 + $0x1a8] sm:$0xff] }
 0x62c   :  { %3698 = vmatpush.msra.mxu1 %v3617_v15 }
 0x62d   :  { %3717 = vmatpush.msra.mxu2 %v3634_v36  ;;  %3730 = vmatpush.msra.mxu3 %v3657_v49 }
 0x62e   :  { %3699 = vmatpush.msra.mxu1 %v3616_v19  ;;  %v3838_v38 = vpop.eup %3837 }
 0x62f   :  { %3700 = vmatmul.f32.vlgmr.msra.gmra.mxu1 %v3597_v47  ;;  %3718 = vmatpush.msra.mxu2 %v3633_v54  ;;  %v3573_v42 = vmul.f32 %v3838_v38, %v3550_v43  ;;  %vm3579_vm15 = vweird.f32 %v3838_v38  ;;  %v3652_v43 = vld [vmem:[%s8766_s5 + $0x1a0] sm:$0xff]  ;;  %v3651_v54 = vld [vmem:[%s8766_s5 + $0x198] sm:$0xff] }
 0x630   :  { %vm3580_vm1 = vmor %vm3578_vm0, %vm3579_vm15  ;;  %3731 = vmatpush.msra.mxu3 %v3656_v10 }
 0x631   :  { %3719 = vmatpush.msra.mxu2 %v3632_v25  ;;  %v3574_v56 = vmul.f32 %v3838_v38, %v3573_v42 }
 0x632   :  { %3732 = vmatpush.msra.mxu3 %v3655_v20 }
 0x633   :  { %v3575_v14 = vmul.f32 0.5, %v3574_v56 }
 0x634   :  { %3733 = vmatpush.msra.mxu3 %v3654_v39 }
 0x635   :  { %v3576_v12 = vsub.f32 1.5, %v3575_v14  ;;  %v3649_v14 = vld [vmem:[%s8766_s5 + $0x188] sm:$0xff] }
 0x636   :  { %3734 = vmatpush.msra.mxu3 %v3653_v53 }
 0x637   :  { %v3577_v31 = vmul.f32 %v3838_v38, %v3576_v12  ;;  %v3648_v12 = vld [vmem:[%s8766_s5 + $0x180] sm:$0xff] }
 0x638   :  { %3735 = vmatpush.msra.mxu3 %v3652_v43 }
 0x639   :  { %v3581_v61 = vsel %vm3580_vm1, %v3838_v38, %v3577_v31  ;;  %v3650_v38 = vld [vmem:[%s8766_s5 + $0x190] sm:$0xff]  ;;  %s3867_s5 = smov [#allocation2]  }
 0x63a   :  { %v3594_v29 = vmul.f32 %v3581_v61, %v3546_v5  ;;  %3736 = vmatpush.msra.mxu3 %v3651_v54  ;;  %s3750_s18 = sshll.u32 %s3867_s5, 4  ;;  %s3751_s18 = int_to_ptr.vmem [resolvable:$true] %s3750_s18 }
 0x63c   :  { %v3598_v48 = vmax.f32 %v3594_v29, 0.0  ;;  %3737 = vmatpush.msra.mxu3 %v3650_v38 }
 0x63e   :  { %3720 = vmatmul.f32.vlgmr.msra.gmra.mxu2 %v3598_v48  ;;  %3738 = vmatpush.msra.mxu3 %v3649_v14 }
 0x63f   :  { %v3260_v35 = vpop.f32.mrf.mxu1 }
 0x640   :  { %v3261_v37 = vadd.f32 %v3260_v35, %v3241_v6  ;;  %3739 = vmatpush.msra.mxu3 %v3648_v12 }
 0x647   :  { %v3280_v52 = vpop.f32.mrf.mxu2 }
 0x648   :  { %v3281_v23 = vadd.f32 %v3280_v52, %v3261_v37  ;;  %v3300_v3 = vpop.f32.mrf.mxu3 }
 0x64a   :  { %v3301_v8 = vadd.f32 %v3300_v3, %v3281_v23 }
 0x64c   :  { %v3321_v13 = vadd.f32 %v3320_v30, %v3301_v8  ;;  %v3681_v30 = vpop.f32.mrf.mxu0 }
 0x660   :  { %v3340_v46 = vpop.f32.mrf.mxu1 }
 0x661   :  { %v3341_v24 = vadd.f32 %v3340_v46, %v3321_v13 }
 0x668   :  { %v3360_v18 = vpop.f32.mrf.mxu2 }
 0x669   :  { %v3361_v17 = vadd.f32 %v3360_v18, %v3341_v24  ;;  %v3380_v51 = vpop.f32.mrf.mxu3 }
 0x66b   :  { %v3381_v16 = vadd.f32 %v3380_v51, %v3361_v17 }
 0x66d   :  { %v3401_v7 = vadd.f32 %v3400_v41, %v3381_v16 }
 0x68a   :  { %v3420_v22 = vpop.f32.mrf.mxu1 }
 0x68b   :  { %v3421_v2 = vadd.f32 %v3420_v22, %v3401_v7 }
 0x694   :  { %v3440_v4 = vpop.f32.mrf.mxu2 }
 0x695   :  { %v3441_v27 = vadd.f32 %v3440_v4, %v3421_v2  ;;  %v3460_v11 = vpop.f32.mrf.mxu3 }
 0x697   :  { %v3461_v32 = vadd.f32 %v3460_v11, %v3441_v27 }
 0x699   :  { %v3485_v0 = vsel %vm3463_vm8, %v3461_v32, 0.0  ;;  %v3495_v50 = vmul.f32 %v3461_v32, %v3461_v32 }
 0x69a   :  { %v3486_v55 = vrot.slane %v3485_v0, 4 }
 0x69b   :  { %v3517_v57 = vsel %vm3463_vm8, %v3495_v50, 0.0 }
 0x69c   :  { %v3487_v44 = vadd.f32 %v3486_v55, %v3485_v0  ;;  %v3518_v15 = vrot.slane %v3517_v57, 4 }
 0x69e   :  { %v3488_v36 = vrot.slane %v3487_v44, 2  ;;  %v3519_v19 = vadd.f32 %v3518_v15, %v3517_v57 }
 0x6a0   :  { %v3489_v47 = vadd.f32 %v3488_v36, %v3487_v44  ;;  %v3520_v25 = vrot.slane %v3519_v19, 2 }
 0x6a2   :  { %v3490_v42 = vrot.slane %v3489_v47, 1  ;;  %v3521_v56 = vadd.f32 %v3520_v25, %v3519_v19 }
 0x6a4   :  { %v3491_v31 = vadd.f32 %v3490_v42, %v3489_v47  ;;  %v3522_v5 = vrot.slane %v3521_v56, 1 }
 0x6a6   :  { %v3523_v61 = vadd.f32 %v3522_v5, %v3521_v56  ;;  %v3527_v29 = vmul.f32 0.5, %v3491_v31 }
 0x6a8   :  { %v3531_v48 = vmul.f32 0.5, %v3523_v61  ;;  %v3535_v63 = vmul.f32 %v3527_v29, %v3527_v29  ;;  %v3547_v52 = vsub.f32 %v3461_v32, %v3527_v29 }
 0x6aa   :  { %v3539_v40 = vsub.f32 %v3531_v48, %v3535_v63 }
 0x6ac   :  { %v3543_v58 = vmax.f32 %v3539_v40, 0.0  ;;  %v3701_v8 = vpop.f32.mrf.mxu1 }
 0x6ad   :  { %v3702_v13 = vadd.f32 %v3701_v8, %v3681_v30 }
 0x6ae   :  { %v3551_v9 = vadd.f32 1e-05, %v3543_v58 }
 0x6b0   :  { %3839 = vrsqrt.f32 %v3551_v9  ;;  %vm3588_vm3 = vweird.f32 %v3551_v9 }
 0x6b6   :  { %v3840_v59 = vpop.eup %3839 }
 0x6b7   :  { %v3583_v34 = vmul.f32 %v3840_v59, %v3551_v9  ;;  %vm3589_vm2 = vweird.f32 %v3840_v59 }
 0x6b8   :  { %vm3590_vm4 = vmor %vm3588_vm3, %vm3589_vm2 }
 0x6b9   :  { %v3584_v60 = vmul.f32 %v3840_v59, %v3583_v34 }
 0x6bb   :  { %v3585_v62 = vmul.f32 0.5, %v3584_v60 }
 0x6bd   :  { %v3586_v35 = vsub.f32 1.5, %v3585_v62 }
 0x6bf   :  { %v3587_v6 = vmul.f32 %v3840_v59, %v3586_v35 }
 0x6c1   :  { %v3591_v37 = vsel %vm3590_vm4, %v3840_v59, %v3587_v6  ;;  %v3721_v46 = vpop.f32.mrf.mxu2 }
 0x6c2   :  { %v3595_v23 = vmul.f32 %v3591_v37, %v3547_v52  ;;  %v3722_v18 = vadd.f32 %v3721_v46, %v3702_v13 }
 0x6c4   :  { %v3599_v3 = vmax.f32 %v3595_v23, 0.0 }
 0x6c6   :  { %3740 = vmatmul.f32.vlgmr.msra.gmra.mxu3 %v3599_v3 }
 0x749   :  { %v3741_v24 = vpop.f32.mrf.mxu3 }
 0x74a   :  { %v3742_v1 = vadd.f32 %v3741_v24, %v3722_v18 }
 0x74c   :  { %3744 = vst [vmem:[#allocation2] sm:$0x3] %v3742_v1 }
 0x74d   :  { %3755 = dma.vmem_to_hbm [thread:$0]  %s3751_s18, 32, %s3753_s21, [#allocation3]  }
 0x74e   :  { %3865 = dma.done.wait [#allocation3], 32  }
 0x74f   :  { %3866 = vsyncadd [#allocation3], 4294967264 }
 0x750   :  { %3760 = vsyncpa [#allocation3], 1 }

</bundles_post_ra>
